<compile_context>
chip_gen: v6e
topology: v6e:2x2x1
jax: 0.10.0
libtpu: 0.0.40
codegen_flags: <defaults>
</compile_context>

<pallas_src>
import math
from functools import partial

import jax
import jax.numpy as jnp
from jax.experimental import pallas as pl
from jax.experimental.pallas import tpu as pltpu


# ------------------------- per-generation VMEM limit ------------------------ #

def _compute_vmem_limit():
    """~3/4 of physical VMEM, clamped to [32 MiB, 100 MiB] (v5e/v6e ~96 MiB,
    v7x ~48 MiB).  Falls back to a safe 48 MiB if the query is unavailable."""
    try:
        cap = int(pltpu.get_tpu_info().vmem_capacity_bytes)
    except Exception:
        cap = 64 * 1024 * 1024
    return int(max(32 * 1024 * 1024, min((cap * 3) // 4, 100 * 1024 * 1024)))


_VMEM_LIMIT = _compute_vmem_limit()


def _round_up(n, m):
    return ((n + m - 1) // m) * m


def _const_spec(shape, grid_rank, single_buffered):
    """BlockSpec for a grid-invariant (weight/const) input.

    With single_buffered=True the spec is marked pipeline_mode=pl.Buffered(1):
    the block index never changes, so double-buffering it only wastes VMEM.
    """
    ndim = len(shape)
    if grid_rank == 1:
        index_map = lambda b, n=ndim: (0,) * n
    else:
        index_map = lambda b, t, n=ndim: (0,) * n
    if single_buffered:
        return pl.BlockSpec(shape, index_map, pipeline_mode=pl.Buffered(1))
    return pl.BlockSpec(shape, index_map)


# -------------- fused patch projection + positional embedding -------------- #

def _patch_embed_kernel(x_ref, w_ref, b_ref, pos_ref, o_ref):
    # x_ref: (1, tt, token_dim) bf16   w_ref: (token_dim, E) bf16
    # b_ref: (1, E) f32                pos_ref: (tt, E) f32
    proj = jnp.dot(x_ref[0], w_ref[...], preferred_element_type=jnp.float32)
    o_ref[0] = proj + b_ref[...] + pos_ref[...]


def patch_embed(patches_bf16, w_bf16, bias, pos_patch, *, tile_t=256,
                single_buffer_weights=True):
    """(B, T, token_dim) bf16 -> (B, T, E) f32 with bias + pos-emb fused."""
    B, T, token_dim = patches_bf16.shape
    E = w_bf16.shape[1]
    tt = min(tile_t, T)
    if T % tt != 0:
        tt = T   # TODO(synk): pad T to a multiple of tile_t at very large T.
    grid = (B, T // tt)
    return pl.pallas_call(
        _patch_embed_kernel,
        grid=grid,
        in_specs=[pl.BlockSpec((1, tt, token_dim), lambda b, t: (b, t, 0)),
                  _const_spec(w_bf16.shape, 2, single_buffer_weights),
                  _const_spec(bias.shape, 2, single_buffer_weights),
                  pl.BlockSpec((tt, E), lambda b, t: (t, 0))],
        out_specs=pl.BlockSpec((1, tt, E), lambda b, t: (b, t, 0)),
        out_shape=jax.ShapeDtypeStruct((B, T, E), jnp.float32),
        compiler_params=pltpu.CompilerParams(
            dimension_semantics=("parallel", "parallel"),
            vmem_limit_bytes=_VMEM_LIMIT),
    )(patches_bf16, w_bf16, bias, pos_patch)


# --------------------------- transformer block ------------------------------ #

def _gelu_tanh(x):
    c = math.sqrt(2.0 / math.pi)
    return 0.5 * x * (1.0 + jnp.tanh(c * (x + 0.044715 * x * x * x)))


def _layernorm(x, gamma, beta, eps=1e-5):
    mu = jnp.mean(x, axis=-1, keepdims=True)
    var = jnp.mean((x - mu) ** 2, axis=-1, keepdims=True)
    return (x - mu) * jax.lax.rsqrt(var + eps) * gamma + beta


def _encoder_block_kernel(head_num, s_valid,
                          x_ref, wqkv_ref, wo_ref,
                          ln1g_ref, ln1b_ref,
                          w1_ref, b1_ref, w2_ref, b2_ref,
                          ln2g_ref, ln2b_ref,
                          o_ref, ctx_ref):
    x = x_ref[0]                              # (S_pad, E) f32 residual stream
    S_pad, E = x.shape
    H = head_num
    Dh = E // H
    scale = 1.0 / math.sqrt(Dh)
    x_bf = x.astype(jnp.bfloat16)

    # One lane-dense fused QKV projection: (S,E)@(E,3E), bf16 in / f32 acc.
    qkv = jnp.dot(x_bf, wqkv_ref[...], preferred_element_type=jnp.float32)

    # Additive mask: padded key positions (>= s_valid) are excluded from the
    # softmax so padding S does not change results for real tokens.
    key_pos = jax.lax.broadcasted_iota(jnp.int32, (1, S_pad), 1)
    key_bias = jnp.where(key_pos >= s_valid,
                         jnp.float32(-1e30), jnp.float32(0.0))

    # Per-head attention.  Only the (S,S) logits / softmax / (S,Dh) context
    # remain per head; each context is written straight into the (S,E) VMEM
    # scratch at lane offset h*Dh, so nothing is carried across iterations.
    # TODO(synk): switch to lax.fori_loop for large H at ViT-Base sizes.
    for h in range(H):
        q = qkv[:, h * Dh:(h + 1) * Dh]
        k = qkv[:, E + h * Dh:E + (h + 1) * Dh]
        v = qkv[:, 2 * E + h * Dh:2 * E + (h + 1) * Dh]
        # (S,Dh) x (S,Dh) contracting on Dh — the standard flash-attention MXU
        # pattern (same contraction the reference flash kernel uses).
        s = jax.lax.dot_general(
            q.astype(jnp.bfloat16), k.astype(jnp.bfloat16),
            (((1,), (1,)), ((), ())),
            preferred_element_type=jnp.float32) * scale + key_bias
        s = s - jnp.max(s, axis=-1, keepdims=True)
        p = jnp.exp(s)
        p = p * pl.reciprocal(jnp.sum(p, axis=-1, keepdims=True), approx=True)
        ctx_ref[:, h * Dh:(h + 1) * Dh] = jnp.dot(
            p.astype(jnp.bfloat16), v.astype(jnp.bfloat16),
            preferred_element_type=jnp.float32)

    # Single lane-dense output projection against the un-split Wo (K = E).
    attn = jnp.dot(ctx_ref[...].astype(jnp.bfloat16), wo_ref[...],
                   preferred_element_type=jnp.float32)

    x = x + attn                              # residual (dropout = identity)
    x = _layernorm(x, ln1g_ref[...], ln1b_ref[...])

    # --- MLP (bf16 matmul inputs, f32 accumulation) ---
    h1 = jnp.dot(x.astype(jnp.bfloat16), w1_ref[...],
                 preferred_element_type=jnp.float32) + b1_ref[...]
    h1 = _gelu_tanh(h1)
    h2 = jnp.dot(h1.astype(jnp.bfloat16), w2_ref[...],
                 preferred_element_type=jnp.float32) + b2_ref[...]
    x = x + h2
    x = _layernorm(x, ln2g_ref[...], ln2b_ref[...])

    o_ref[0] = x


def encoder_block(x, blk, *, head_num, s_valid, single_buffer_weights=True):
    """x: (B, S_pad, E) -> (B, S_pad, E). Grid iterates over batch (parallel)."""
    B, S_pad, E = x.shape
    weight_specs = [_const_spec(a.shape, 1, single_buffer_weights) for a in blk]
    return pl.pallas_call(
        partial(_encoder_block_kernel, head_num, s_valid),
        grid=(B,),
        in_specs=[pl.BlockSpec((1, S_pad, E), lambda b: (b, 0, 0))]
                 + weight_specs,
        out_specs=pl.BlockSpec((1, S_pad, E), lambda b: (b, 0, 0)),
        out_shape=jax.ShapeDtypeStruct((B, S_pad, E), jnp.float32),
        scratch_shapes=[pltpu.VMEM((S_pad, E), jnp.float32)],  # concat-ctx
        compiler_params=pltpu.CompilerParams(
            dimension_semantics=("parallel",),
            vmem_limit_bytes=_VMEM_LIMIT),
    )(x, *blk)


# ------------------------ one-time parameter prep --------------------------- #

def prepare_params(params):
    """Hoisted out of the forward pass: bf16 casts and fused-QKV layout are
    done once, so each forward call reads prepared bf16 weights directly."""
    w_proj, b_proj = params["proj"]
    prepped = {
        "proj_w": w_proj.astype(jnp.bfloat16),          # (token_dim, E)
        "proj_b": b_proj,                                # (1, E) f32
        "pos_patch": params["embedding"][1:],            # (T, E) f32
        "cls_pos": params["cls_token"][0] + params["embedding"][:1],  # (1, E)
        "head": params["head"],
        "blocks": [],
    }
    for blk in params["blocks"]:
        wqkv, wo, ln1g, ln1b, w1, b1, w2, b2, ln2g, ln2b = blk
        prepped["blocks"].append((
            wqkv.astype(jnp.bfloat16),   # (E, 3E) fused QKV, lane-dense N=3E
            wo.astype(jnp.bfloat16),     # (E, E) un-split output projection
            ln1g, ln1b,
            w1.astype(jnp.bfloat16), b1,
            w2.astype(jnp.bfloat16), b2,
            ln2g, ln2b))
    return prepped


# ------------------------------ ViT forward --------------------------------- #

def vit_forward(x_img, prepped, *, patch_dim, head_num, classification=True,
                single_buffer_weights=True):
    B, C, Hh, Ww = x_img.shape
    pd = patch_dim
    xc, yc = Hh // pd, Ww // pd

    # rearrange 'b c (patch_x x) (patch_y y) -> b (x y) (patch_x patch_y c)'
    patches = x_img.reshape(B, C, pd, xc, pd, yc)
    patches = patches.transpose(0, 3, 5, 2, 4, 1)       # (B, x, y, pd, pd, C)
    T = xc * yc
    token_dim = pd * pd * C
    # bf16 patches: halves the dominant HBM read of the mem-bound kernel.
    patches = patches.reshape(B, T, token_dim).astype(jnp.bfloat16)

    # fused patch projection + bias + positional embedding (Pallas, pipelined)
    proj = patch_embed(patches, prepped["proj_w"], prepped["proj_b"],
                       prepped["pos_patch"],
                       single_buffer_weights=single_buffer_weights)
    E = proj.shape[-1]

    # cls token (with its positional embedding folded in), prepended in XLA,
    # then pad the token axis to a multiple of 8 (padded keys masked in-kernel).
    x = jnp.concatenate(
        [jnp.broadcast_to(prepped["cls_pos"], (B, 1, E)), proj], axis=1)
    S = T + 1
    S_pad = _round_up(S, 8)
    if S_pad != S:
        x = jnp.pad(x, ((0, 0), (0, S_pad - S), (0, 0)))
    # dropout(0.1) -> identity (inference)

    for blk in prepped["blocks"]:
        x = encoder_block(x, blk, head_num=head_num, s_valid=S,
                          single_buffer_weights=single_buffer_weights)

    # Final head: tiny and lane-sparse (num_classes=1) -> plain JAX/XLA.
    w_head, b_head = prepped["head"]
    if classification:
        return jnp.dot(x[:, 0, :], w_head) + b_head                # (B, classes)
    return jnp.dot(x[:, 1:S, :], w_head) + b_head                  # (B, T, classes)


# --------------------- pure-JAX reference (sanity check) -------------------- #

def _reference_forward(x_img, params, *, patch_dim, head_num,
                       classification=True):
    """Plain-JAX reference mimicking the kernel's bf16 matmul inputs / f32
    accumulation (exact softmax division, no padding)."""
    B, C, Hh, Ww = x_img.shape
    pd = patch_dim
    xc, yc = Hh // pd, Ww // pd
    patches = x_img.reshape(B, C, pd, xc, pd, yc).transpose(0, 3, 5, 2, 4, 1)
    T = xc * yc
    token_dim = pd * pd * C
    patches = patches.reshape(B, T, token_dim)

    w_proj, b_proj = params["proj"]
    E = w_proj.shape[1]
    proj = jnp.einsum("btd,de->bte", patches.astype(jnp.bfloat16),
                      w_proj.astype(jnp.bfloat16),
                      preferred_element_type=jnp.float32) + b_proj
    proj = proj + params["embedding"][1:T + 1]
    cls = params["cls_token"][0] + params["embedding"][:1]
    x = jnp.concatenate([jnp.broadcast_to(cls, (B, 1, E)), proj], axis=1)

    H = head_num
    Dh = E // H
    scale = 1.0 / math.sqrt(Dh)
    for blk in params["blocks"]:
        wqkv, wo, ln1g, ln1b, w1, b1, w2, b2, ln2g, ln2b = blk
        qkv = jnp.einsum("bse,ef->bsf", x.astype(jnp.bfloat16),
                         wqkv.astype(jnp.bfloat16),
                         preferred_element_type=jnp.float32)
        q = qkv[..., :E].reshape(B, -1, H, Dh)
        k = qkv[..., E:2 * E].reshape(B, -1, H, Dh)
        v = qkv[..., 2 * E:].reshape(B, -1, H, Dh)
        s = jnp.einsum("bqhd,bkhd->bhqk", q.astype(jnp.bfloat16),
                       k.astype(jnp.bfloat16),
                       preferred_element_type=jnp.float32) * scale
        p = jax.nn.softmax(s, axis=-1)
        ctx = jnp.einsum("bhqk,bkhd->bqhd", p.astype(jnp.bfloat16),
                         v.astype(jnp.bfloat16),
                         preferred_element_type=jnp.float32).reshape(B, -1, E)
        attn = jnp.einsum("bse,ef->bsf", ctx.astype(jnp.bfloat16),
                          wo.astype(jnp.bfloat16),
                          preferred_element_type=jnp.float32)
        x = _layernorm(x + attn, ln1g, ln1b)
        h1 = jnp.einsum("bse,ef->bsf", x.astype(jnp.bfloat16),
                        w1.astype(jnp.bfloat16),
                        preferred_element_type=jnp.float32) + b1
        h1 = _gelu_tanh(h1)
        h2 = jnp.einsum("bsf,fe->bse", h1.astype(jnp.bfloat16),
                        w2.astype(jnp.bfloat16),
                        preferred_element_type=jnp.float32) + b2
        x = _layernorm(x + h2, ln2g, ln2b)

    w_head, b_head = params["head"]
    if classification:
        return jnp.dot(x[:, 0, :], w_head) + b_head
    return jnp.dot(x[:, 1:, :], w_head) + b_head


# ------------------------------ param init ---------------------------------- #

def init_params(key, *, img_dim, in_channels, embedding_dim, head_num,
                mlp_dim, block_num, patch_dim, num_classes):
    num_tokens = (img_dim // patch_dim) ** 2
    token_dim = in_channels * patch_dim ** 2
    keys = jax.random.split(key, 4 + block_num)

    def dense(k, din, dout):
        kw, kb = jax.random.split(k)
        lim = 1.0 / math.sqrt(din)
        w = jax.random.uniform(kw, (din, dout), jnp.float32, -lim, lim)
        b = jax.random.uniform(kb, (1, dout), jnp.float32, -lim, lim)
        return w, b

    params = {}
    params["proj"] = dense(keys[0], token_dim, embedding_dim)
    params["embedding"] = jax.random.uniform(
        keys[1], (num_tokens + 1, embedding_dim), jnp.float32)
    params["cls_token"] = jax.random.normal(
        keys[2], (1, 1, embedding_dim), jnp.float32)
    params["head"] = dense(keys[3], embedding_dim, num_classes)

    blocks = []
    for i in range(block_num):
        bk = jax.random.split(keys[4 + i], 4)
        wqkv, _ = dense(bk[0], embedding_dim, 3 * embedding_dim)  # bias=False
        wo, _ = dense(bk[1], embedding_dim, embedding_dim)        # bias=False
        w1, b1 = dense(bk[2], embedding_dim, mlp_dim)
        w2, b2 = dense(bk[3], mlp_dim, embedding_dim)
        ln1g = jnp.ones((1, embedding_dim), jnp.float32)
        ln1b = jnp.zeros((1, embedding_dim), jnp.float32)
        ln2g = jnp.ones((1, embedding_dim), jnp.float32)
        ln2b = jnp.zeros((1, embedding_dim), jnp.float32)
        blocks.append((wqkv, wo, ln1g, ln1b, w1, b1, w2, b2, ln2g, ln2b))
    params["blocks"] = blocks
    return params


# --------------------------------- main -------------------------------------- #

if __name__ == "__main__":
    img_dim, in_channels = 16, 4
    embedding_dim, head_num, mlp_dim, block_num = 32, 4, 64, 2
    patch_dim, num_classes = 4, 1

    key = jax.random.PRNGKey(0)
    kx, kp = jax.random.split(key)
    x = jax.random.normal(kx, (2, in_channels, img_dim, img_dim), jnp.float32)
    params = init_params(
        kp, img_dim=img_dim, in_channels=in_channels,
        embedding_dim=embedding_dim, head_num=head_num, mlp_dim=mlp_dim,
        block_num=block_num, patch_dim=patch_dim, num_classes=num_classes)

    # One-time weight preparation, hoisted out of the forward pass.
    prepped = prepare_params(params)

    def run(single_buffer_weights):
        fwd = jax.jit(partial(vit_forward, patch_dim=patch_dim,
                              head_num=head_num, classification=True,
                              single_buffer_weights=single_buffer_weights))
        return jax.block_until_ready(fwd(x, prepped))

    try:
        out = run(True)          # single-buffered grid-invariant weight specs
    except Exception:
        # TODO(synk): pipeline_mode=pl.Buffered(1) rejected by this jax build's
        # pallas_call pipeliner; fall back to default double-buffered weights.
        out = run(False)

    assert out.shape == (2, num_classes), out.shape
    assert bool(jnp.all(jnp.isfinite(out)))

    # Numerical sanity check vs. a plain-JAX reference (same bf16 cast points).
    ref = jax.jit(partial(_reference_forward, patch_dim=patch_dim,
                          head_num=head_num, classification=True))(x, params)
    err = float(jnp.max(jnp.abs(out - ref)))
    assert err < 5e-2, f"kernel vs reference mismatch: max abs err = {err}"

    print("KERNEL_OK")
</pallas_src>

<mosaic_0001>
module attributes {stable_mosaic.version = 11 : i64} {
  func.func @_patch_embed_kernel(%arg0: i32, %arg1: i32, %arg2: memref<1x16x64xbf16, #tpu.memory_space<vmem>>, %arg3: memref<64x32xbf16, #tpu.memory_space<vmem>>, %arg4: memref<1x32xf32, #tpu.memory_space<vmem>>, %arg5: memref<16x32xf32, #tpu.memory_space<vmem>>, %arg6: memref<1x16x32xf32, #tpu.memory_space<vmem>>) attributes {dimension_semantics = [#tpu.dimension_semantics<parallel>, #tpu.dimension_semantics<parallel>], iteration_bounds = array<i64: 2, 1>, scalar_prefetch = 0 : i64, scratch_operands = 0 : i64, tpu.core_type = #tpu.core_type<tc>, window_params = [{transform_indices = @transform_0, window_bounds = array<i64: 1, 16, 64>}, {pipeline_mode = #tpu.pipeline_mode<synchronous>, transform_indices = @transform_1, window_bounds = array<i64: 64, 32>}, {pipeline_mode = #tpu.pipeline_mode<synchronous>, transform_indices = @transform_2, window_bounds = array<i64: 1, 32>}, {transform_indices = @transform_3, window_bounds = array<i64: 16, 32>}, {transform_indices = @transform_4, window_bounds = array<i64: 1, 16, 32>}]} {
    %c0 = arith.constant 0 : index
    %c0_0 = arith.constant 0 : index
    %c0_1 = arith.constant 0 : index
    %0 = vector.load %arg2[%c0, %c0_0, %c0_1] : memref<1x16x64xbf16, #tpu.memory_space<vmem>>, vector<1x16x64xbf16>
    %1 = vector.shape_cast %0 : vector<1x16x64xbf16> to vector<16x64xbf16>
    %c0_2 = arith.constant 0 : index
    %c0_3 = arith.constant 0 : index
    %2 = vector.load %arg3[%c0_2, %c0_3] : memref<64x32xbf16, #tpu.memory_space<vmem>>, vector<64x32xbf16>
    %cst = arith.constant dense<0.000000e+00> : vector<16x32xf32>
    %3 = tpu.matmul %1, %2, %cst {dimension_numbers = #tpu.dot_dimension_numbers<[1], [0], [0], [1], [0, 0, 1, 1], [], []>} : vector<16x64xbf16>, vector<64x32xbf16>, vector<16x32xf32> -> vector<16x32xf32>
    %c0_4 = arith.constant 0 : index
    %c0_5 = arith.constant 0 : index
    %4 = vector.load %arg4[%c0_4, %c0_5] : memref<1x32xf32, #tpu.memory_space<vmem>>, vector<1x32xf32>
    %5 = vector.broadcast %4 : vector<1x32xf32> to vector<16x32xf32>
    %6 = arith.addf %3, %5 : vector<16x32xf32>
    %c0_6 = arith.constant 0 : index
    %c0_7 = arith.constant 0 : index
    %7 = vector.load %arg5[%c0_6, %c0_7] : memref<16x32xf32, #tpu.memory_space<vmem>>, vector<16x32xf32>
    %8 = arith.addf %6, %7 : vector<16x32xf32>
    %c0_8 = arith.constant 0 : index
    %c0_9 = arith.constant 0 : index
    %c0_10 = arith.constant 0 : index
    %9 = vector.load %arg6[%c0_8, %c0_9, %c0_10] : memref<1x16x32xf32, #tpu.memory_space<vmem>>, vector<1x16x32xf32>
    %10 = vector.shape_cast %9 : vector<1x16x32xf32> to vector<16x32xf32>
    %11 = vector.shape_cast %8 : vector<16x32xf32> to vector<1x16x32xf32>
    tpu.vector_store %arg6[%c0_8, %c0_9, %c0_10], %11 {strides = array<i32>} : memref<1x16x32xf32, #tpu.memory_space<vmem>>, vector<1x16x32xf32>,
    return
  }
  func.func @transform_0(%arg0: i32, %arg1: i32) -> (i32, i32, i32) {
    %c0_i32 = arith.constant 0 : i32
    %c0_i32_0 = arith.constant 0 : i32
    return %arg0, %arg1, %c0_i32 : i32, i32, i32
  }
  func.func @transform_1(%arg0: i32, %arg1: i32) -> (i32, i32) {
    %c0_i32 = arith.constant 0 : i32
    %c0_i32_0 = arith.constant 0 : i32
    %c0_i32_1 = arith.constant 0 : i32
    return %c0_i32, %c0_i32_0 : i32, i32
  }
  func.func @transform_2(%arg0: i32, %arg1: i32) -> (i32, i32) {
    %c0_i32 = arith.constant 0 : i32
    %c0_i32_0 = arith.constant 0 : i32
    %c0_i32_1 = arith.constant 0 : i32
    return %c0_i32, %c0_i32_0 : i32, i32
  }
  func.func @transform_3(%arg0: i32, %arg1: i32) -> (i32, i32) {
    %c0_i32 = arith.constant 0 : i32
    %c0_i32_0 = arith.constant 0 : i32
    return %arg1, %c0_i32 : i32, i32
  }
  func.func @transform_4(%arg0: i32, %arg1: i32) -> (i32, i32, i32) {
    %c0_i32 = arith.constant 0 : i32
    %c0_i32_0 = arith.constant 0 : i32
    return %arg0, %arg1, %c0_i32 : i32, i32, i32
  }
}

module attributes {stable_mosaic.version = 11 : i64} {
  func.func @_encoder_block_kernel(%arg0: i32, %arg1: memref<1x24x32xf32, #tpu.memory_space<vmem>>, %arg2: memref<32x96xbf16, #tpu.memory_space<vmem>>, %arg3: memref<32x32xbf16, #tpu.memory_space<vmem>>, %arg4: memref<1x32xf32, #tpu.memory_space<vmem>>, %arg5: memref<1x32xf32, #tpu.memory_space<vmem>>, %arg6: memref<32x64xbf16, #tpu.memory_space<vmem>>, %arg7: memref<1x64xf32, #tpu.memory_space<vmem>>, %arg8: memref<64x32xbf16, #tpu.memory_space<vmem>>, %arg9: memref<1x32xf32, #tpu.memory_space<vmem>>, %arg10: memref<1x32xf32, #tpu.memory_space<vmem>>, %arg11: memref<1x32xf32, #tpu.memory_space<vmem>>, %arg12: memref<1x24x32xf32, #tpu.memory_space<vmem>>, %arg13: memref<24x32xf32, #tpu.memory_space<vmem>>) attributes {dimension_semantics = [#tpu.dimension_semantics<parallel>], iteration_bounds = array<i64: 2>, scalar_prefetch = 0 : i64, scratch_operands = 1 : i64, tpu.core_type = #tpu.core_type<tc>, window_params = [{transform_indices = @transform_0, window_bounds = array<i64: 1, 24, 32>}, {pipeline_mode = #tpu.pipeline_mode<synchronous>, transform_indices = @transform_1, window_bounds = array<i64: 32, 96>}, {pipeline_mode = #tpu.pipeline_mode<synchronous>, transform_indices = @transform_2, window_bounds = array<i64: 32, 32>}, {pipeline_mode = #tpu.pipeline_mode<synchronous>, transform_indices = @transform_3, window_bounds = array<i64: 1, 32>}, {pipeline_mode = #tpu.pipeline_mode<synchronous>, transform_indices = @transform_4, window_bounds = array<i64: 1, 32>}, {pipeline_mode = #tpu.pipeline_mode<synchronous>, transform_indices = @transform_5, window_bounds = array<i64: 32, 64>}, {pipeline_mode = #tpu.pipeline_mode<synchronous>, transform_indices = @transform_6, window_bounds = array<i64: 1, 64>}, {pipeline_mode = #tpu.pipeline_mode<synchronous>, transform_indices = @transform_7, window_bounds = array<i64: 64, 32>}, {pipeline_mode = #tpu.pipeline_mode<synchronous>, transform_indices = @transform_8, window_bounds = array<i64: 1, 32>}, {pipeline_mode = #tpu.pipeline_mode<synchronous>, transform_indices = @transform_9, window_bounds = array<i64: 1, 32>}, {pipeline_mode = #tpu.pipeline_mode<synchronous>, transform_indices = @transform_10, window_bounds = array<i64: 1, 32>}, {transform_indices = @transform_11, window_bounds = array<i64: 1, 24, 32>}]} {
    %c0 = arith.constant 0 : index
    %c0_0 = arith.constant 0 : index
    %c0_1 = arith.constant 0 : index
    %0 = vector.load %arg1[%c0, %c0_0, %c0_1] : memref<1x24x32xf32, #tpu.memory_space<vmem>>, vector<1x24x32xf32>
    %1 = vector.shape_cast %0 : vector<1x24x32xf32> to vector<24x32xf32>
    %2 = arith.truncf %1 : vector<24x32xf32> to vector<24x32xbf16>
    %c0_2 = arith.constant 0 : index
    %c0_3 = arith.constant 0 : index
    %3 = vector.load %arg2[%c0_2, %c0_3] : memref<32x96xbf16, #tpu.memory_space<vmem>>, vector<32x96xbf16>
    %cst = arith.constant dense<0.000000e+00> : vector<24x96xf32>
    %4 = tpu.matmul %2, %3, %cst {dimension_numbers = #tpu.dot_dimension_numbers<[1], [0], [0], [1], [0, 0, 1, 1], [], []>} : vector<24x32xbf16>, vector<32x96xbf16>, vector<24x96xf32> -> vector<24x96xf32>
    %5 = tpu.iota {dimensions = array<i32: 1>} : vector<1x24xi32>
    %c17_i32 = arith.constant 17 : i32
    %6 = vector.broadcast %c17_i32 : i32 to vector<1x24xi32>
    %7 = arith.cmpi sge, %5, %6 : vector<1x24xi32>
    %cst_4 = arith.constant -1.000000e+30 : f32
    %cst_5 = arith.constant 0.000000e+00 : f32
    %8 = vector.broadcast %cst_4 : f32 to vector<1x24xf32>
    %9 = vector.broadcast %cst_5 : f32 to vector<1x24xf32>
    %10 = arith.select %7, %8, %9 : vector<1x24xi1>, vector<1x24xf32>
    %11 = vector.extract_strided_slice %4 {offsets = [0, 0], sizes = [24, 8], strides = [1, 1]} : vector<24x96xf32> to vector<24x8xf32>
    %12 = vector.extract_strided_slice %4 {offsets = [0, 32], sizes = [24, 8], strides = [1, 1]} : vector<24x96xf32> to vector<24x8xf32>
    %13 = vector.extract_strided_slice %4 {offsets = [0, 64], sizes = [24, 8], strides = [1, 1]} : vector<24x96xf32> to vector<24x8xf32>
    %14 = arith.truncf %11 : vector<24x8xf32> to vector<24x8xbf16>
    %15 = arith.truncf %12 : vector<24x8xf32> to vector<24x8xbf16>
    %cst_6 = arith.constant dense<0.000000e+00> : vector<24x24xf32>
    %16 = tpu.matmul %14, %15, %cst_6 {dimension_numbers = #tpu.dot_dimension_numbers<[1], [1], [0], [0], [0, 0, 1, 0], [], []>} : vector<24x8xbf16>, vector<24x8xbf16>, vector<24x24xf32> -> vector<24x24xf32>
    %cst_7 = arith.constant 0.353553385 : f32
    %17 = vector.broadcast %cst_7 : f32 to vector<24x24xf32>
    %18 = arith.mulf %16, %17 : vector<24x24xf32>
    %19 = vector.broadcast %10 : vector<1x24xf32> to vector<24x24xf32>
    %20 = arith.addf %18, %19 : vector<24x24xf32>
    %cst_8 = arith.constant dense<0xFF800000> : vector<24xf32>
    %21 = vector.multi_reduction <maximumf>, %20, %cst_8 [1] : vector<24x24xf32> to vector<24xf32>
    %22 = vector.shape_cast %21 : vector<24xf32> to vector<24x1xf32>
    %23 = vector.broadcast %22 : vector<24x1xf32> to vector<24x24xf32>
    %24 = arith.subf %20, %23 : vector<24x24xf32>
    %25 = math.exp %24 : vector<24x24xf32>
    %cst_9 = arith.constant dense<0.000000e+00> : vector<24xf32>
    %26 = vector.multi_reduction <add>, %25, %cst_9 [1] : vector<24x24xf32> to vector<24xf32>
    %27 = vector.shape_cast %26 : vector<24xf32> to vector<24x1xf32>
    %28 = tpu.reciprocal %27 {approx = true} : vector<24x1xf32> -> vector<24x1xf32>
    %29 = vector.broadcast %28 : vector<24x1xf32> to vector<24x24xf32>
    %30 = arith.mulf %25, %29 : vector<24x24xf32>
    %31 = arith.truncf %30 : vector<24x24xf32> to vector<24x24xbf16>
    %32 = arith.truncf %13 : vector<24x8xf32> to vector<24x8xbf16>
    %cst_10 = arith.constant dense<0.000000e+00> : vector<24x8xf32>
    %33 = tpu.matmul %31, %32, %cst_10 {dimension_numbers = #tpu.dot_dimension_numbers<[1], [0], [0], [1], [0, 0, 1, 1], [], []>} : vector<24x24xbf16>, vector<24x8xbf16>, vector<24x8xf32> -> vector<24x8xf32>
    %c0_11 = arith.constant 0 : index
    %c0_12 = arith.constant 0 : index
    %34 = vector.load %arg13[%c0_11, %c0_12] : memref<24x32xf32, #tpu.memory_space<vmem>>, vector<24x8xf32>
    tpu.vector_store %arg13[%c0_11, %c0_12], %33 {strides = array<i32>} : memref<24x32xf32, #tpu.memory_space<vmem>>, vector<24x8xf32>,
    %35 = vector.extract_strided_slice %4 {offsets = [0, 8], sizes = [24, 8], strides = [1, 1]} : vector<24x96xf32> to vector<24x8xf32>
    %36 = vector.extract_strided_slice %4 {offsets = [0, 40], sizes = [24, 8], strides = [1, 1]} : vector<24x96xf32> to vector<24x8xf32>
    %37 = vector.extract_strided_slice %4 {offsets = [0, 72], sizes = [24, 8], strides = [1, 1]} : vector<24x96xf32> to vector<24x8xf32>
    %38 = arith.truncf %35 : vector<24x8xf32> to vector<24x8xbf16>
    %39 = arith.truncf %36 : vector<24x8xf32> to vector<24x8xbf16>
    %cst_13 = arith.constant dense<0.000000e+00> : vector<24x24xf32>
    %40 = tpu.matmul %38, %39, %cst_13 {dimension_numbers = #tpu.dot_dimension_numbers<[1], [1], [0], [0], [0, 0, 1, 0], [], []>} : vector<24x8xbf16>, vector<24x8xbf16>, vector<24x24xf32> -> vector<24x24xf32>
    %cst_14 = arith.constant 0.353553385 : f32
    %41 = vector.broadcast %cst_14 : f32 to vector<24x24xf32>
    %42 = arith.mulf %40, %41 : vector<24x24xf32>
    %43 = vector.broadcast %10 : vector<1x24xf32> to vector<24x24xf32>
    %44 = arith.addf %42, %43 : vector<24x24xf32>
    %cst_15 = arith.constant dense<0xFF800000> : vector<24xf32>
    %45 = vector.multi_reduction <maximumf>, %44, %cst_15 [1] : vector<24x24xf32> to vector<24xf32>
    %46 = vector.shape_cast %45 : vector<24xf32> to vector<24x1xf32>
    %47 = vector.broadcast %46 : vector<24x1xf32> to vector<24x24xf32>
    %48 = arith.subf %44, %47 : vector<24x24xf32>
    %49 = math.exp %48 : vector<24x24xf32>
    %cst_16 = arith.constant dense<0.000000e+00> : vector<24xf32>
    %50 = vector.multi_reduction <add>, %49, %cst_16 [1] : vector<24x24xf32> to vector<24xf32>
    %51 = vector.shape_cast %50 : vector<24xf32> to vector<24x1xf32>
    %52 = tpu.reciprocal %51 {approx = true} : vector<24x1xf32> -> vector<24x1xf32>
    %53 = vector.broadcast %52 : vector<24x1xf32> to vector<24x24xf32>
    %54 = arith.mulf %49, %53 : vector<24x24xf32>
    %55 = arith.truncf %54 : vector<24x24xf32> to vector<24x24xbf16>
    %56 = arith.truncf %37 : vector<24x8xf32> to vector<24x8xbf16>
    %cst_17 = arith.constant dense<0.000000e+00> : vector<24x8xf32>
    %57 = tpu.matmul %55, %56, %cst_17 {dimension_numbers = #tpu.dot_dimension_numbers<[1], [0], [0], [1], [0, 0, 1, 1], [], []>} : vector<24x24xbf16>, vector<24x8xbf16>, vector<24x8xf32> -> vector<24x8xf32>
    %c0_18 = arith.constant 0 : index
    %c8 = arith.constant 8 : index
    %58 = vector.load %arg13[%c0_18, %c8] : memref<24x32xf32, #tpu.memory_space<vmem>>, vector<24x8xf32>
    tpu.vector_store %arg13[%c0_18, %c8], %57 {strides = array<i32>} : memref<24x32xf32, #tpu.memory_space<vmem>>, vector<24x8xf32>,
    %59 = vector.extract_strided_slice %4 {offsets = [0, 16], sizes = [24, 8], strides = [1, 1]} : vector<24x96xf32> to vector<24x8xf32>
    %60 = vector.extract_strided_slice %4 {offsets = [0, 48], sizes = [24, 8], strides = [1, 1]} : vector<24x96xf32> to vector<24x8xf32>
    %61 = vector.extract_strided_slice %4 {offsets = [0, 80], sizes = [24, 8], strides = [1, 1]} : vector<24x96xf32> to vector<24x8xf32>
    %62 = arith.truncf %59 : vector<24x8xf32> to vector<24x8xbf16>
    %63 = arith.truncf %60 : vector<24x8xf32> to vector<24x8xbf16>
    %cst_19 = arith.constant dense<0.000000e+00> : vector<24x24xf32>
    %64 = tpu.matmul %62, %63, %cst_19 {dimension_numbers = #tpu.dot_dimension_numbers<[1], [1], [0], [0], [0, 0, 1, 0], [], []>} : vector<24x8xbf16>, vector<24x8xbf16>, vector<24x24xf32> -> vector<24x24xf32>
    %cst_20 = arith.constant 0.353553385 : f32
    %65 = vector.broadcast %cst_20 : f32 to vector<24x24xf32>
    %66 = arith.mulf %64, %65 : vector<24x24xf32>
    %67 = vector.broadcast %10 : vector<1x24xf32> to vector<24x24xf32>
    %68 = arith.addf %66, %67 : vector<24x24xf32>
    %cst_21 = arith.constant dense<0xFF800000> : vector<24xf32>
    %69 = vector.multi_reduction <maximumf>, %68, %cst_21 [1] : vector<24x24xf32> to vector<24xf32>
    %70 = vector.shape_cast %69 : vector<24xf32> to vector<24x1xf32>
    %71 = vector.broadcast %70 : vector<24x1xf32> to vector<24x24xf32>
    %72 = arith.subf %68, %71 : vector<24x24xf32>
    %73 = math.exp %72 : vector<24x24xf32>
    %cst_22 = arith.constant dense<0.000000e+00> : vector<24xf32>
    %74 = vector.multi_reduction <add>, %73, %cst_22 [1] : vector<24x24xf32> to vector<24xf32>
    %75 = vector.shape_cast %74 : vector<24xf32> to vector<24x1xf32>
    %76 = tpu.reciprocal %75 {approx = true} : vector<24x1xf32> -> vector<24x1xf32>
    %77 = vector.broadcast %76 : vector<24x1xf32> to vector<24x24xf32>
    %78 = arith.mulf %73, %77 : vector<24x24xf32>
    %79 = arith.truncf %78 : vector<24x24xf32> to vector<24x24xbf16>
    %80 = arith.truncf %61 : vector<24x8xf32> to vector<24x8xbf16>
    %cst_23 = arith.constant dense<0.000000e+00> : vector<24x8xf32>
    %81 = tpu.matmul %79, %80, %cst_23 {dimension_numbers = #tpu.dot_dimension_numbers<[1], [0], [0], [1], [0, 0, 1, 1], [], []>} : vector<24x24xbf16>, vector<24x8xbf16>, vector<24x8xf32> -> vector<24x8xf32>
    %c0_24 = arith.constant 0 : index
    %c16 = arith.constant 16 : index
    %82 = vector.load %arg13[%c0_24, %c16] : memref<24x32xf32, #tpu.memory_space<vmem>>, vector<24x8xf32>
    tpu.vector_store %arg13[%c0_24, %c16], %81 {strides = array<i32>} : memref<24x32xf32, #tpu.memory_space<vmem>>, vector<24x8xf32>,
    %83 = vector.extract_strided_slice %4 {offsets = [0, 24], sizes = [24, 8], strides = [1, 1]} : vector<24x96xf32> to vector<24x8xf32>
    %84 = vector.extract_strided_slice %4 {offsets = [0, 56], sizes = [24, 8], strides = [1, 1]} : vector<24x96xf32> to vector<24x8xf32>
    %85 = vector.extract_strided_slice %4 {offsets = [0, 88], sizes = [24, 8], strides = [1, 1]} : vector<24x96xf32> to vector<24x8xf32>
    %86 = arith.truncf %83 : vector<24x8xf32> to vector<24x8xbf16>
    %87 = arith.truncf %84 : vector<24x8xf32> to vector<24x8xbf16>
    %cst_25 = arith.constant dense<0.000000e+00> : vector<24x24xf32>
    %88 = tpu.matmul %86, %87, %cst_25 {dimension_numbers = #tpu.dot_dimension_numbers<[1], [1], [0], [0], [0, 0, 1, 0], [], []>} : vector<24x8xbf16>, vector<24x8xbf16>, vector<24x24xf32> -> vector<24x24xf32>
    %cst_26 = arith.constant 0.353553385 : f32
    %89 = vector.broadcast %cst_26 : f32 to vector<24x24xf32>
    %90 = arith.mulf %88, %89 : vector<24x24xf32>
    %91 = vector.broadcast %10 : vector<1x24xf32> to vector<24x24xf32>
    %92 = arith.addf %90, %91 : vector<24x24xf32>
    %cst_27 = arith.constant dense<0xFF800000> : vector<24xf32>
    %93 = vector.multi_reduction <maximumf>, %92, %cst_27 [1] : vector<24x24xf32> to vector<24xf32>
    %94 = vector.shape_cast %93 : vector<24xf32> to vector<24x1xf32>
    %95 = vector.broadcast %94 : vector<24x1xf32> to vector<24x24xf32>
    %96 = arith.subf %92, %95 : vector<24x24xf32>
    %97 = math.exp %96 : vector<24x24xf32>
    %cst_28 = arith.constant dense<0.000000e+00> : vector<24xf32>
    %98 = vector.multi_reduction <add>, %97, %cst_28 [1] : vector<24x24xf32> to vector<24xf32>
    %99 = vector.shape_cast %98 : vector<24xf32> to vector<24x1xf32>
    %100 = tpu.reciprocal %99 {approx = true} : vector<24x1xf32> -> vector<24x1xf32>
    %101 = vector.broadcast %100 : vector<24x1xf32> to vector<24x24xf32>
    %102 = arith.mulf %97, %101 : vector<24x24xf32>
    %103 = arith.truncf %102 : vector<24x24xf32> to vector<24x24xbf16>
    %104 = arith.truncf %85 : vector<24x8xf32> to vector<24x8xbf16>
    %cst_29 = arith.constant dense<0.000000e+00> : vector<24x8xf32>
    %105 = tpu.matmul %103, %104, %cst_29 {dimension_numbers = #tpu.dot_dimension_numbers<[1], [0], [0], [1], [0, 0, 1, 1], [], []>} : vector<24x24xbf16>, vector<24x8xbf16>, vector<24x8xf32> -> vector<24x8xf32>
    %c0_30 = arith.constant 0 : index
    %c24 = arith.constant 24 : index
    %106 = vector.load %arg13[%c0_30, %c24] : memref<24x32xf32, #tpu.memory_space<vmem>>, vector<24x8xf32>
    tpu.vector_store %arg13[%c0_30, %c24], %105 {strides = array<i32>} : memref<24x32xf32, #tpu.memory_space<vmem>>, vector<24x8xf32>,
    %c0_31 = arith.constant 0 : index
    %c0_32 = arith.constant 0 : index
    %107 = vector.load %arg13[%c0_31, %c0_32] : memref<24x32xf32, #tpu.memory_space<vmem>>, vector<24x32xf32>
    %108 = arith.truncf %107 : vector<24x32xf32> to vector<24x32xbf16>
    %c0_33 = arith.constant 0 : index
    %c0_34 = arith.constant 0 : index
    %109 = vector.load %arg3[%c0_33, %c0_34] : memref<32x32xbf16, #tpu.memory_space<vmem>>, vector<32x32xbf16>
    %cst_35 = arith.constant dense<0.000000e+00> : vector<24x32xf32>
    %110 = tpu.matmul %108, %109, %cst_35 {dimension_numbers = #tpu.dot_dimension_numbers<[1], [0], [0], [1], [0, 0, 1, 1], [], []>} : vector<24x32xbf16>, vector<32x32xbf16>, vector<24x32xf32> -> vector<24x32xf32>
    %111 = arith.addf %1, %110 : vector<24x32xf32>
    %c0_36 = arith.constant 0 : index
    %c0_37 = arith.constant 0 : index
    %112 = vector.load %arg4[%c0_36, %c0_37] : memref<1x32xf32, #tpu.memory_space<vmem>>, vector<1x32xf32>
    %c0_38 = arith.constant 0 : index
    %c0_39 = arith.constant 0 : index
    %113 = vector.load %arg5[%c0_38, %c0_39] : memref<1x32xf32, #tpu.memory_space<vmem>>, vector<1x32xf32>
    %cst_40 = arith.constant dense<0.000000e+00> : vector<24xf32>
    %114 = vector.multi_reduction <add>, %111, %cst_40 [1] : vector<24x32xf32> to vector<24xf32>
    %115 = vector.shape_cast %114 : vector<24xf32> to vector<24x1xf32>
    %cst_41 = arith.constant 3.200000e+01 : f32
    %116 = vector.broadcast %cst_41 : f32 to vector<24x1xf32>
    %117 = arith.divf %115, %116 : vector<24x1xf32>
    %118 = vector.broadcast %117 : vector<24x1xf32> to vector<24x32xf32>
    %119 = arith.subf %111, %118 : vector<24x32xf32>
    %120 = arith.mulf %119, %119 : vector<24x32xf32>
    %cst_42 = arith.constant dense<0.000000e+00> : vector<24xf32>
    %121 = vector.multi_reduction <add>, %120, %cst_42 [1] : vector<24x32xf32> to vector<24xf32>
    %122 = vector.shape_cast %121 : vector<24xf32> to vector<24x1xf32>
    %cst_43 = arith.constant 3.200000e+01 : f32
    %123 = vector.broadcast %cst_43 : f32 to vector<24x1xf32>
    %124 = arith.divf %122, %123 : vector<24x1xf32>
    %125 = vector.broadcast %117 : vector<24x1xf32> to vector<24x32xf32>
    %126 = arith.subf %111, %125 : vector<24x32xf32>
    %cst_44 = arith.constant 9.99999974E-6 : f32
    %127 = vector.broadcast %cst_44 : f32 to vector<24x1xf32>
    %128 = arith.addf %124, %127 : vector<24x1xf32>
    %129 = math.rsqrt %128 : vector<24x1xf32>
    %130 = vector.broadcast %129 : vector<24x1xf32> to vector<24x32xf32>
    %131 = arith.mulf %126, %130 : vector<24x32xf32>
    %132 = vector.broadcast %112 : vector<1x32xf32> to vector<24x32xf32>
    %133 = arith.mulf %131, %132 : vector<24x32xf32>
    %134 = vector.broadcast %113 : vector<1x32xf32> to vector<24x32xf32>
    %135 = arith.addf %133, %134 : vector<24x32xf32>
    %136 = arith.truncf %135 : vector<24x32xf32> to vector<24x32xbf16>
    %c0_45 = arith.constant 0 : index
    %c0_46 = arith.constant 0 : index
    %137 = vector.load %arg6[%c0_45, %c0_46] : memref<32x64xbf16, #tpu.memory_space<vmem>>, vector<32x64xbf16>
    %cst_47 = arith.constant dense<0.000000e+00> : vector<24x64xf32>
    %138 = tpu.matmul %136, %137, %cst_47 {dimension_numbers = #tpu.dot_dimension_numbers<[1], [0], [0], [1], [0, 0, 1, 1], [], []>} : vector<24x32xbf16>, vector<32x64xbf16>, vector<24x64xf32> -> vector<24x64xf32>
    %c0_48 = arith.constant 0 : index
    %c0_49 = arith.constant 0 : index
    %139 = vector.load %arg7[%c0_48, %c0_49] : memref<1x64xf32, #tpu.memory_space<vmem>>, vector<1x64xf32>
    %140 = vector.broadcast %139 : vector<1x64xf32> to vector<24x64xf32>
    %141 = arith.addf %138, %140 : vector<24x64xf32>
    %cst_50 = arith.constant 5.000000e-01 : f32
    %142 = vector.broadcast %cst_50 : f32 to vector<24x64xf32>
    %143 = arith.mulf %142, %141 : vector<24x64xf32>
    %cst_51 = arith.constant 4.471500e-02 : f32
    %144 = vector.broadcast %cst_51 : f32 to vector<24x64xf32>
    %145 = arith.mulf %144, %141 : vector<24x64xf32>
    %146 = arith.mulf %145, %141 : vector<24x64xf32>
    %147 = arith.mulf %146, %141 : vector<24x64xf32>
    %148 = arith.addf %141, %147 : vector<24x64xf32>
    %cst_52 = arith.constant 0.797884583 : f32
    %149 = vector.broadcast %cst_52 : f32 to vector<24x64xf32>
    %150 = arith.mulf %149, %148 : vector<24x64xf32>
    %151 = math.tanh %150 : vector<24x64xf32>
    %cst_53 = arith.constant 1.000000e+00 : f32
    %152 = vector.broadcast %cst_53 : f32 to vector<24x64xf32>
    %153 = arith.addf %152, %151 : vector<24x64xf32>
    %154 = arith.mulf %143, %153 : vector<24x64xf32>
    %155 = arith.truncf %154 : vector<24x64xf32> to vector<24x64xbf16>
    %c0_54 = arith.constant 0 : index
    %c0_55 = arith.constant 0 : index
    %156 = vector.load %arg8[%c0_54, %c0_55] : memref<64x32xbf16, #tpu.memory_space<vmem>>, vector<64x32xbf16>
    %cst_56 = arith.constant dense<0.000000e+00> : vector<24x32xf32>
    %157 = tpu.matmul %155, %156, %cst_56 {dimension_numbers = #tpu.dot_dimension_numbers<[1], [0], [0], [1], [0, 0, 1, 1], [], []>} : vector<24x64xbf16>, vector<64x32xbf16>, vector<24x32xf32> -> vector<24x32xf32>
    %c0_57 = arith.constant 0 : index
    %c0_58 = arith.constant 0 : index
    %158 = vector.load %arg9[%c0_57, %c0_58] : memref<1x32xf32, #tpu.memory_space<vmem>>, vector<1x32xf32>
    %159 = vector.broadcast %158 : vector<1x32xf32> to vector<24x32xf32>
    %160 = arith.addf %157, %159 : vector<24x32xf32>
    %161 = arith.addf %135, %160 : vector<24x32xf32>
    %c0_59 = arith.constant 0 : index
    %c0_60 = arith.constant 0 : index
    %162 = vector.load %arg10[%c0_59, %c0_60] : memref<1x32xf32, #tpu.memory_space<vmem>>, vector<1x32xf32>
    %c0_61 = arith.constant 0 : index
    %c0_62 = arith.constant 0 : index
    %163 = vector.load %arg11[%c0_61, %c0_62] : memref<1x32xf32, #tpu.memory_space<vmem>>, vector<1x32xf32>
    %cst_63 = arith.constant dense<0.000000e+00> : vector<24xf32>
    %164 = vector.multi_reduction <add>, %161, %cst_63 [1] : vector<24x32xf32> to vector<24xf32>
    %165 = vector.shape_cast %164 : vector<24xf32> to vector<24x1xf32>
    %cst_64 = arith.constant 3.200000e+01 : f32
    %166 = vector.broadcast %cst_64 : f32 to vector<24x1xf32>
    %167 = arith.divf %165, %166 : vector<24x1xf32>
    %168 = vector.broadcast %167 : vector<24x1xf32> to vector<24x32xf32>
    %169 = arith.subf %161, %168 : vector<24x32xf32>
    %170 = arith.mulf %169, %169 : vector<24x32xf32>
    %cst_65 = arith.constant dense<0.000000e+00> : vector<24xf32>
    %171 = vector.multi_reduction <add>, %170, %cst_65 [1] : vector<24x32xf32> to vector<24xf32>
    %172 = vector.shape_cast %171 : vector<24xf32> to vector<24x1xf32>
    %cst_66 = arith.constant 3.200000e+01 : f32
    %173 = vector.broadcast %cst_66 : f32 to vector<24x1xf32>
    %174 = arith.divf %172, %173 : vector<24x1xf32>
    %175 = vector.broadcast %167 : vector<24x1xf32> to vector<24x32xf32>
    %176 = arith.subf %161, %175 : vector<24x32xf32>
    %cst_67 = arith.constant 9.99999974E-6 : f32
    %177 = vector.broadcast %cst_67 : f32 to vector<24x1xf32>
    %178 = arith.addf %174, %177 : vector<24x1xf32>
    %179 = math.rsqrt %178 : vector<24x1xf32>
    %180 = vector.broadcast %179 : vector<24x1xf32> to vector<24x32xf32>
    %181 = arith.mulf %176, %180 : vector<24x32xf32>
    %182 = vector.broadcast %162 : vector<1x32xf32> to vector<24x32xf32>
    %183 = arith.mulf %181, %182 : vector<24x32xf32>
    %184 = vector.broadcast %163 : vector<1x32xf32> to vector<24x32xf32>
    %185 = arith.addf %183, %184 : vector<24x32xf32>
    %c0_68 = arith.constant 0 : index
    %c0_69 = arith.constant 0 : index
    %c0_70 = arith.constant 0 : index
    %186 = vector.load %arg12[%c0_68, %c0_69, %c0_70] : memref<1x24x32xf32, #tpu.memory_space<vmem>>, vector<1x24x32xf32>
    %187 = vector.shape_cast %186 : vector<1x24x32xf32> to vector<24x32xf32>
    %188 = vector.shape_cast %185 : vector<24x32xf32> to vector<1x24x32xf32>
    tpu.vector_store %arg12[%c0_68, %c0_69, %c0_70], %188 {strides = array<i32>} : memref<1x24x32xf32, #tpu.memory_space<vmem>>, vector<1x24x32xf32>,
    return
  }
  func.func @transform_0(%arg0: i32) -> (i32, i32, i32) {
    %c0_i32 = arith.constant 0 : i32
    %c0_i32_0 = arith.constant 0 : i32
    %c0_i32_1 = arith.constant 0 : i32
    return %arg0, %c0_i32, %c0_i32_0 : i32, i32, i32
  }
  func.func @transform_1(%arg0: i32) -> (i32, i32) {
    %c0_i32 = arith.constant 0 : i32
    %c0_i32_0 = arith.constant 0 : i32
    %c0_i32_1 = arith.constant 0 : i32
    return %c0_i32, %c0_i32_0 : i32, i32
  }
  func.func @transform_2(%arg0: i32) -> (i32, i32) {
    %c0_i32 = arith.constant 0 : i32
    %c0_i32_0 = arith.constant 0 : i32
    %c0_i32_1 = arith.constant 0 : i32
    return %c0_i32, %c0_i32_0 : i32, i32
  }
  func.func @transform_3(%arg0: i32) -> (i32, i32) {
    %c0_i32 = arith.constant 0 : i32
    %c0_i32_0 = arith.constant 0 : i32
    %c0_i32_1 = arith.constant 0 : i32
    return %c0_i32, %c0_i32_0 : i32, i32
  }
  func.func @transform_4(%arg0: i32) -> (i32, i32) {
    %c0_i32 = arith.constant 0 : i32
    %c0_i32_0 = arith.constant 0 : i32
    %c0_i32_1 = arith.constant 0 : i32
    return %c0_i32, %c0_i32_0 : i32, i32
  }
  func.func @transform_5(%arg0: i32) -> (i32, i32) {
    %c0_i32 = arith.constant 0 : i32
    %c0_i32_0 = arith.constant 0 : i32
    %c0_i32_1 = arith.constant 0 : i32
    return %c0_i32, %c0_i32_0 : i32, i32
  }
  func.func @transform_6(%arg0: i32) -> (i32, i32) {
    %c0_i32 = arith.constant 0 : i32
    %c0_i32_0 = arith.constant 0 : i32
    %c0_i32_1 = arith.constant 0 : i32
    return %c0_i32, %c0_i32_0 : i32, i32
  }
  func.func @transform_7(%arg0: i32) -> (i32, i32) {
    %c0_i32 = arith.constant 0 : i32
    %c0_i32_0 = arith.constant 0 : i32
    %c0_i32_1 = arith.constant 0 : i32
    return %c0_i32, %c0_i32_0 : i32, i32
  }
  func.func @transform_8(%arg0: i32) -> (i32, i32) {
    %c0_i32 = arith.constant 0 : i32
    %c0_i32_0 = arith.constant 0 : i32
    %c0_i32_1 = arith.constant 0 : i32
    return %c0_i32, %c0_i32_0 : i32, i32
  }
  func.func @transform_9(%arg0: i32) -> (i32, i32) {
    %c0_i32 = arith.constant 0 : i32
    %c0_i32_0 = arith.constant 0 : i32
    %c0_i32_1 = arith.constant 0 : i32
    return %c0_i32, %c0_i32_0 : i32, i32
  }
  func.func @transform_10(%arg0: i32) -> (i32, i32) {
    %c0_i32 = arith.constant 0 : i32
    %c0_i32_0 = arith.constant 0 : i32
    %c0_i32_1 = arith.constant 0 : i32
    return %c0_i32, %c0_i32_0 : i32, i32
  }
  func.func @transform_11(%arg0: i32) -> (i32, i32, i32) {
    %c0_i32 = arith.constant 0 : i32
    %c0_i32_0 = arith.constant 0 : i32
    %c0_i32_1 = arith.constant 0 : i32
    return %arg0, %c0_i32, %c0_i32_0 : i32, i32, i32
  }
}

module attributes {stable_mosaic.version = 11 : i64} {
  func.func @_patch_embed_kernel(%arg0: i32, %arg1: i32, %arg2: memref<1x16x64xbf16, #tpu.memory_space<vmem>>, %arg3: memref<64x32xbf16, #tpu.memory_space<vmem>>, %arg4: memref<1x32xf32, #tpu.memory_space<vmem>>, %arg5: memref<16x32xf32, #tpu.memory_space<vmem>>, %arg6: memref<1x16x32xf32, #tpu.memory_space<vmem>>) attributes {dimension_semantics = [#tpu.dimension_semantics<parallel>, #tpu.dimension_semantics<parallel>], iteration_bounds = array<i64: 2, 1>, scalar_prefetch = 0 : i64, scratch_operands = 0 : i64, tpu.core_type = #tpu.core_type<tc>, window_params = [{transform_indices = @transform_0, window_bounds = array<i64: 1, 16, 64>}, {pipeline_mode = #tpu.pipeline_mode<synchronous>, transform_indices = @transform_1, window_bounds = array<i64: 64, 32>}, {pipeline_mode = #tpu.pipeline_mode<synchronous>, transform_indices = @transform_2, window_bounds = array<i64: 1, 32>}, {transform_indices = @transform_3, window_bounds = array<i64: 16, 32>}, {transform_indices = @transform_4, window_bounds = array<i64: 1, 16, 32>}]} {
    %c0 = arith.constant 0 : index
    %c0_0 = arith.constant 0 : index
    %c0_1 = arith.constant 0 : index
    %0 = vector.load %arg2[%c0, %c0_0, %c0_1] : memref<1x16x64xbf16, #tpu.memory_space<vmem>>, vector<1x16x64xbf16>
    %1 = vector.shape_cast %0 : vector<1x16x64xbf16> to vector<16x64xbf16>
    %c0_2 = arith.constant 0 : index
    %c0_3 = arith.constant 0 : index
    %2 = vector.load %arg3[%c0_2, %c0_3] : memref<64x32xbf16, #tpu.memory_space<vmem>>, vector<64x32xbf16>
    %cst = arith.constant dense<0.000000e+00> : vector<16x32xf32>
    %3 = tpu.matmul %1, %2, %cst {dimension_numbers = #tpu.dot_dimension_numbers<[1], [0], [0], [1], [0, 0, 1, 1], [], []>} : vector<16x64xbf16>, vector<64x32xbf16>, vector<16x32xf32> -> vector<16x32xf32>
    %c0_4 = arith.constant 0 : index
    %c0_5 = arith.constant 0 : index
    %4 = vector.load %arg4[%c0_4, %c0_5] : memref<1x32xf32, #tpu.memory_space<vmem>>, vector<1x32xf32>
    %5 = vector.broadcast %4 : vector<1x32xf32> to vector<16x32xf32>
    %6 = arith.addf %3, %5 : vector<16x32xf32>
    %c0_6 = arith.constant 0 : index
    %c0_7 = arith.constant 0 : index
    %7 = vector.load %arg5[%c0_6, %c0_7] : memref<16x32xf32, #tpu.memory_space<vmem>>, vector<16x32xf32>
    %8 = arith.addf %6, %7 : vector<16x32xf32>
    %c0_8 = arith.constant 0 : index
    %c0_9 = arith.constant 0 : index
    %c0_10 = arith.constant 0 : index
    %9 = vector.load %arg6[%c0_8, %c0_9, %c0_10] : memref<1x16x32xf32, #tpu.memory_space<vmem>>, vector<1x16x32xf32>
    %10 = vector.shape_cast %9 : vector<1x16x32xf32> to vector<16x32xf32>
    %11 = vector.shape_cast %8 : vector<16x32xf32> to vector<1x16x32xf32>
    tpu.vector_store %arg6[%c0_8, %c0_9, %c0_10], %11 {strides = array<i32>} : memref<1x16x32xf32, #tpu.memory_space<vmem>>, vector<1x16x32xf32>,
    return
  }
  func.func @transform_0(%arg0: i32, %arg1: i32) -> (i32, i32, i32) {
    %c0_i32 = arith.constant 0 : i32
    %c0_i32_0 = arith.constant 0 : i32
    return %arg0, %arg1, %c0_i32 : i32, i32, i32
  }
  func.func @transform_1(%arg0: i32, %arg1: i32) -> (i32, i32) {
    %c0_i32 = arith.constant 0 : i32
    %c0_i32_0 = arith.constant 0 : i32
    %c0_i32_1 = arith.constant 0 : i32
    return %c0_i32, %c0_i32_0 : i32, i32
  }
  func.func @transform_2(%arg0: i32, %arg1: i32) -> (i32, i32) {
    %c0_i32 = arith.constant 0 : i32
    %c0_i32_0 = arith.constant 0 : i32
    %c0_i32_1 = arith.constant 0 : i32
    return %c0_i32, %c0_i32_0 : i32, i32
  }
  func.func @transform_3(%arg0: i32, %arg1: i32) -> (i32, i32) {
    %c0_i32 = arith.constant 0 : i32
    %c0_i32_0 = arith.constant 0 : i32
    return %arg1, %c0_i32 : i32, i32
  }
  func.func @transform_4(%arg0: i32, %arg1: i32) -> (i32, i32, i32) {
    %c0_i32 = arith.constant 0 : i32
    %c0_i32_0 = arith.constant 0 : i32
    return %arg0, %arg1, %c0_i32 : i32, i32, i32
  }
}

module attributes {stable_mosaic.version = 11 : i64} {
  func.func @_encoder_block_kernel(%arg0: i32, %arg1: memref<1x24x32xf32, #tpu.memory_space<vmem>>, %arg2: memref<32x96xbf16, #tpu.memory_space<vmem>>, %arg3: memref<32x32xbf16, #tpu.memory_space<vmem>>, %arg4: memref<1x32xf32, #tpu.memory_space<vmem>>, %arg5: memref<1x32xf32, #tpu.memory_space<vmem>>, %arg6: memref<32x64xbf16, #tpu.memory_space<vmem>>, %arg7: memref<1x64xf32, #tpu.memory_space<vmem>>, %arg8: memref<64x32xbf16, #tpu.memory_space<vmem>>, %arg9: memref<1x32xf32, #tpu.memory_space<vmem>>, %arg10: memref<1x32xf32, #tpu.memory_space<vmem>>, %arg11: memref<1x32xf32, #tpu.memory_space<vmem>>, %arg12: memref<1x24x32xf32, #tpu.memory_space<vmem>>, %arg13: memref<24x32xf32, #tpu.memory_space<vmem>>) attributes {dimension_semantics = [#tpu.dimension_semantics<parallel>], iteration_bounds = array<i64: 2>, scalar_prefetch = 0 : i64, scratch_operands = 1 : i64, tpu.core_type = #tpu.core_type<tc>, window_params = [{transform_indices = @transform_0, window_bounds = array<i64: 1, 24, 32>}, {pipeline_mode = #tpu.pipeline_mode<synchronous>, transform_indices = @transform_1, window_bounds = array<i64: 32, 96>}, {pipeline_mode = #tpu.pipeline_mode<synchronous>, transform_indices = @transform_2, window_bounds = array<i64: 32, 32>}, {pipeline_mode = #tpu.pipeline_mode<synchronous>, transform_indices = @transform_3, window_bounds = array<i64: 1, 32>}, {pipeline_mode = #tpu.pipeline_mode<synchronous>, transform_indices = @transform_4, window_bounds = array<i64: 1, 32>}, {pipeline_mode = #tpu.pipeline_mode<synchronous>, transform_indices = @transform_5, window_bounds = array<i64: 32, 64>}, {pipeline_mode = #tpu.pipeline_mode<synchronous>, transform_indices = @transform_6, window_bounds = array<i64: 1, 64>}, {pipeline_mode = #tpu.pipeline_mode<synchronous>, transform_indices = @transform_7, window_bounds = array<i64: 64, 32>}, {pipeline_mode = #tpu.pipeline_mode<synchronous>, transform_indices = @transform_8, window_bounds = array<i64: 1, 32>}, {pipeline_mode = #tpu.pipeline_mode<synchronous>, transform_indices = @transform_9, window_bounds = array<i64: 1, 32>}, {pipeline_mode = #tpu.pipeline_mode<synchronous>, transform_indices = @transform_10, window_bounds = array<i64: 1, 32>}, {transform_indices = @transform_11, window_bounds = array<i64: 1, 24, 32>}]} {
    %c0 = arith.constant 0 : index
    %c0_0 = arith.constant 0 : index
    %c0_1 = arith.constant 0 : index
    %0 = vector.load %arg1[%c0, %c0_0, %c0_1] : memref<1x24x32xf32, #tpu.memory_space<vmem>>, vector<1x24x32xf32>
    %1 = vector.shape_cast %0 : vector<1x24x32xf32> to vector<24x32xf32>
    %2 = arith.truncf %1 : vector<24x32xf32> to vector<24x32xbf16>
    %c0_2 = arith.constant 0 : index
    %c0_3 = arith.constant 0 : index
    %3 = vector.load %arg2[%c0_2, %c0_3] : memref<32x96xbf16, #tpu.memory_space<vmem>>, vector<32x96xbf16>
    %cst = arith.constant dense<0.000000e+00> : vector<24x96xf32>
    %4 = tpu.matmul %2, %3, %cst {dimension_numbers = #tpu.dot_dimension_numbers<[1], [0], [0], [1], [0, 0, 1, 1], [], []>} : vector<24x32xbf16>, vector<32x96xbf16>, vector<24x96xf32> -> vector<24x96xf32>
    %5 = tpu.iota {dimensions = array<i32: 1>} : vector<1x24xi32>
    %c17_i32 = arith.constant 17 : i32
    %6 = vector.broadcast %c17_i32 : i32 to vector<1x24xi32>
    %7 = arith.cmpi sge, %5, %6 : vector<1x24xi32>
    %cst_4 = arith.constant -1.000000e+30 : f32
    %cst_5 = arith.constant 0.000000e+00 : f32
    %8 = vector.broadcast %cst_4 : f32 to vector<1x24xf32>
    %9 = vector.broadcast %cst_5 : f32 to vector<1x24xf32>
    %10 = arith.select %7, %8, %9 : vector<1x24xi1>, vector<1x24xf32>
    %11 = vector.extract_strided_slice %4 {offsets = [0, 0], sizes = [24, 8], strides = [1, 1]} : vector<24x96xf32> to vector<24x8xf32>
    %12 = vector.extract_strided_slice %4 {offsets = [0, 32], sizes = [24, 8], strides = [1, 1]} : vector<24x96xf32> to vector<24x8xf32>
    %13 = vector.extract_strided_slice %4 {offsets = [0, 64], sizes = [24, 8], strides = [1, 1]} : vector<24x96xf32> to vector<24x8xf32>
    %14 = arith.truncf %11 : vector<24x8xf32> to vector<24x8xbf16>
    %15 = arith.truncf %12 : vector<24x8xf32> to vector<24x8xbf16>
    %cst_6 = arith.constant dense<0.000000e+00> : vector<24x24xf32>
    %16 = tpu.matmul %14, %15, %cst_6 {dimension_numbers = #tpu.dot_dimension_numbers<[1], [1], [0], [0], [0, 0, 1, 0], [], []>} : vector<24x8xbf16>, vector<24x8xbf16>, vector<24x24xf32> -> vector<24x24xf32>
    %cst_7 = arith.constant 0.353553385 : f32
    %17 = vector.broadcast %cst_7 : f32 to vector<24x24xf32>
    %18 = arith.mulf %16, %17 : vector<24x24xf32>
    %19 = vector.broadcast %10 : vector<1x24xf32> to vector<24x24xf32>
    %20 = arith.addf %18, %19 : vector<24x24xf32>
    %cst_8 = arith.constant dense<0xFF800000> : vector<24xf32>
    %21 = vector.multi_reduction <maximumf>, %20, %cst_8 [1] : vector<24x24xf32> to vector<24xf32>
    %22 = vector.shape_cast %21 : vector<24xf32> to vector<24x1xf32>
    %23 = vector.broadcast %22 : vector<24x1xf32> to vector<24x24xf32>
    %24 = arith.subf %20, %23 : vector<24x24xf32>
    %25 = math.exp %24 : vector<24x24xf32>
    %cst_9 = arith.constant dense<0.000000e+00> : vector<24xf32>
    %26 = vector.multi_reduction <add>, %25, %cst_9 [1] : vector<24x24xf32> to vector<24xf32>
    %27 = vector.shape_cast %26 : vector<24xf32> to vector<24x1xf32>
    %28 = tpu.reciprocal %27 {approx = true} : vector<24x1xf32> -> vector<24x1xf32>
    %29 = vector.broadcast %28 : vector<24x1xf32> to vector<24x24xf32>
    %30 = arith.mulf %25, %29 : vector<24x24xf32>
    %31 = arith.truncf %30 : vector<24x24xf32> to vector<24x24xbf16>
    %32 = arith.truncf %13 : vector<24x8xf32> to vector<24x8xbf16>
    %cst_10 = arith.constant dense<0.000000e+00> : vector<24x8xf32>
    %33 = tpu.matmul %31, %32, %cst_10 {dimension_numbers = #tpu.dot_dimension_numbers<[1], [0], [0], [1], [0, 0, 1, 1], [], []>} : vector<24x24xbf16>, vector<24x8xbf16>, vector<24x8xf32> -> vector<24x8xf32>
    %c0_11 = arith.constant 0 : index
    %c0_12 = arith.constant 0 : index
    %34 = vector.load %arg13[%c0_11, %c0_12] : memref<24x32xf32, #tpu.memory_space<vmem>>, vector<24x8xf32>
    tpu.vector_store %arg13[%c0_11, %c0_12], %33 {strides = array<i32>} : memref<24x32xf32, #tpu.memory_space<vmem>>, vector<24x8xf32>,
    %35 = vector.extract_strided_slice %4 {offsets = [0, 8], sizes = [24, 8], strides = [1, 1]} : vector<24x96xf32> to vector<24x8xf32>
    %36 = vector.extract_strided_slice %4 {offsets = [0, 40], sizes = [24, 8], strides = [1, 1]} : vector<24x96xf32> to vector<24x8xf32>
    %37 = vector.extract_strided_slice %4 {offsets = [0, 72], sizes = [24, 8], strides = [1, 1]} : vector<24x96xf32> to vector<24x8xf32>
    %38 = arith.truncf %35 : vector<24x8xf32> to vector<24x8xbf16>
    %39 = arith.truncf %36 : vector<24x8xf32> to vector<24x8xbf16>
    %cst_13 = arith.constant dense<0.000000e+00> : vector<24x24xf32>
    %40 = tpu.matmul %38, %39, %cst_13 {dimension_numbers = #tpu.dot_dimension_numbers<[1], [1], [0], [0], [0, 0, 1, 0], [], []>} : vector<24x8xbf16>, vector<24x8xbf16>, vector<24x24xf32> -> vector<24x24xf32>
    %cst_14 = arith.constant 0.353553385 : f32
    %41 = vector.broadcast %cst_14 : f32 to vector<24x24xf32>
    %42 = arith.mulf %40, %41 : vector<24x24xf32>
    %43 = vector.broadcast %10 : vector<1x24xf32> to vector<24x24xf32>
    %44 = arith.addf %42, %43 : vector<24x24xf32>
    %cst_15 = arith.constant dense<0xFF800000> : vector<24xf32>
    %45 = vector.multi_reduction <maximumf>, %44, %cst_15 [1] : vector<24x24xf32> to vector<24xf32>
    %46 = vector.shape_cast %45 : vector<24xf32> to vector<24x1xf32>
    %47 = vector.broadcast %46 : vector<24x1xf32> to vector<24x24xf32>
    %48 = arith.subf %44, %47 : vector<24x24xf32>
    %49 = math.exp %48 : vector<24x24xf32>
    %cst_16 = arith.constant dense<0.000000e+00> : vector<24xf32>
    %50 = vector.multi_reduction <add>, %49, %cst_16 [1] : vector<24x24xf32> to vector<24xf32>
    %51 = vector.shape_cast %50 : vector<24xf32> to vector<24x1xf32>
    %52 = tpu.reciprocal %51 {approx = true} : vector<24x1xf32> -> vector<24x1xf32>
    %53 = vector.broadcast %52 : vector<24x1xf32> to vector<24x24xf32>
    %54 = arith.mulf %49, %53 : vector<24x24xf32>
    %55 = arith.truncf %54 : vector<24x24xf32> to vector<24x24xbf16>
    %56 = arith.truncf %37 : vector<24x8xf32> to vector<24x8xbf16>
    %cst_17 = arith.constant dense<0.000000e+00> : vector<24x8xf32>
    %57 = tpu.matmul %55, %56, %cst_17 {dimension_numbers = #tpu.dot_dimension_numbers<[1], [0], [0], [1], [0, 0, 1, 1], [], []>} : vector<24x24xbf16>, vector<24x8xbf16>, vector<24x8xf32> -> vector<24x8xf32>
    %c0_18 = arith.constant 0 : index
    %c8 = arith.constant 8 : index
    %58 = vector.load %arg13[%c0_18, %c8] : memref<24x32xf32, #tpu.memory_space<vmem>>, vector<24x8xf32>
    tpu.vector_store %arg13[%c0_18, %c8], %57 {strides = array<i32>} : memref<24x32xf32, #tpu.memory_space<vmem>>, vector<24x8xf32>,
    %59 = vector.extract_strided_slice %4 {offsets = [0, 16], sizes = [24, 8], strides = [1, 1]} : vector<24x96xf32> to vector<24x8xf32>
    %60 = vector.extract_strided_slice %4 {offsets = [0, 48], sizes = [24, 8], strides = [1, 1]} : vector<24x96xf32> to vector<24x8xf32>
    %61 = vector.extract_strided_slice %4 {offsets = [0, 80], sizes = [24, 8], strides = [1, 1]} : vector<24x96xf32> to vector<24x8xf32>
    %62 = arith.truncf %59 : vector<24x8xf32> to vector<24x8xbf16>
    %63 = arith.truncf %60 : vector<24x8xf32> to vector<24x8xbf16>
    %cst_19 = arith.constant dense<0.000000e+00> : vector<24x24xf32>
    %64 = tpu.matmul %62, %63, %cst_19 {dimension_numbers = #tpu.dot_dimension_numbers<[1], [1], [0], [0], [0, 0, 1, 0], [], []>} : vector<24x8xbf16>, vector<24x8xbf16>, vector<24x24xf32> -> vector<24x24xf32>
    %cst_20 = arith.constant 0.353553385 : f32
    %65 = vector.broadcast %cst_20 : f32 to vector<24x24xf32>
    %66 = arith.mulf %64, %65 : vector<24x24xf32>
    %67 = vector.broadcast %10 : vector<1x24xf32> to vector<24x24xf32>
    %68 = arith.addf %66, %67 : vector<24x24xf32>
    %cst_21 = arith.constant dense<0xFF800000> : vector<24xf32>
    %69 = vector.multi_reduction <maximumf>, %68, %cst_21 [1] : vector<24x24xf32> to vector<24xf32>
    %70 = vector.shape_cast %69 : vector<24xf32> to vector<24x1xf32>
    %71 = vector.broadcast %70 : vector<24x1xf32> to vector<24x24xf32>
    %72 = arith.subf %68, %71 : vector<24x24xf32>
    %73 = math.exp %72 : vector<24x24xf32>
    %cst_22 = arith.constant dense<0.000000e+00> : vector<24xf32>
    %74 = vector.multi_reduction <add>, %73, %cst_22 [1] : vector<24x24xf32> to vector<24xf32>
    %75 = vector.shape_cast %74 : vector<24xf32> to vector<24x1xf32>
    %76 = tpu.reciprocal %75 {approx = true} : vector<24x1xf32> -> vector<24x1xf32>
    %77 = vector.broadcast %76 : vector<24x1xf32> to vector<24x24xf32>
    %78 = arith.mulf %73, %77 : vector<24x24xf32>
    %79 = arith.truncf %78 : vector<24x24xf32> to vector<24x24xbf16>
    %80 = arith.truncf %61 : vector<24x8xf32> to vector<24x8xbf16>
    %cst_23 = arith.constant dense<0.000000e+00> : vector<24x8xf32>
    %81 = tpu.matmul %79, %80, %cst_23 {dimension_numbers = #tpu.dot_dimension_numbers<[1], [0], [0], [1], [0, 0, 1, 1], [], []>} : vector<24x24xbf16>, vector<24x8xbf16>, vector<24x8xf32> -> vector<24x8xf32>
    %c0_24 = arith.constant 0 : index
    %c16 = arith.constant 16 : index
    %82 = vector.load %arg13[%c0_24, %c16] : memref<24x32xf32, #tpu.memory_space<vmem>>, vector<24x8xf32>
    tpu.vector_store %arg13[%c0_24, %c16], %81 {strides = array<i32>} : memref<24x32xf32, #tpu.memory_space<vmem>>, vector<24x8xf32>,
    %83 = vector.extract_strided_slice %4 {offsets = [0, 24], sizes = [24, 8], strides = [1, 1]} : vector<24x96xf32> to vector<24x8xf32>
    %84 = vector.extract_strided_slice %4 {offsets = [0, 56], sizes = [24, 8], strides = [1, 1]} : vector<24x96xf32> to vector<24x8xf32>
    %85 = vector.extract_strided_slice %4 {offsets = [0, 88], sizes = [24, 8], strides = [1, 1]} : vector<24x96xf32> to vector<24x8xf32>
    %86 = arith.truncf %83 : vector<24x8xf32> to vector<24x8xbf16>
    %87 = arith.truncf %84 : vector<24x8xf32> to vector<24x8xbf16>
    %cst_25 = arith.constant dense<0.000000e+00> : vector<24x24xf32>
    %88 = tpu.matmul %86, %87, %cst_25 {dimension_numbers = #tpu.dot_dimension_numbers<[1], [1], [0], [0], [0, 0, 1, 0], [], []>} : vector<24x8xbf16>, vector<24x8xbf16>, vector<24x24xf32> -> vector<24x24xf32>
    %cst_26 = arith.constant 0.353553385 : f32
    %89 = vector.broadcast %cst_26 : f32 to vector<24x24xf32>
    %90 = arith.mulf %88, %89 : vector<24x24xf32>
    %91 = vector.broadcast %10 : vector<1x24xf32> to vector<24x24xf32>
    %92 = arith.addf %90, %91 : vector<24x24xf32>
    %cst_27 = arith.constant dense<0xFF800000> : vector<24xf32>
    %93 = vector.multi_reduction <maximumf>, %92, %cst_27 [1] : vector<24x24xf32> to vector<24xf32>
    %94 = vector.shape_cast %93 : vector<24xf32> to vector<24x1xf32>
    %95 = vector.broadcast %94 : vector<24x1xf32> to vector<24x24xf32>
    %96 = arith.subf %92, %95 : vector<24x24xf32>
    %97 = math.exp %96 : vector<24x24xf32>
    %cst_28 = arith.constant dense<0.000000e+00> : vector<24xf32>
    %98 = vector.multi_reduction <add>, %97, %cst_28 [1] : vector<24x24xf32> to vector<24xf32>
    %99 = vector.shape_cast %98 : vector<24xf32> to vector<24x1xf32>
    %100 = tpu.reciprocal %99 {approx = true} : vector<24x1xf32> -> vector<24x1xf32>
    %101 = vector.broadcast %100 : vector<24x1xf32> to vector<24x24xf32>
    %102 = arith.mulf %97, %101 : vector<24x24xf32>
    %103 = arith.truncf %102 : vector<24x24xf32> to vector<24x24xbf16>
    %104 = arith.truncf %85 : vector<24x8xf32> to vector<24x8xbf16>
    %cst_29 = arith.constant dense<0.000000e+00> : vector<24x8xf32>
    %105 = tpu.matmul %103, %104, %cst_29 {dimension_numbers = #tpu.dot_dimension_numbers<[1], [0], [0], [1], [0, 0, 1, 1], [], []>} : vector<24x24xbf16>, vector<24x8xbf16>, vector<24x8xf32> -> vector<24x8xf32>
    %c0_30 = arith.constant 0 : index
    %c24 = arith.constant 24 : index
    %106 = vector.load %arg13[%c0_30, %c24] : memref<24x32xf32, #tpu.memory_space<vmem>>, vector<24x8xf32>
    tpu.vector_store %arg13[%c0_30, %c24], %105 {strides = array<i32>} : memref<24x32xf32, #tpu.memory_space<vmem>>, vector<24x8xf32>,
    %c0_31 = arith.constant 0 : index
    %c0_32 = arith.constant 0 : index
    %107 = vector.load %arg13[%c0_31, %c0_32] : memref<24x32xf32, #tpu.memory_space<vmem>>, vector<24x32xf32>
    %108 = arith.truncf %107 : vector<24x32xf32> to vector<24x32xbf16>
    %c0_33 = arith.constant 0 : index
    %c0_34 = arith.constant 0 : index
    %109 = vector.load %arg3[%c0_33, %c0_34] : memref<32x32xbf16, #tpu.memory_space<vmem>>, vector<32x32xbf16>
    %cst_35 = arith.constant dense<0.000000e+00> : vector<24x32xf32>
    %110 = tpu.matmul %108, %109, %cst_35 {dimension_numbers = #tpu.dot_dimension_numbers<[1], [0], [0], [1], [0, 0, 1, 1], [], []>} : vector<24x32xbf16>, vector<32x32xbf16>, vector<24x32xf32> -> vector<24x32xf32>
    %111 = arith.addf %1, %110 : vector<24x32xf32>
    %c0_36 = arith.constant 0 : index
    %c0_37 = arith.constant 0 : index
    %112 = vector.load %arg4[%c0_36, %c0_37] : memref<1x32xf32, #tpu.memory_space<vmem>>, vector<1x32xf32>
    %c0_38 = arith.constant 0 : index
    %c0_39 = arith.constant 0 : index
    %113 = vector.load %arg5[%c0_38, %c0_39] : memref<1x32xf32, #tpu.memory_space<vmem>>, vector<1x32xf32>
    %cst_40 = arith.constant dense<0.000000e+00> : vector<24xf32>
    %114 = vector.multi_reduction <add>, %111, %cst_40 [1] : vector<24x32xf32> to vector<24xf32>
    %115 = vector.shape_cast %114 : vector<24xf32> to vector<24x1xf32>
    %cst_41 = arith.constant 3.200000e+01 : f32
    %116 = vector.broadcast %cst_41 : f32 to vector<24x1xf32>
    %117 = arith.divf %115, %116 : vector<24x1xf32>
    %118 = vector.broadcast %117 : vector<24x1xf32> to vector<24x32xf32>
    %119 = arith.subf %111, %118 : vector<24x32xf32>
    %120 = arith.mulf %119, %119 : vector<24x32xf32>
    %cst_42 = arith.constant dense<0.000000e+00> : vector<24xf32>
    %121 = vector.multi_reduction <add>, %120, %cst_42 [1] : vector<24x32xf32> to vector<24xf32>
    %122 = vector.shape_cast %121 : vector<24xf32> to vector<24x1xf32>
    %cst_43 = arith.constant 3.200000e+01 : f32
    %123 = vector.broadcast %cst_43 : f32 to vector<24x1xf32>
    %124 = arith.divf %122, %123 : vector<24x1xf32>
    %125 = vector.broadcast %117 : vector<24x1xf32> to vector<24x32xf32>
    %126 = arith.subf %111, %125 : vector<24x32xf32>
    %cst_44 = arith.constant 9.99999974E-6 : f32
    %127 = vector.broadcast %cst_44 : f32 to vector<24x1xf32>
    %128 = arith.addf %124, %127 : vector<24x1xf32>
    %129 = math.rsqrt %128 : vector<24x1xf32>
    %130 = vector.broadcast %129 : vector<24x1xf32> to vector<24x32xf32>
    %131 = arith.mulf %126, %130 : vector<24x32xf32>
    %132 = vector.broadcast %112 : vector<1x32xf32> to vector<24x32xf32>
    %133 = arith.mulf %131, %132 : vector<24x32xf32>
    %134 = vector.broadcast %113 : vector<1x32xf32> to vector<24x32xf32>
    %135 = arith.addf %133, %134 : vector<24x32xf32>
    %136 = arith.truncf %135 : vector<24x32xf32> to vector<24x32xbf16>
    %c0_45 = arith.constant 0 : index
    %c0_46 = arith.constant 0 : index
    %137 = vector.load %arg6[%c0_45, %c0_46] : memref<32x64xbf16, #tpu.memory_space<vmem>>, vector<32x64xbf16>
    %cst_47 = arith.constant dense<0.000000e+00> : vector<24x64xf32>
    %138 = tpu.matmul %136, %137, %cst_47 {dimension_numbers = #tpu.dot_dimension_numbers<[1], [0], [0], [1], [0, 0, 1, 1], [], []>} : vector<24x32xbf16>, vector<32x64xbf16>, vector<24x64xf32> -> vector<24x64xf32>
    %c0_48 = arith.constant 0 : index
    %c0_49 = arith.constant 0 : index
    %139 = vector.load %arg7[%c0_48, %c0_49] : memref<1x64xf32, #tpu.memory_space<vmem>>, vector<1x64xf32>
    %140 = vector.broadcast %139 : vector<1x64xf32> to vector<24x64xf32>
    %141 = arith.addf %138, %140 : vector<24x64xf32>
    %cst_50 = arith.constant 5.000000e-01 : f32
    %142 = vector.broadcast %cst_50 : f32 to vector<24x64xf32>
    %143 = arith.mulf %142, %141 : vector<24x64xf32>
    %cst_51 = arith.constant 4.471500e-02 : f32
    %144 = vector.broadcast %cst_51 : f32 to vector<24x64xf32>
    %145 = arith.mulf %144, %141 : vector<24x64xf32>
    %146 = arith.mulf %145, %141 : vector<24x64xf32>
    %147 = arith.mulf %146, %141 : vector<24x64xf32>
    %148 = arith.addf %141, %147 : vector<24x64xf32>
    %cst_52 = arith.constant 0.797884583 : f32
    %149 = vector.broadcast %cst_52 : f32 to vector<24x64xf32>
    %150 = arith.mulf %149, %148 : vector<24x64xf32>
    %151 = math.tanh %150 : vector<24x64xf32>
    %cst_53 = arith.constant 1.000000e+00 : f32
    %152 = vector.broadcast %cst_53 : f32 to vector<24x64xf32>
    %153 = arith.addf %152, %151 : vector<24x64xf32>
    %154 = arith.mulf %143, %153 : vector<24x64xf32>
    %155 = arith.truncf %154 : vector<24x64xf32> to vector<24x64xbf16>
    %c0_54 = arith.constant 0 : index
    %c0_55 = arith.constant 0 : index
    %156 = vector.load %arg8[%c0_54, %c0_55] : memref<64x32xbf16, #tpu.memory_space<vmem>>, vector<64x32xbf16>
    %cst_56 = arith.constant dense<0.000000e+00> : vector<24x32xf32>
    %157 = tpu.matmul %155, %156, %cst_56 {dimension_numbers = #tpu.dot_dimension_numbers<[1], [0], [0], [1], [0, 0, 1, 1], [], []>} : vector<24x64xbf16>, vector<64x32xbf16>, vector<24x32xf32> -> vector<24x32xf32>
    %c0_57 = arith.constant 0 : index
    %c0_58 = arith.constant 0 : index
    %158 = vector.load %arg9[%c0_57, %c0_58] : memref<1x32xf32, #tpu.memory_space<vmem>>, vector<1x32xf32>
    %159 = vector.broadcast %158 : vector<1x32xf32> to vector<24x32xf32>
    %160 = arith.addf %157, %159 : vector<24x32xf32>
    %161 = arith.addf %135, %160 : vector<24x32xf32>
    %c0_59 = arith.constant 0 : index
    %c0_60 = arith.constant 0 : index
    %162 = vector.load %arg10[%c0_59, %c0_60] : memref<1x32xf32, #tpu.memory_space<vmem>>, vector<1x32xf32>
    %c0_61 = arith.constant 0 : index
    %c0_62 = arith.constant 0 : index
    %163 = vector.load %arg11[%c0_61, %c0_62] : memref<1x32xf32, #tpu.memory_space<vmem>>, vector<1x32xf32>
    %cst_63 = arith.constant dense<0.000000e+00> : vector<24xf32>
    %164 = vector.multi_reduction <add>, %161, %cst_63 [1] : vector<24x32xf32> to vector<24xf32>
    %165 = vector.shape_cast %164 : vector<24xf32> to vector<24x1xf32>
    %cst_64 = arith.constant 3.200000e+01 : f32
    %166 = vector.broadcast %cst_64 : f32 to vector<24x1xf32>
    %167 = arith.divf %165, %166 : vector<24x1xf32>
    %168 = vector.broadcast %167 : vector<24x1xf32> to vector<24x32xf32>
    %169 = arith.subf %161, %168 : vector<24x32xf32>
    %170 = arith.mulf %169, %169 : vector<24x32xf32>
    %cst_65 = arith.constant dense<0.000000e+00> : vector<24xf32>
    %171 = vector.multi_reduction <add>, %170, %cst_65 [1] : vector<24x32xf32> to vector<24xf32>
    %172 = vector.shape_cast %171 : vector<24xf32> to vector<24x1xf32>
    %cst_66 = arith.constant 3.200000e+01 : f32
    %173 = vector.broadcast %cst_66 : f32 to vector<24x1xf32>
    %174 = arith.divf %172, %173 : vector<24x1xf32>
    %175 = vector.broadcast %167 : vector<24x1xf32> to vector<24x32xf32>
    %176 = arith.subf %161, %175 : vector<24x32xf32>
    %cst_67 = arith.constant 9.99999974E-6 : f32
    %177 = vector.broadcast %cst_67 : f32 to vector<24x1xf32>
    %178 = arith.addf %174, %177 : vector<24x1xf32>
    %179 = math.rsqrt %178 : vector<24x1xf32>
    %180 = vector.broadcast %179 : vector<24x1xf32> to vector<24x32xf32>
    %181 = arith.mulf %176, %180 : vector<24x32xf32>
    %182 = vector.broadcast %162 : vector<1x32xf32> to vector<24x32xf32>
    %183 = arith.mulf %181, %182 : vector<24x32xf32>
    %184 = vector.broadcast %163 : vector<1x32xf32> to vector<24x32xf32>
    %185 = arith.addf %183, %184 : vector<24x32xf32>
    %c0_68 = arith.constant 0 : index
    %c0_69 = arith.constant 0 : index
    %c0_70 = arith.constant 0 : index
    %186 = vector.load %arg12[%c0_68, %c0_69, %c0_70] : memref<1x24x32xf32, #tpu.memory_space<vmem>>, vector<1x24x32xf32>
    %187 = vector.shape_cast %186 : vector<1x24x32xf32> to vector<24x32xf32>
    %188 = vector.shape_cast %185 : vector<24x32xf32> to vector<1x24x32xf32>
    tpu.vector_store %arg12[%c0_68, %c0_69, %c0_70], %188 {strides = array<i32>} : memref<1x24x32xf32, #tpu.memory_space<vmem>>, vector<1x24x32xf32>,
    return
  }
  func.func @transform_0(%arg0: i32) -> (i32, i32, i32) {
    %c0_i32 = arith.constant 0 : i32
    %c0_i32_0 = arith.constant 0 : i32
    %c0_i32_1 = arith.constant 0 : i32
    return %arg0, %c0_i32, %c0_i32_0 : i32, i32, i32
  }
  func.func @transform_1(%arg0: i32) -> (i32, i32) {
    %c0_i32 = arith.constant 0 : i32
    %c0_i32_0 = arith.constant 0 : i32
    %c0_i32_1 = arith.constant 0 : i32
    return %c0_i32, %c0_i32_0 : i32, i32
  }
  func.func @transform_2(%arg0: i32) -> (i32, i32) {
    %c0_i32 = arith.constant 0 : i32
    %c0_i32_0 = arith.constant 0 : i32
    %c0_i32_1 = arith.constant 0 : i32
    return %c0_i32, %c0_i32_0 : i32, i32
  }
  func.func @transform_3(%arg0: i32) -> (i32, i32) {
    %c0_i32 = arith.constant 0 : i32
    %c0_i32_0 = arith.constant 0 : i32
    %c0_i32_1 = arith.constant 0 : i32
    return %c0_i32, %c0_i32_0 : i32, i32
  }
  func.func @transform_4(%arg0: i32) -> (i32, i32) {
    %c0_i32 = arith.constant 0 : i32
    %c0_i32_0 = arith.constant 0 : i32
    %c0_i32_1 = arith.constant 0 : i32
    return %c0_i32, %c0_i32_0 : i32, i32
  }
  func.func @transform_5(%arg0: i32) -> (i32, i32) {
    %c0_i32 = arith.constant 0 : i32
    %c0_i32_0 = arith.constant 0 : i32
    %c0_i32_1 = arith.constant 0 : i32
    return %c0_i32, %c0_i32_0 : i32, i32
  }
  func.func @transform_6(%arg0: i32) -> (i32, i32) {
    %c0_i32 = arith.constant 0 : i32
    %c0_i32_0 = arith.constant 0 : i32
    %c0_i32_1 = arith.constant 0 : i32
    return %c0_i32, %c0_i32_0 : i32, i32
  }
  func.func @transform_7(%arg0: i32) -> (i32, i32) {
    %c0_i32 = arith.constant 0 : i32
    %c0_i32_0 = arith.constant 0 : i32
    %c0_i32_1 = arith.constant 0 : i32
    return %c0_i32, %c0_i32_0 : i32, i32
  }
  func.func @transform_8(%arg0: i32) -> (i32, i32) {
    %c0_i32 = arith.constant 0 : i32
    %c0_i32_0 = arith.constant 0 : i32
    %c0_i32_1 = arith.constant 0 : i32
    return %c0_i32, %c0_i32_0 : i32, i32
  }
  func.func @transform_9(%arg0: i32) -> (i32, i32) {
    %c0_i32 = arith.constant 0 : i32
    %c0_i32_0 = arith.constant 0 : i32
    %c0_i32_1 = arith.constant 0 : i32
    return %c0_i32, %c0_i32_0 : i32, i32
  }
  func.func @transform_10(%arg0: i32) -> (i32, i32) {
    %c0_i32 = arith.constant 0 : i32
    %c0_i32_0 = arith.constant 0 : i32
    %c0_i32_1 = arith.constant 0 : i32
    return %c0_i32, %c0_i32_0 : i32, i32
  }
  func.func @transform_11(%arg0: i32) -> (i32, i32, i32) {
    %c0_i32 = arith.constant 0 : i32
    %c0_i32_0 = arith.constant 0 : i32
    %c0_i32_1 = arith.constant 0 : i32
    return %arg0, %c0_i32, %c0_i32_0 : i32, i32, i32
  }
}

</mosaic_0001>

<bundles_post_ra>
// kernel: vit_forward.3
= control target key start
LH: loop header
LB: loop body
LE: loop exit
PB: predicated region body
PF: predicated region fallthrough
CT: control target
= control target key end

     0   :  { %s580_s15 = smov 0   ;;  %s582_s16 = smov 0   ;;  %s634_s0 = inlined_call_operand.vmem [shape: bf16[2,16,64], index: 0, kind: input, shape index: {}]   ;;  %s635_s1 = inlined_call_operand.vmem [shape: bf16[64,32], index: 1, kind: input, shape index: {}]   ;;  %s636_s2 = inlined_call_operand.vmem [shape: f32[1,32], index: 2, kind: input, shape index: {}]   ;;  %s637_s3 = inlined_call_operand.vmem [shape: f32[16,32], index: 3, kind: input, shape index: {}]   ;;  %s638_s4 = inlined_call_operand.vmem [shape: f32[2,16,32], index: 4, kind: output, shape index: {}]  }
   0x1   :  { %s584_s17 = smov 0  }
   0x2 LB: > { %s26_s18 = sadd.s32 1, %s547_s16  ;;  %p465_p0 = scmp.ge.s32.totalorder %s551_s17, 1  ;;  %s551_s17 = sphi %s584_s17, %s14_s17   ;;  %s547_s16 = sphi %s582_s16, %s640_s16   ;;  %s543_s15 = sphi %s580_s15, %s639_s15  }
   0x3   : > { %p28_p1 = scmp.ge.s32.totalorder %s26_s18, 2  ;;  %p194_p2 = scmp.lt.s32.totalorder %s551_s17, 3 }
   0x5   : > { %s642_s18 = smov (%p28_p1, %s26_s18), 0  ;;  %p195_p3 = pnand %p465_p0, %p194_p2 }
   0x6   : > { %p234_p4 = scmp.lt.s32.totalorder (!%p195_p3), %s543_s15, 1 }
   0x7   : > { %198 = sbr.rel (%p195_p3) target bundleno = 231 (0xe7), region = 36 }
   0xc   : > { %v524_v0 = vld [vmem:[%s635_s1 + $0x18] sm:$0xff]   ;;  %v553_v1 = vmov 0.0   ;;  %v525_v2 = vld [vmem:[%s635_s1 + $0x10] sm:$0xff]   ;;  %vm554_vm0 = vmmov 0   ;;  %s644_s15 = smov (!%p234_p4, %s543_s15), 1  ;;  %v526_v3 = vld [vmem:[%s635_s1 + $0x8] sm:$0xff]  }
   0xd   : > { %486 = vmatprep.subr.bf16.mxu0 %v553_v1  ;;  %494 = vmatprep.mubr.msk.bf16.mxu0 %vm554_vm0, %v553_v1  ;;  %s479_s25 = sshll.u32 %s644_s15, 3  ;;  %v527_v4 = vld [vmem:[%s635_s1] sm:$0xff]   ;;  %vm306_vm1 = vcmask 523264   ;;  %s480_s7 = sshll.u32 %s644_s15, 4  ;;  %vm355_vm2 = vcmask 261120   ;;  %v352_v13 = vld [vmem:[%s637_s3 + $0x8] sm:$0xff] }
   0xe   : > { %487 = vmatpush3.bf16.msra.mxu0 %v524_v0  ;;  %s241_s28 = scalar_lea.vmem %s634_s0, %s479_s25  ;;  %v470_v6 = vld [vmem:[%s636_s2] ss:$0 sm:$0xff]  ;;  %s257_s12 = scalar_lea.vmem %s638_s4, %s480_s7 }
   0xf   : > { %488 = vmatprep.subr.bf16.mxu0 %v553_v1  ;;  %v528_v5 = vld [vmem:[%s241_s28] sm:$0xff]  }
  0x10   : > { %v351_v8 = vld [vmem:[%s637_s3] sm:$0xff] }
  0x12   : > { %489 = vmatpush3.bf16.msra.mxu0 %v525_v2 }
  0x13   : > { %490 = vmatprep.subr.bf16.mxu0 %v553_v1 }
  0x16   : > { %491 = vmatpush3.bf16.msra.mxu0 %v526_v3 }
  0x17   : > { %492 = vmatprep.subr.bf16.mxu0 %v553_v1 }
  0x1a   : > { %493 = vmatpush3.bf16.msra.mxu0 %v527_v4 }
  0x1d   : > { %495 = vmatmul.mubr.msk.bf16.vlgmr.msra.gmra.mxu0 %vm306_vm1, %v528_v5 }
  0xdd   : > { %v344_v7 = vpop.f32.mrf.mxu0 }
  0xde   : > { %v345_v9 = vadd.f32 %v470_v6, %v344_v7 }
  0xdf   : > { %v496_v10 = vpop.f32.mrf.mxu0 }
  0xe0   : > { %v353_v11 = vadd.f32 %v351_v8, %v345_v9 }
  0xe1   : > { %v347_v12 = vpop.f32.mrf.mxu0 }
  0xe2   : > { %356 = vst.msk [vmem:[%s257_s12] sm:$0xff] %vm355_vm2, %v353_v11  ;;  %v348_v14 = vadd.f32 %v470_v6, %v347_v12 }
  0xe3   : > { %v497_v15 = vpop.f32.mrf.mxu0 }
  0xe4   : > { %v354_v16 = vadd.f32 %v352_v13, %v348_v14 }
  0xe6   : > { %357 = vst.msk [vmem:[%s257_s12 + $0x8] sm:$0xff] %vm355_vm2, %v354_v16 }
  0xe7 PF: > { %s14_s17 = sadd.s32 1, %s551_s17   ;;  %s639_s15 = smov %s547_s16 }
  0xe8   : > { %p11_p5 = scmp.ge.s32.totalorder %s14_s17, 4   ;;  %s640_s16 = smov %s642_s18 }
  0xea   :  { %13 = sbr.rel (!%p11_p5) target bundleno = 2 (0x2), region = 69 }

// kernel: vit_forward.4
= control target key start
LH: loop header
LB: loop body
LE: loop exit
PB: predicated region body
PF: predicated region fallthrough
CT: control target
= control target key end

     0   :  { %s2060_s17 = smov 0   ;;  %s2303_s0 = inlined_call_operand.vmem [shape: f32[2,24,32], index: 0, kind: input, shape index: {}]   ;;  %s2304_s1 = inlined_call_operand.vmem [shape: bf16[32,96], index: 1, kind: input, shape index: {}]   ;;  %s2305_s2 = inlined_call_operand.vmem [shape: bf16[32,32], index: 2, kind: input, shape index: {}]   ;;  %s2306_s3 = inlined_call_operand.vmem [shape: f32[1,32], index: 3, kind: input, shape index: {}]   ;;  %s2307_s4 = inlined_call_operand.vmem [shape: f32[1,32], index: 4, kind: input, shape index: {}]   ;;  %s2308_s5 = inlined_call_operand.vmem [shape: bf16[32,64], index: 5, kind: input, shape index: {}]   ;;  %s2309_s6 = inlined_call_operand.vmem [shape: f32[1,64], index: 6, kind: input, shape index: {}]   ;;  %s2310_s7 = inlined_call_operand.vmem [shape: bf16[64,32], index: 7, kind: input, shape index: {}]   ;;  %s2311_s8 = inlined_call_operand.vmem [shape: f32[1,32], index: 8, kind: input, shape index: {}]   ;;  %s2312_s9 = inlined_call_operand.vmem [shape: f32[1,32], index: 9, kind: input, shape index: {}]   ;;  %s2313_s10 = inlined_call_operand.vmem [shape: f32[1,32], index: 10, kind: input, shape index: {}]   ;;  %s2314_s11 = inlined_call_operand.vmem [shape: f32[2,24,32], index: 11, kind: output, shape index: {}]  }
   0x1 LB: > { %s1666_s18 = sadd.s32 4294967295, %s1983_s17   ;;  %p1670_p0 = scmp.ge.s32.totalorder %s1983_s17, 1  ;;  %s1983_s17 = sphi %s2060_s17, %s21_s17  }
   0x2   : > { %p337_p1 = scmp.lt.s32.totalorder %s1983_s17, 3 }
   0x4   : > { %p338_p2 = pnand %p1670_p0, %p337_p1 }
   0x5   : > { %p377_p3 = scmp.lt.s32.totalorder (!%p338_p2), %s1666_s18, 1  ;;  %s1985_s27 = smov (!%p338_p2), 96  }
   0x6   : > { %341 = sbr.rel (%p338_p2) target bundleno = 4065 (0xfe1), region = 64  ;;  %s1987_s28 = smov (!%p338_p2), 88  }
   0x7   : > { %s1988_s29 = smov (!%p338_p2), 64   ;;  %s1989_s30 = smov (!%p338_p2), 120  }
   0x8   : > { %s1990_s12 = smov (!%p338_p2), 56   ;;  %s1991_s13 = smov (!%p338_p2), 80  }
   0x9   : > { %s1992_s14 = smov (!%p338_p2), 112   ;;  %s1993_s15 = smov (!%p338_p2), 48  }
   0xa   : > { %s1994_s16 = smov (!%p338_p2), 72   ;;  %s1995_s19 = smov (!%p338_p2), 104  }
   0xb   : > { %v1901_v0 = vld [vmem:[%s2304_s1 + $0x8] sm:$0xff]   ;;  %v1902_v1 = vld [vmem:[%s2304_s1] sm:$0xff]   ;;  %s2316_s18 = smov (!%p377_p3, %s1666_s18), 1  ;;  %vm409_vm0 = vcmask 261120   ;;  %vm476_vm1 = vcmask 64512   ;;  %v464_v17 = vlaneseq  ;;  %v1986_v20 = vmov 0.0  }
   0xc   : > { %1765 = vmatprep.subr.bf16.mxu0 %v1901_v0  ;;  %s1877_s23 = smul.u32 24, %s2316_s18  ;;  %vm543_vm3 = vcmask 195584   ;;  %vm590_vm4 = vcmask 1043456   ;;  %s1996_s20 = smov 40   ;;  %vm828_vm5 = vcmask 130112   ;;  %vm1015_vm6 = vcmask 195712  }
   0xd   : > { %1766 = vmatpush3.bf16.msra.mxu0 %v1901_v0  ;;  %v465_v18 = vand.u32 127, %v464_v17  ;;  %s1997_s21 = smov 8   ;;  %s1998_s22 = smov 16   ;;  %vm1202_vm7 = vcmask 261312   ;;  %vm1491_vm8 = vcmask 523264  }
   0xe   : > { %1767 = vmatprep.subr.bf16.mxu0 %v1902_v1  ;;  %s381_s26 = scalar_lea.vmem %s2303_s0, %s1877_s23 }
   0xf   : > { %v2082_v2 = vld [vmem:[%s381_s26] sm:$0xff]  ;;  %v2084_v3 = vld [vmem:[%s381_s26 + $0x8] sm:$0xff]  ;;  %v2086_v4 = vld [vmem:[%s381_s26 + $0x10] sm:$0xff]  ;;  %vm466_vm2 = vcmp.ge.s32.totalorder %v465_v18, 17 }
  0x10   : > { %v391_v5 = vpack.c.bf16 %v2084_v3, %v2082_v2  ;;  %v392_v6 = vpack.c.bf16 %v2086_v4, %v2086_v4  ;;  %v2108_v21 = vsel %vm466_vm2, -1e+30, %v1986_v20 }
  0x11   : > { %1768 = vmatpush3.bf16.msra.mxu0 %v1902_v1 }
  0x12   : > { %1769 = vmatprep.mubr.msk.bf16.mxu0 %vm409_vm0, %v391_v5 }
  0x14   : > { %1770 = vmatmul.mubr.msk.bf16.vlgmr.msra.gmra.mxu0 %vm409_vm0, %v392_v6 }
  0xd4   : > { %v1771_v7 = vpop.f32.mrf.mxu0 }
  0xd5   : > { %v2094_v8 = vpack.c.bf16 %v1771_v7, %v1771_v7 }
  0xd6   : > { %v450_v9 = vpop.f32.mrf.mxu0 }
  0xd7   : > { %474 = vrot.lane.b32.xlu0 %v2094_v8, %s1985_s27 }
  0xd8   : > { %v1772_v10 = vpop.f32.mrf.mxu0 }
  0xda   : > { %v453_v11 = vpop.f32.mrf.mxu0 }
  0xdb   : > { %v2097_v12 = vpack.c.bf16 %v453_v11, %v450_v9 }
  0xdd   : > { %472 = vrot.lane.b32.xlu0 %v2097_v12, %s1985_s27  ;;  %1777 = vmatprep.mubr.msk.bf16.mxu1 %vm476_vm1, %v2097_v12 }
 0x149   : > { %v475_v13 = vpop.permute.xlu0 %474 }
 0x14a   : > { %1865 = vmatprep.subr.msk.bf16.mxu1 %vm476_vm1, %v475_v13  ;;  %v487_v14 = vsel %vm476_vm1, %v475_v13, 0 }
 0x14b   : > { %1774 = vmatpush3.bf16.xpose.msra.mxu1 %v487_v14 }
 0x14f   : > { %v473_v15 = vpop.permute.xlu0 %472 }
 0x150   : > { %1866 = vmatprep.subr.msk.bf16.mxu1 %vm476_vm1, %v473_v15  ;;  %v484_v16 = vsel %vm476_vm1, %v473_v15, 0 }
 0x153   : > { %1776 = vmatpush3.bf16.xpose.msra.mxu1 %v484_v16 }
 0x15a   : > { %1778 = vmatmul.mubr.msk.bf16.vlgmr.msra.gmra.mxu1 %vm476_vm1, %v2094_v8 }
 0x21a   : > { %v1779_v19 = vpop.f32.mrf.mxu1 }
 0x21b   : > { %v539_v22 = vmul.f32 0.35355338, %v1779_v19 }
 0x21c   : > { %v523_v23 = vpop.f32.mrf.mxu1 }
 0x21d   : > { %v537_v24 = vmul.f32 0.35355338, %v523_v23  ;;  %v542_v25 = vadd.f32 %v539_v22, %v2108_v21 }
 0x21e   : > { %v1780_v26 = vpop.f32.mrf.mxu1 }
 0x21f   : > { %v550_v27 = vsel %vm543_vm3, %v542_v25, -inf  ;;  %v540_v28 = vadd.f32 %v537_v24, %v2108_v21 }
 0x220   : > { %551 = vmax.xlane.f32.xlu0 %v550_v27  ;;  %v526_v29 = vpop.f32.mrf.mxu1 }
 0x221   : > { %v538_v30 = vmul.f32 0.35355338, %v526_v29  ;;  %v544_v31 = vsel %vm543_vm3, %v540_v28, -inf }
 0x222   : > { %545 = vmax.xlane.f32.xlu1 %v544_v31 }
 0x223   : > { %v541_v32 = vadd.f32 %v538_v30, %v2108_v21 }
 0x225   : > { %v547_v33 = vsel %vm543_vm3, %v541_v32, -inf }
 0x226   : > { %548 = vmax.xlane.f32.xlu1 %v547_v33 }
 0x236   : > { %651 = vrot.lane.b32.xlu0 %v2094_v8, %s1987_s28 }
 0x237   : > { %581 = vrot.lane.b32.xlu1 %v2094_v8, %s1988_s29 }
 0x2a9   : > { %v552_v34 = vpop.xlane.xlu0 %551 }
 0x2aa   : > { %v555_v35 = vsub.f32 %v542_v25, %v552_v34 }
 0x2ab   : > { %v546_v36 = vpop.xlane.xlu1 %545 }
 0x2ac   : > { %v560_v37 = vmul.f32 1.442695, %v555_v35  ;;  %v553_v38 = vsub.f32 %v540_v28, %v546_v36 }
 0x2ad   : > { %v652_v55 = vpop.permute.xlu0 %651 }
 0x2ae   : > { %1911 = vpow2.f32 %v560_v37  ;;  %v556_v39 = vmul.f32 1.442695, %v553_v38  ;;  %v663_v1 = vsel %vm476_vm1, %v652_v55, 0 }
 0x2af   : > { %v549_v40 = vpop.xlane.xlu1 %548 }
 0x2b0   : > { %1913 = vpow2.f32 %v556_v39  ;;  %v554_v41 = vsub.f32 %v541_v32, %v549_v40 }
 0x2b2   : > { %v558_v42 = vmul.f32 1.442695, %v554_v41 }
 0x2b3   : > { %v582_v43 = vpop.permute.xlu1 %581 }
 0x2b4   : > { %1915 = vpow2.f32 %v558_v42  ;;  %v592_v44 = vsel %vm590_vm4, %v582_v43, 0  ;;  %1867 = vmatprep.subr.msk.bf16.mxu0 %vm590_vm4, %v582_v43 }
 0x2b5   : > { %1782 = vmatpush3.bf16.msra.mxu0 %v592_v44 }
 0x2bb   : > { %v1912_v45 = vpop.eup %1911 }
 0x2bc   : > { %v568_v46 = vsel %vm543_vm3, %v1912_v45, 0.0 }
 0x2bd   : > { %v1914_v47 = vpop.eup %1913  ;;  %569 = vadd.xlane.f32.xlu1 %v568_v46 }
 0x2be   : > { %v562_v48 = vsel %vm543_vm3, %v1914_v47, 0.0 }
 0x2c1   : > { %v1916_v49 = vpop.eup %1915  ;;  %563 = vadd.xlane.f32.xlu1 %v562_v48 }
 0x2c2   : > { %v565_v50 = vsel %vm543_vm3, %v1916_v49, 0.0 }
 0x2c5   : > { %566 = vadd.xlane.f32.xlu1 %v565_v50 }
 0x2d6   : > { %579 = vrot.lane.b32.xlu1 %v2097_v12, %s1988_s29 }
 0x2da   : > { %649 = vrot.lane.b32.xlu1 %v2097_v12, %s1987_s28  ;;  %s1999_s28 = smov 24  }
 0x2de   : > { %645 = vrot.lane.b32.xlu1 %v2097_v12, %s1989_s30 }
 0x2e2   : > { %647 = vrot.lane.b32.xlu1 %v2094_v8, %s1989_s30 }
 0x346   : > { %v570_v51 = vpop.xlane.xlu1 %569 }
 0x347   : > { %1917 = vrcp.f32 %v570_v51 }
 0x34a   : > { %v564_v52 = vpop.xlane.xlu1 %563 }
 0x34b   : > { %1919 = vrcp.f32 %v564_v52 }
 0x34e   : > { %v567_v53 = vpop.xlane.xlu1 %566 }
 0x34f   : > { %1921 = vrcp.f32 %v567_v53 }
 0x352   : > { %v580_v54 = vpop.permute.xlu1 %579 }
 0x353   : > { %1783 = vmatprep.subr.bf16.mxu0 %v580_v54 }
 0x354   : > { %1784 = vmatpush3.bf16.msra.mxu0 %v580_v54  ;;  %v1918_v56 = vpop.eup %1917 }
 0x355   : > { %1868 = vmatprep.subr.msk.bf16.mxu0 %vm476_vm1, %v652_v55  ;;  %v576_v60 = vmul.f32 %v1918_v56, %v1912_v45 }
 0x356   : > { %v650_v59 = vpop.permute.xlu1 %649 }
 0x357   : > { %v578_v0 = vpack.c.bf16 %v576_v60, %v576_v60  ;;  %v660_v6 = vsel %vm476_vm1, %v650_v59, 0 }
 0x358   : > { %v1920_v57 = vpop.eup %1919 }
 0x359   : > { %v574_v61 = vmul.f32 %v1920_v57, %v1914_v47 }
 0x35a   : > { %v646_v5 = vpop.permute.xlu1 %645 }
 0x35c   : > { %v1922_v58 = vpop.eup %1921 }
 0x35d   : > { %v575_v62 = vmul.f32 %v1922_v58, %v1916_v49 }
 0x35e   : > { %v648_v7 = vpop.permute.xlu1 %647 }
 0x35f   : > { %v577_v63 = vpack.c.bf16 %v575_v62, %v574_v61 }
 0x361   : > { %1785 = vmatprep.mubr.msk.bf16.mxu0 %vm543_vm3, %v577_v63 }
 0x362   : > { %1786 = vmatmul.mubr.msk.bf16.vlgmr.msra.gmra.mxu0 %vm543_vm3, %v578_v0 }
 0x363   : > { %1790 = vmatpush3.bf16.xpose.msra.mxu0 %v663_v1  ;;  %1793 = vmatprep.mubr.msk.bf16.mxu0 %vm476_vm1, %v646_v5 }
 0x364   : > { %1869 = vmatprep.subr.msk.bf16.mxu0 %vm476_vm1, %v650_v59 }
 0x36b   : > { %1792 = vmatpush3.bf16.xpose.msra.mxu0 %v660_v6 }
 0x372   : > { %1794 = vmatmul.mubr.msk.bf16.vlgmr.msra.gmra.mxu0 %vm476_vm1, %v648_v7 }
 0x422   : > { %v1787_v9 = vpop.f32.mrf.mxu0 }
 0x423   : > { %644 = vst.msk [vmem:[#allocation2 + $0x10] sm:$0xff] %vm476_vm1, %v1787_v9 }
 0x424   : > { %v628_v10 = vpop.f32.mrf.mxu0 }
 0x425   : > { %642 = vst.msk [vmem:[#allocation2] sm:$0xff] %vm476_vm1, %v628_v10 }
 0x426   : > { %v1788_v11 = vpop.f32.mrf.mxu0 }
 0x428   : > { %v631_v13 = vpop.f32.mrf.mxu0 }
 0x429   : > { %643 = vst.msk [vmem:[#allocation2 + $0x8] sm:$0xff] %vm476_vm1, %v631_v13 }
 0x432   : > { %v1795_v14 = vpop.f32.mrf.mxu0 }
 0x433   : > { %v715_v16 = vmul.f32 0.35355338, %v1795_v14 }
 0x434   : > { %v699_v15 = vpop.f32.mrf.mxu0 }
 0x435   : > { %v713_v17 = vmul.f32 0.35355338, %v699_v15  ;;  %v718_v24 = vadd.f32 %v715_v16, %v2108_v21 }
 0x436   : > { %v1796_v18 = vpop.f32.mrf.mxu0 }
 0x437   : > { %v716_v19 = vadd.f32 %v713_v17, %v2108_v21  ;;  %v725_v26 = vsel %vm543_vm3, %v718_v24, -inf }
 0x438   : > { %v702_v20 = vpop.f32.mrf.mxu0 }
 0x439   : > { %v714_v22 = vmul.f32 0.35355338, %v702_v20  ;;  %v719_v23 = vsel %vm543_vm3, %v716_v19, -inf }
 0x43a   : > { %720 = vmax.xlane.f32.xlu1 %v719_v23 }
 0x43b   : > { %v717_v25 = vadd.f32 %v714_v22, %v2108_v21 }
 0x43d   : > { %v722_v27 = vsel %vm543_vm3, %v717_v25, -inf }
 0x43e   : > { %726 = vmax.xlane.f32.xlu1 %v725_v26  ;;  %723 = vmax.xlane.f32.xlu0 %v722_v27 }
 0x44f   : > { %756 = vrot.lane.b32.xlu1 %v2094_v8, %s1990_s12 }
 0x4c3   : > { %v721_v28 = vpop.xlane.xlu1 %720 }
 0x4c4   : > { %v728_v29 = vsub.f32 %v716_v19, %v721_v28 }
 0x4c6   : > { %v731_v34 = vmul.f32 1.442695, %v728_v29 }
 0x4c7   : > { %v727_v30 = vpop.xlane.xlu1 %726  ;;  %v724_v31 = vpop.xlane.xlu0 %723 }
 0x4c8   : > { %v730_v32 = vsub.f32 %v718_v24, %v727_v30  ;;  %v729_v33 = vsub.f32 %v717_v25, %v724_v31 }
 0x4ca   : > { %v735_v35 = vmul.f32 1.442695, %v730_v32  ;;  %v733_v36 = vmul.f32 1.442695, %v729_v33 }
 0x4cb   : > { %v757_v37 = vpop.permute.xlu1 %756 }
 0x4cc   : > { %1923 = vpow2.f32 %v735_v35  ;;  %v766_v38 = vsel %vm590_vm4, %v757_v37, 0  ;;  %1870 = vmatprep.subr.msk.bf16.mxu1 %vm590_vm4, %v757_v37 }
 0x4cd   : > { %1925 = vpow2.f32 %v733_v36  ;;  %1798 = vmatpush3.bf16.msra.mxu1 %v766_v38 }
 0x4ce   : > { %1927 = vpow2.f32 %v731_v34 }
 0x4d9   : > { %v1924_v39 = vpop.eup %1923 }
 0x4da   : > { %v1926_v40 = vpop.eup %1925  ;;  %v743_v41 = vsel %vm543_vm3, %v1924_v39, 0.0 }
 0x4db   : > { %v1928_v42 = vpop.eup %1927  ;;  %744 = vadd.xlane.f32.xlu0 %v743_v41  ;;  %v740_v43 = vsel %vm543_vm3, %v1926_v40, 0.0 }
 0x4dc   : > { %741 = vadd.xlane.f32.xlu1 %v740_v43  ;;  %v737_v44 = vsel %vm543_vm3, %v1928_v42, 0.0 }
 0x4df   : > { %738 = vadd.xlane.f32.xlu0 %v737_v44 }
 0x4ed   : > { %838 = vrot.lane.b32.xlu1 %v2094_v8, %s1991_s13 }
 0x4f1   : > { %836 = vrot.lane.b32.xlu1 %v2097_v12, %s1991_s13 }
 0x4f5   : > { %834 = vrot.lane.b32.xlu1 %v2094_v8, %s1992_s14  ;;  %754 = vrot.lane.b32.xlu0 %v2097_v12, %s1990_s12 }
 0x4f9   : > { %832 = vrot.lane.b32.xlu0 %v2097_v12, %s1992_s14 }
 0x564   : > { %v745_v45 = vpop.xlane.xlu0 %744 }
 0x565   : > { %v742_v46 = vpop.xlane.xlu1 %741  ;;  %1929 = vrcp.f32 %v745_v45 }
 0x566   : > { %1931 = vrcp.f32 %v742_v46 }
 0x568   : > { %v739_v47 = vpop.xlane.xlu0 %738 }
 0x569   : > { %1933 = vrcp.f32 %v739_v47  ;;  %v839_v49 = vpop.permute.xlu1 %838 }
 0x56a   : > { %v850_v58 = vsel %vm476_vm1, %v839_v49, 0 }
 0x56c   : > { %v755_v48 = vpop.permute.xlu0 %754 }
 0x56d   : > { %1799 = vmatprep.subr.bf16.mxu1 %v755_v48  ;;  %v837_v60 = vpop.permute.xlu1 %836 }
 0x56e   : > { %1800 = vmatpush3.bf16.msra.mxu1 %v755_v48  ;;  %v847_v61 = vsel %vm476_vm1, %v837_v60, 0 }
 0x56f   : > { %1871 = vmatprep.subr.msk.bf16.mxu1 %vm476_vm1, %v839_v49 }
 0x570   : > { %v833_v59 = vpop.permute.xlu0 %832 }
 0x571   : > { %v835_v62 = vpop.permute.xlu1 %834 }
 0x572   : > { %v1930_v50 = vpop.eup %1929 }
 0x573   : > { %v1932_v51 = vpop.eup %1931  ;;  %v751_v53 = vmul.f32 %v1930_v50, %v1924_v39 }
 0x574   : > { %v750_v55 = vmul.f32 %v1932_v51, %v1926_v40 }
 0x575   : > { %v753_v57 = vpack.c.bf16 %v751_v53, %v751_v53 }
 0x576   : > { %v1934_v52 = vpop.eup %1933 }
 0x577   : > { %v749_v54 = vmul.f32 %v1934_v52, %v1928_v42 }
 0x579   : > { %v752_v56 = vpack.c.bf16 %v750_v55, %v749_v54 }
 0x57b   : > { %1801 = vmatprep.mubr.msk.bf16.mxu1 %vm543_vm3, %v752_v56 }
 0x57c   : > { %1802 = vmatmul.mubr.msk.bf16.vlgmr.msra.gmra.mxu1 %vm543_vm3, %v753_v57 }
 0x57d   : > { %1806 = vmatpush3.bf16.xpose.msra.mxu1 %v850_v58  ;;  %1809 = vmatprep.mubr.msk.bf16.mxu1 %vm476_vm1, %v833_v59 }
 0x57e   : > { %1872 = vmatprep.subr.msk.bf16.mxu1 %vm476_vm1, %v837_v60 }
 0x585   : > { %1808 = vmatpush3.bf16.xpose.msra.mxu1 %v847_v61 }
 0x58c   : > { %1810 = vmatmul.mubr.msk.bf16.vlgmr.msra.gmra.mxu1 %vm476_vm1, %v835_v62 }
 0x63c   : > { %v2167_v63 = vpop.f32.mrf.mxu1 }
 0x63e   : > { %v2169_v0 = vpop.f32.mrf.mxu1 }
 0x640   : > { %v1804_v1 = vpop.f32.mrf.mxu1 }
 0x642   : > { %v2171_v5 = vpop.f32.mrf.mxu1 }
 0x64c   : > { %v1811_v6 = vpop.f32.mrf.mxu1 }
 0x64d   : > { %v902_v9 = vmul.f32 0.35355338, %v1811_v6 }
 0x64e   : > { %v886_v7 = vpop.f32.mrf.mxu1 }
 0x64f   : > { %v900_v10 = vmul.f32 0.35355338, %v886_v7  ;;  %v905_v17 = vadd.f32 %v902_v9, %v2108_v21 }
 0x650   : > { %v1812_v11 = vpop.f32.mrf.mxu1 }
 0x651   : > { %v903_v13 = vadd.f32 %v900_v10, %v2108_v21  ;;  %v912_v19 = vsel %vm543_vm3, %v905_v17, -inf }
 0x652   : > { %v889_v14 = vpop.f32.mrf.mxu1 }
 0x653   : > { %v901_v15 = vmul.f32 0.35355338, %v889_v14  ;;  %v906_v16 = vsel %vm543_vm3, %v903_v13, -inf }
 0x654   : > { %907 = vmax.xlane.f32.xlu0 %v906_v16 }
 0x655   : > { %v904_v18 = vadd.f32 %v901_v15, %v2108_v21 }
 0x657   : > { %v909_v20 = vsel %vm543_vm3, %v904_v18, -inf }
 0x658   : > { %913 = vmax.xlane.f32.xlu0 %v912_v19  ;;  %910 = vmax.xlane.f32.xlu1 %v909_v20 }
 0x669   : > { %943 = vrot.lane.b32.xlu1 %v2094_v8, %s1993_s15 }
 0x6dd   : > { %v908_v22 = vpop.xlane.xlu0 %907 }
 0x6de   : > { %v915_v23 = vsub.f32 %v903_v13, %v908_v22 }
 0x6e0   : > { %v918_v28 = vmul.f32 1.442695, %v915_v23 }
 0x6e1   : > { %v914_v24 = vpop.xlane.xlu0 %913  ;;  %v911_v25 = vpop.xlane.xlu1 %910 }
 0x6e2   : > { %v917_v26 = vsub.f32 %v905_v17, %v914_v24  ;;  %v916_v27 = vsub.f32 %v904_v18, %v911_v25 }
 0x6e4   : > { %v922_v29 = vmul.f32 1.442695, %v917_v26  ;;  %v920_v30 = vmul.f32 1.442695, %v916_v27 }
 0x6e5   : > { %v944_v31 = vpop.permute.xlu1 %943 }
 0x6e6   : > { %1935 = vpow2.f32 %v922_v29  ;;  %v953_v32 = vsel %vm590_vm4, %v944_v31, 0  ;;  %1873 = vmatprep.subr.msk.bf16.mxu0 %vm590_vm4, %v944_v31 }
 0x6e7   : > { %1937 = vpow2.f32 %v920_v30  ;;  %1814 = vmatpush3.bf16.msra.mxu0 %v953_v32 }
 0x6e8   : > { %1939 = vpow2.f32 %v918_v28 }
 0x6f3   : > { %v1936_v33 = vpop.eup %1935 }
 0x6f4   : > { %v1938_v34 = vpop.eup %1937  ;;  %v930_v35 = vsel %vm543_vm3, %v1936_v33, 0.0 }
 0x6f5   : > { %v1940_v36 = vpop.eup %1939  ;;  %931 = vadd.xlane.f32.xlu0 %v930_v35  ;;  %v927_v37 = vsel %vm543_vm3, %v1938_v34, 0.0 }
 0x6f6   : > { %928 = vadd.xlane.f32.xlu1 %v927_v37  ;;  %v924_v38 = vsel %vm543_vm3, %v1940_v36, 0.0 }
 0x6f9   : > { %925 = vadd.xlane.f32.xlu0 %v924_v38 }
 0x707   : > { %1025 = vrot.lane.b32.xlu1 %v2094_v8, %s1994_s16 }
 0x70b   : > { %1023 = vrot.lane.b32.xlu1 %v2097_v12, %s1994_s16 }
 0x70f   : > { %1021 = vrot.lane.b32.xlu1 %v2094_v8, %s1995_s19  ;;  %941 = vrot.lane.b32.xlu0 %v2097_v12, %s1993_s15 }
 0x713   : > { %1019 = vrot.lane.b32.xlu0 %v2097_v12, %s1995_s19 }
 0x77e   : > { %v932_v39 = vpop.xlane.xlu0 %931 }
 0x77f   : > { %v929_v40 = vpop.xlane.xlu1 %928  ;;  %1941 = vrcp.f32 %v932_v39 }
 0x780   : > { %1943 = vrcp.f32 %v929_v40 }
 0x782   : > { %v926_v41 = vpop.xlane.xlu0 %925 }
 0x783   : > { %1945 = vrcp.f32 %v926_v41  ;;  %v1026_v43 = vpop.permute.xlu1 %1025 }
 0x784   : > { %v1037_v52 = vsel %vm476_vm1, %v1026_v43, 0 }
 0x786   : > { %v942_v42 = vpop.permute.xlu0 %941 }
 0x787   : > { %1815 = vmatprep.subr.bf16.mxu0 %v942_v42  ;;  %v1024_v54 = vpop.permute.xlu1 %1023 }
 0x788   : > { %1816 = vmatpush3.bf16.msra.mxu0 %v942_v42  ;;  %v1034_v55 = vsel %vm476_vm1, %v1024_v54, 0 }
 0x789   : > { %1874 = vmatprep.subr.msk.bf16.mxu0 %vm476_vm1, %v1026_v43 }
 0x78a   : > { %v1020_v53 = vpop.permute.xlu0 %1019 }
 0x78b   : > { %v1022_v56 = vpop.permute.xlu1 %1021 }
 0x78c   : > { %v1942_v44 = vpop.eup %1941 }
 0x78d   : > { %v1944_v45 = vpop.eup %1943  ;;  %v938_v47 = vmul.f32 %v1942_v44, %v1936_v33 }
 0x78e   : > { %v937_v49 = vmul.f32 %v1944_v45, %v1938_v34 }
 0x78f   : > { %v940_v51 = vpack.c.bf16 %v938_v47, %v938_v47 }
 0x790   : > { %v1946_v46 = vpop.eup %1945 }
 0x791   : > { %v936_v48 = vmul.f32 %v1946_v46, %v1940_v36 }
 0x793   : > { %v939_v50 = vpack.c.bf16 %v937_v49, %v936_v48  ;;  %v1903_v48 = vld [vmem:[%s2305_s2 + $0x8] sm:$0xff]   ;;  %v1904_v49 = vld [vmem:[%s2305_s2] sm:$0xff]  }
 0x795   : > { %1817 = vmatprep.mubr.msk.bf16.mxu0 %vm543_vm3, %v939_v50 }
 0x796   : > { %1818 = vmatmul.mubr.msk.bf16.vlgmr.msra.gmra.mxu0 %vm543_vm3, %v940_v51 }
 0x797   : > { %1822 = vmatpush3.bf16.xpose.msra.mxu0 %v1037_v52  ;;  %1825 = vmatprep.mubr.msk.bf16.mxu0 %vm476_vm1, %v1020_v53 }
 0x798   : > { %1875 = vmatprep.subr.msk.bf16.mxu0 %vm476_vm1, %v1024_v54 }
 0x79f   : > { %1824 = vmatpush3.bf16.xpose.msra.mxu0 %v1034_v55 }
 0x7a6   : > { %1826 = vmatmul.mubr.msk.bf16.vlgmr.msra.gmra.mxu0 %vm476_vm1, %v1022_v56 }
 0x856   : > { %v1819_v57 = vpop.f32.mrf.mxu0 }
 0x858   : > { %v989_v58 = vpop.f32.mrf.mxu0 }
 0x85a   : > { %v1820_v59 = vpop.f32.mrf.mxu0 }
 0x85c   : > { %v992_v60 = vpop.f32.mrf.mxu0 }
 0x866   : > { %v1827_v61 = vpop.f32.mrf.mxu0 }
 0x867   : > { %v1089_v1 = vmul.f32 0.35355338, %v1827_v61 }
 0x868   : > { %v1073_v62 = vpop.f32.mrf.mxu0 }
 0x869   : > { %v1087_v6 = vmul.f32 0.35355338, %v1073_v62  ;;  %v1092_v14 = vadd.f32 %v1089_v1, %v2108_v21 }
 0x86a   : > { %v1828_v7 = vpop.f32.mrf.mxu0 }
 0x86b   : > { %v1090_v9 = vadd.f32 %v1087_v6, %v2108_v21  ;;  %v1099_v16 = vsel %vm543_vm3, %v1092_v14, -inf }
 0x86c   : > { %v1076_v10 = vpop.f32.mrf.mxu0 }
 0x86d   : > { %v1088_v11 = vmul.f32 0.35355338, %v1076_v10  ;;  %v1093_v13 = vsel %vm543_vm3, %v1090_v9, -inf }
 0x86e   : > { %1094 = vmax.xlane.f32.xlu0 %v1093_v13 }
 0x86f   : > { %v1091_v15 = vadd.f32 %v1088_v11, %v2108_v21 }
 0x871   : > { %v1096_v17 = vsel %vm543_vm3, %v1091_v15, -inf }
 0x872   : > { %1100 = vmax.xlane.f32.xlu0 %v1099_v16  ;;  %1097 = vmax.xlane.f32.xlu1 %v1096_v17 }
 0x8f7   : > { %v1095_v18 = vpop.xlane.xlu0 %1094 }
 0x8f8   : > { %v1102_v19 = vsub.f32 %v1090_v9, %v1095_v18 }
 0x8fa   : > { %v1105_v25 = vmul.f32 1.442695, %v1102_v19 }
 0x8fb   : > { %v1101_v20 = vpop.xlane.xlu0 %1100  ;;  %v1098_v22 = vpop.xlane.xlu1 %1097 }
 0x8fc   : > { %v1104_v23 = vsub.f32 %v1092_v14, %v1101_v20  ;;  %v1103_v24 = vsub.f32 %v1091_v15, %v1098_v22 }
 0x8fe   : > { %v1109_v26 = vmul.f32 1.442695, %v1104_v23  ;;  %v1107_v27 = vmul.f32 1.442695, %v1103_v24 }
 0x900   : > { %1947 = vpow2.f32 %v1109_v26 }
 0x901   : > { %1949 = vpow2.f32 %v1107_v27 }
 0x902   : > { %1951 = vpow2.f32 %v1105_v25 }
 0x90d   : > { %v1948_v28 = vpop.eup %1947 }
 0x90e   : > { %v1950_v21 = vpop.eup %1949  ;;  %v1117_v29 = vsel %vm543_vm3, %v1948_v28, 0.0 }
 0x90f   : > { %v1952_v30 = vpop.eup %1951  ;;  %1118 = vadd.xlane.f32.xlu0 %v1117_v29  ;;  %v1114_v31 = vsel %vm543_vm3, %v1950_v21, 0.0  ;;  %v1906_v29 = vld [vmem:[%s2308_s5] sm:$0xff]  }
 0x910   : > { %1115 = vadd.xlane.f32.xlu1 %v1114_v31  ;;  %v1111_v32 = vsel %vm543_vm3, %v1952_v30, 0.0 }
 0x913   : > { %1112 = vadd.xlane.f32.xlu0 %v1111_v32 }
 0x921   : > { %1130 = vrot.lane.b32.xlu1 %v2094_v8, %s1996_s20 }
 0x925   : > { %819 = vrot.lane.b32.xlu1 %v2169_v0, %s1997_s21 }
 0x929   : > { %821 = vrot.lane.b32.xlu1 %v2171_v5, %s1997_s21  ;;  %1128 = vrot.lane.b32.xlu0 %v2097_v12, %s1996_s20 }
 0x92d   : > { %1006 = vrot.lane.b32.xlu1 %v989_v58, %s1998_s22  ;;  %823 = vrot.lane.b32.xlu0 %v2167_v63, %s1997_s21 }
 0x931   : > { %1010 = vrot.lane.b32.xlu1 %v1819_v57, %s1998_s22  ;;  %1008 = vrot.lane.b32.xlu0 %v992_v60, %s1998_s22  ;;  %s386_s22 = scalar_lea.vmem %s2314_s11, %s1877_s23 }
 0x998   : > { %v1119_v33 = vpop.xlane.xlu0 %1118 }
 0x999   : > { %v1116_v34 = vpop.xlane.xlu1 %1115  ;;  %1953 = vrcp.f32 %v1119_v33 }
 0x99a   : > { %1955 = vrcp.f32 %v1116_v34 }
 0x99c   : > { %v1113_v35 = vpop.xlane.xlu0 %1112 }
 0x99d   : > { %1957 = vrcp.f32 %v1113_v35  ;;  %v1131_v8 = vpop.permute.xlu1 %1130 }
 0x99e   : > { %v1140_v36 = vsel %vm590_vm4, %v1131_v8, 0  ;;  %1876 = vmatprep.subr.msk.bf16.mxu1 %vm590_vm4, %v1131_v8 }
 0x99f   : > { %1830 = vmatpush3.bf16.msra.mxu1 %v1140_v36 }
 0x9a0   : > { %v1129_v12 = vpop.permute.xlu0 %1128 }
 0x9a1   : > { %v820_v0 = vpop.permute.xlu1 %819  ;;  %1831 = vmatprep.subr.bf16.mxu1 %v1129_v12 }
 0x9a2   : > { %829 = vst.msk [vmem:[#allocation2] sm:$0xff] %vm828_vm5, %v820_v0 }
 0x9a3   : > { %1832 = vmatpush3.bf16.msra.mxu1 %v1129_v12 }
 0x9a4   : > { %v824_v63 = vpop.permute.xlu0 %823  ;;  %1837 = vmatprep.subr.bf16.mxu1 %v1903_v48 }
 0x9a5   : > { %831 = vst.msk [vmem:[#allocation2 + $0x10] sm:$0xff] %vm828_vm5, %v824_v63  ;;  %v822_v5 = vpop.permute.xlu1 %821 }
 0x9a6   : > { %830 = vst.msk [vmem:[#allocation2 + $0x8] sm:$0xff] %vm828_vm5, %v822_v5  ;;  %v1954_v37 = vpop.eup %1953  ;;  %v1697_v5 = vld [vmem:[%s2306_s3] ss:$0 sm:$0xff] }
 0x9a7   : > { %v1956_v38 = vpop.eup %1955  ;;  %v1125_v42 = vmul.f32 %v1954_v37, %v1948_v28 }
 0x9a8   : > { %v1009_v39 = vpop.permute.xlu0 %1008  ;;  %v1124_v44 = vmul.f32 %v1956_v38, %v1950_v21  ;;  %v1905_v21 = vld [vmem:[%s2308_s5 + $0x8] sm:$0xff]  }
 0x9a9   : > { %1017 = vst.msk [vmem:[#allocation2 + $0x8] sm:$0xff] %vm1015_vm6, %v1009_v39  ;;  %v1007_v40 = vpop.permute.xlu1 %1006  ;;  %v1127_v47 = vpack.c.bf16 %v1125_v42, %v1125_v42  ;;  %1845 = vmatprep.subr.bf16.mxu0 %v1905_v21 }
 0x9aa   : > { %v1958_v41 = vpop.eup %1957  ;;  %1016 = vst.msk [vmem:[#allocation2] sm:$0xff] %vm1015_vm6, %v1007_v40  ;;  %1846 = vmatpush3.bf16.msra.mxu0 %v1905_v21  ;;  %v1698_v40 = vld [vmem:[%s2307_s4] ss:$0 sm:$0xff] }
 0x9ab   : > { %v1123_v43 = vmul.f32 %v1958_v41, %v1952_v30  ;;  %1847 = vmatprep.subr.bf16.mxu0 %v1906_v29 }
 0x9ad   : > { %v1011_v45 = vpop.permute.xlu1 %1010  ;;  %v1126_v46 = vpack.c.bf16 %v1124_v44, %v1123_v43 }
 0x9ae   : > { %1018 = vst.msk [vmem:[#allocation2 + $0x10] sm:$0xff] %vm1015_vm6, %v1011_v45  ;;  %1848 = vmatpush3.bf16.msra.mxu0 %v1906_v29 }
 0x9af   : > { %1833 = vmatprep.mubr.msk.bf16.mxu1 %vm543_vm3, %v1126_v46 }
 0x9b0   : > { %1834 = vmatmul.mubr.msk.bf16.vlgmr.msra.gmra.mxu1 %vm543_vm3, %v1127_v47 }
 0x9b1   : > { %1838 = vmatpush3.bf16.msra.mxu1 %v1903_v48 }
 0x9b2   : > { %1839 = vmatprep.subr.bf16.mxu1 %v1904_v49 }
 0x9b5   : > { %1840 = vmatpush3.bf16.msra.mxu1 %v1904_v49 }
 0xa70   : > { %v1835_v50 = vpop.f32.mrf.mxu1 }
 0xa72   : > { %v1176_v51 = vpop.f32.mrf.mxu1 }
 0xa73   : > { %1193 = vrot.lane.b32.xlu0 %v1176_v51, %s1999_s28  ;;  %v1908_v51 = vld [vmem:[%s2310_s7 + $0x10] sm:$0xff]  }
 0xa74   : > { %v1836_v52 = vpop.f32.mrf.mxu1 }
 0xa75   : > { %v1909_v52 = vld [vmem:[%s2310_s7 + $0x8] sm:$0xff]  }
 0xa76   : > { %v1179_v53 = vpop.f32.mrf.mxu1 }
 0xa77   : > { %1197 = vrot.lane.b32.xlu0 %v1835_v50, %s1999_s28  ;;  %1195 = vrot.lane.b32.xlu1 %v1179_v53, %s1999_s28  ;;  %v1907_v50 = vld [vmem:[%s2310_s7 + $0x18] sm:$0xff]   ;;  %v1910_v53 = vld [vmem:[%s2310_s7] sm:$0xff]  }
 0xa78   : > { %1853 = vmatprep.subr.bf16.mxu1 %v1907_v50 }
 0xae5   : > { %v1194_v54 = vpop.permute.xlu0 %1193 }
 0xae6   : > { %1203 = vst.msk [vmem:[#allocation2] sm:$0xff] %vm1202_vm7, %v1194_v54  ;;  %v1699_v54 = vld [vmem:[%s2309_s6] ss:$0 sm:$0xff] }
 0xae9   : > { %v1198_v55 = vpop.permute.xlu0 %1197  ;;  %v1196_v56 = vpop.permute.xlu1 %1195 }
 0xaea   : > { %1205 = vst.msk [vmem:[#allocation2 + $0x10] sm:$0xff] %vm1202_vm7, %v1198_v55  ;;  %1204 = vst.msk [vmem:[#allocation2 + $0x8] sm:$0xff] %vm1202_vm7, %v1196_v56 }
 0xaed   : > { %v1206_v57 = vld [vmem:[#allocation2] sm:$0xff] }
 0xaf1   : > { %v1207_v58 = vld [vmem:[#allocation2 + $0x8] sm:$0xff]  ;;  %v1208_v59 = vld [vmem:[#allocation2 + $0x10] sm:$0xff] }
 0xaf2   : > { %v1209_v60 = vpack.c.bf16 %v1207_v58, %v1206_v57  ;;  %v1210_v61 = vpack.c.bf16 %v1208_v59, %v1208_v59 }
 0xaf4   : > { %1841 = vmatprep.mubr.msk.bf16.mxu1 %vm409_vm0, %v1209_v60 }
 0xaf5   : > { %1842 = vmatmul.mubr.msk.bf16.vlgmr.msra.gmra.mxu1 %vm409_vm0, %v1210_v61 }
 0xaf6   : > { %1854 = vmatpush3.bf16.msra.mxu1 %v1907_v50 }
 0xaf7   : > { %1855 = vmatprep.subr.bf16.mxu1 %v1908_v51 }
 0xafa   : > { %1856 = vmatpush3.bf16.msra.mxu1 %v1908_v51 }
 0xafb   : > { %1857 = vmatprep.subr.bf16.mxu1 %v1909_v52 }
 0xafe   : > { %1858 = vmatpush3.bf16.msra.mxu1 %v1909_v52 }
 0xaff   : > { %1859 = vmatprep.subr.bf16.mxu1 %v1910_v53 }
 0xb02   : > { %1860 = vmatpush3.bf16.msra.mxu1 %v1910_v53 }
 0xbb5   : > { %v1843_v62 = vpop.f32.mrf.mxu1 }
 0xbb6   : > { %v1283_v13 = vadd.f32 %v1843_v62, %v2086_v4 }
 0xbb7   : > { %v1267_v1 = vpop.f32.mrf.mxu1 }
 0xbb8   : > { %v1281_v6 = vadd.f32 %v1267_v1, %v2082_v2  ;;  %v1292_v15 = vsel %vm409_vm0, %v1283_v13, 0.0 }
 0xbb9   : > { %v1844_v7 = vpop.f32.mrf.mxu1 }
 0xbba   : > { %v1286_v9 = vsel %vm409_vm0, %v1281_v6, 0.0 }
 0xbbb   : > { %1287 = vadd.xlane.f32.xlu1 %v1286_v9  ;;  %v1270_v10 = vpop.f32.mrf.mxu1 }
 0xbbc   : > { %v1282_v11 = vadd.f32 %v1270_v10, %v2084_v3 }
 0xbbe   : > { %v1289_v14 = vsel %vm409_vm0, %v1282_v11, 0.0 }
 0xbbf   : > { %1290 = vadd.xlane.f32.xlu0 %v1289_v14 }
 0xbc3   : > { %1293 = vadd.xlane.f32.xlu0 %v1292_v15 }
 0xc44   : > { %v1288_v16 = vpop.xlane.xlu1 %1287 }
 0xc45   : > { %v1296_v17 = vmul.f32 0.03125, %v1288_v16 }
 0xc47   : > { %v1299_v18 = vsub.f32 %v1281_v6, %v1296_v17 }
 0xc48   : > { %v1291_v19 = vpop.xlane.xlu0 %1290 }
 0xc49   : > { %v1297_v2 = vmul.f32 0.03125, %v1291_v19  ;;  %v1302_v20 = vmul.f32 %v1299_v18, %v1299_v18 }
 0xc4b   : > { %v1300_v22 = vsub.f32 %v1282_v11, %v1297_v2  ;;  %v1305_v23 = vsel %vm409_vm0, %v1302_v20, 0.0 }
 0xc4c   : > { %1306 = vadd.xlane.f32.xlu1 %v1305_v23  ;;  %v1294_v24 = vpop.xlane.xlu0 %1293 }
 0xc4d   : > { %v1298_v3 = vmul.f32 0.03125, %v1294_v24  ;;  %v1303_v25 = vmul.f32 %v1300_v22, %v1300_v22 }
 0xc4f   : > { %v1301_v4 = vsub.f32 %v1283_v13, %v1298_v3  ;;  %v1308_v26 = vsel %vm409_vm0, %v1303_v25, 0.0 }
 0xc50   : > { %1309 = vadd.xlane.f32.xlu0 %v1308_v26 }
 0xc51   : > { %v1304_v27 = vmul.f32 %v1301_v4, %v1301_v4 }
 0xc53   : > { %v1311_v28 = vsel %vm409_vm0, %v1304_v27, 0.0 }
 0xc54   : > { %1312 = vadd.xlane.f32.xlu1 %v1311_v28 }
 0xcd5   : > { %v1307_v30 = vpop.xlane.xlu1 %1306 }
 0xcd6   : > { %v1314_v31 = vmul.f32 0.03125, %v1307_v30 }
 0xcd8   : > { %v1317_v32 = vadd.f32 1e-05, %v1314_v31 }
 0xcd9   : > { %v1310_v33 = vpop.xlane.xlu0 %1309 }
 0xcda   : > { %1959 = vrsqrt.f32 %v1317_v32  ;;  %v1315_v34 = vmul.f32 0.03125, %v1310_v33  ;;  %v1704_v33 = vld [vmem:[%s2311_s8] ss:$0 sm:$0xff] }
 0xcdc   : > { %v1318_v35 = vadd.f32 1e-05, %v1315_v34 }
 0xcdd   : > { %v1313_v8 = vpop.xlane.xlu1 %1312 }
 0xcde   : > { %1961 = vrsqrt.f32 %v1318_v35  ;;  %v1316_v36 = vmul.f32 0.03125, %v1313_v8 }
 0xce0   : > { %v1319_v12 = vadd.f32 1e-05, %v1316_v36 }
 0xce2   : > { %1963 = vrsqrt.f32 %v1319_v12 }
 0xce7   : > { %v1960_v0 = vpop.eup %1959 }
 0xce8   : > { %v1323_v63 = vmul.f32 %v1960_v0, %v1299_v18 }
 0xcea   : > { %v1332_v39 = vmul.f32 %v1697_v5, %v1323_v63 }
 0xceb   : > { %v1962_v37 = vpop.eup %1961 }
 0xcec   : > { %v1324_v38 = vmul.f32 %v1962_v37, %v1300_v22  ;;  %v2247_v44 = vadd.f32 %v1698_v40, %v1332_v39 }
 0xcee   : > { %v1333_v41 = vmul.f32 %v1697_v5, %v1324_v38 }
 0xcef   : > { %v1964_v42 = vpop.eup %1963 }
 0xcf0   : > { %v1325_v43 = vmul.f32 %v1964_v42, %v1301_v4  ;;  %v2249_v45 = vadd.f32 %v1698_v40, %v1333_v41 }
 0xcf2   : > { %v1344_v46 = vpack.c.bf16 %v2249_v45, %v2247_v44  ;;  %v1334_v47 = vmul.f32 %v1697_v5, %v1325_v43 }
 0xcf4   : > { %1849 = vmatprep.mubr.msk.bf16.mxu0 %vm409_vm0, %v1344_v46  ;;  %v2254_v48 = vadd.f32 %v1698_v40, %v1334_v47 }
 0xcf6   : > { %v1345_v49 = vpack.c.bf16 %v2254_v48, %v2254_v48 }
 0xcf8   : > { %1850 = vmatmul.mubr.msk.bf16.vlgmr.msra.gmra.mxu0 %vm409_vm0, %v1345_v49 }
 0xdb8   : > { %v1851_v55 = vpop.f32.mrf.mxu0 }
 0xdb9   : > { %v1418_v56 = vadd.f32 %v1851_v55, %v1699_v54 }
 0xdba   : > { %v1409_v57 = vpop.f32.mrf.mxu0 }
 0xdbb   : > { %v1428_v58 = vmul.f32 0.044715, %v1418_v56  ;;  %v1410_v59 = vadd.f32 %v1699_v54, %v1409_v57  ;;  %v1425_v25 = vmul.f32 0.5, %v1418_v56 }
 0xdbc   : > { %v1852_v60 = vpop.f32.mrf.mxu0 }
 0xdbd   : > { %v1431_v61 = vmul.f32 %v1428_v58, %v1418_v56  ;;  %v1426_v62 = vmul.f32 0.044715, %v1410_v59  ;;  %v1423_v4 = vmul.f32 0.5, %v1410_v59 }
 0xdbe   : > { %v1412_v1 = vpop.f32.mrf.mxu0 }
 0xdbf   : > { %v1434_v6 = vmul.f32 %v1431_v61, %v1418_v56  ;;  %v1429_v7 = vmul.f32 %v1426_v62, %v1410_v59  ;;  %v1413_v9 = vadd.f32 %v1699_v54, %v1412_v1 }
 0xdc1   : > { %v1437_v10 = vadd.f32 %v1434_v6, %v1418_v56  ;;  %v1432_v11 = vmul.f32 %v1429_v7, %v1410_v59  ;;  %v1427_v13 = vmul.f32 0.044715, %v1413_v9  ;;  %v1424_v26 = vmul.f32 0.5, %v1413_v9 }
 0xdc3   : > { %v1440_v14 = vmul.f32 0.7978846, %v1437_v10  ;;  %v1435_v15 = vadd.f32 %v1432_v11, %v1410_v59  ;;  %v1430_v16 = vmul.f32 %v1427_v13, %v1413_v9  ;;  %v1712_v11 = vld [vmem:[%s2313_s10] ss:$0 sm:$0xff] }
 0xdc5   : > { %v1438_v17 = vmul.f32 0.7978846, %v1435_v15  ;;  %v1433_v18 = vmul.f32 %v1430_v16, %v1413_v9  ;;  %1965 = vtanh.f32 %v1440_v14 }
 0xdc7   : > { %1967 = vtanh.f32 %v1438_v17  ;;  %v1436_v19 = vadd.f32 %v1433_v18, %v1413_v9  ;;  %v1711_v9 = vld [vmem:[%s2312_s9] ss:$0 sm:$0xff] }
 0xdc9   : > { %v1439_v2 = vmul.f32 0.7978846, %v1436_v19 }
 0xdcb   : > { %1969 = vtanh.f32 %v1439_v2 }
 0xdd2   : > { %v1966_v20 = vpop.eup %1965 }
 0xdd3   : > { %v1446_v23 = vadd.f32 1.0, %v1966_v20 }
 0xdd4   : > { %v1968_v22 = vpop.eup %1967 }
 0xdd5   : > { %v1444_v24 = vadd.f32 1.0, %v1968_v22  ;;  %v1449_v28 = vmul.f32 %v1446_v23, %v1425_v25 }
 0xdd7   : > { %v1447_v21 = vmul.f32 %v1444_v24, %v1423_v4  ;;  %v1451_v31 = vpack.c.bf16 %v1449_v28, %v1449_v28 }
 0xdd8   : > { %v1970_v3 = vpop.eup %1969 }
 0xdd9   : > { %v1445_v27 = vadd.f32 1.0, %v1970_v3 }
 0xddb   : > { %v1448_v29 = vmul.f32 %v1445_v27, %v1424_v26 }
 0xddd   : > { %v1450_v30 = vpack.c.bf16 %v1448_v29, %v1447_v21 }
 0xddf   : > { %1861 = vmatprep.mubr.msk.bf16.mxu1 %vm1491_vm8, %v1450_v30 }
 0xde0   : > { %1862 = vmatmul.mubr.msk.bf16.vlgmr.msra.gmra.mxu1 %vm1491_vm8, %v1451_v31 }
 0xea0   : > { %v1863_v32 = vpop.f32.mrf.mxu1 }
 0xea1   : > { %v1541_v35 = vadd.f32 %v1863_v32, %v1704_v33 }
 0xea2   : > { %v1532_v34 = vpop.f32.mrf.mxu1 }
 0xea3   : > { %v1533_v8 = vadd.f32 %v1704_v33, %v1532_v34  ;;  %v1548_v37 = vadd.f32 %v1541_v35, %v2254_v48 }
 0xea4   : > { %v1864_v36 = vpop.f32.mrf.mxu1 }
 0xea5   : > { %v1546_v12 = vadd.f32 %v1533_v8, %v2247_v44  ;;  %v1557_v40 = vsel %vm409_vm0, %v1548_v37, 0.0 }
 0xea6   : > { %v1535_v0 = vpop.f32.mrf.mxu1 }
 0xea7   : > { %v1536_v63 = vadd.f32 %v1704_v33, %v1535_v0  ;;  %v1551_v5 = vsel %vm409_vm0, %v1546_v12, 0.0 }
 0xea8   : > { %1552 = vadd.xlane.f32.xlu0 %v1551_v5 }
 0xea9   : > { %v1547_v38 = vadd.f32 %v1536_v63, %v2249_v45 }
 0xeab   : > { %v1554_v39 = vsel %vm409_vm0, %v1547_v38, 0.0 }
 0xeac   : > { %1555 = vadd.xlane.f32.xlu1 %v1554_v39  ;;  %1558 = vadd.xlane.f32.xlu0 %v1557_v40 }
 0xf31   : > { %v1553_v41 = vpop.xlane.xlu0 %1552 }
 0xf32   : > { %v1560_v42 = vmul.f32 0.03125, %v1553_v41 }
 0xf34   : > { %v1563_v43 = vsub.f32 %v1546_v12, %v1560_v42 }
 0xf35   : > { %v1556_v46 = vpop.xlane.xlu1 %1555  ;;  %v1559_v44 = vpop.xlane.xlu0 %1558 }
 0xf36   : > { %v1561_v47 = vmul.f32 0.03125, %v1556_v46  ;;  %v1562_v49 = vmul.f32 0.03125, %v1559_v44  ;;  %v1566_v50 = vmul.f32 %v1563_v43, %v1563_v43 }
 0xf38   : > { %v1564_v51 = vsub.f32 %v1547_v38, %v1561_v47  ;;  %v1565_v52 = vsub.f32 %v1548_v37, %v1562_v49  ;;  %v1569_v48 = vsel %vm409_vm0, %v1566_v50, 0.0 }
 0xf39   : > { %1570 = vadd.xlane.f32.xlu1 %v1569_v48 }
 0xf3a   : > { %v1567_v45 = vmul.f32 %v1564_v51, %v1564_v51  ;;  %v1568_v53 = vmul.f32 %v1565_v52, %v1565_v52 }
 0xf3c   : > { %v1572_v54 = vsel %vm409_vm0, %v1567_v45, 0.0  ;;  %v1575_v55 = vsel %vm409_vm0, %v1568_v53, 0.0 }
 0xf3d   : > { %1573 = vadd.xlane.f32.xlu0 %v1572_v54  ;;  %1576 = vadd.xlane.f32.xlu1 %v1575_v55 }
 0xfc2   : > { %v1571_v56 = vpop.xlane.xlu1 %1570 }
 0xfc3   : > { %v1578_v57 = vmul.f32 0.03125, %v1571_v56 }
 0xfc5   : > { %v1581_v58 = vadd.f32 1e-05, %v1578_v57 }
 0xfc6   : > { %v1577_v59 = vpop.xlane.xlu1 %1576  ;;  %v1574_v60 = vpop.xlane.xlu0 %1573 }
 0xfc7   : > { %1971 = vrsqrt.f32 %v1581_v58  ;;  %v1580_v61 = vmul.f32 0.03125, %v1577_v59  ;;  %v1579_v62 = vmul.f32 0.03125, %v1574_v60 }
 0xfc9   : > { %v1583_v1 = vadd.f32 1e-05, %v1580_v61  ;;  %v1582_v6 = vadd.f32 1e-05, %v1579_v62 }
 0xfcb   : > { %1973 = vrsqrt.f32 %v1583_v1 }
 0xfcc   : > { %1975 = vrsqrt.f32 %v1582_v6 }
 0xfd4   : > { %v1972_v7 = vpop.eup %1971 }
 0xfd5   : > { %v1587_v10 = vmul.f32 %v1972_v7, %v1563_v43 }
 0xfd7   : > { %v1596_v13 = vmul.f32 %v1711_v9, %v1587_v10 }
 0xfd8   : > { %v1974_v14 = vpop.eup %1973 }
 0xfd9   : > { %v1976_v15 = vpop.eup %1975  ;;  %v1605_v16 = vadd.f32 %v1712_v11, %v1596_v13  ;;  %v1589_v17 = vmul.f32 %v1974_v14, %v1565_v52 }
 0xfda   : > { %v1588_v18 = vmul.f32 %v1976_v15, %v1564_v51 }
 0xfdb   : > { %1608 = vst.msk [vmem:[%s386_s22] sm:$0xff] %vm409_vm0, %v1605_v16  ;;  %v1598_v19 = vmul.f32 %v1711_v9, %v1589_v17 }
 0xfdc   : > { %v1597_v2 = vmul.f32 %v1711_v9, %v1588_v18 }
 0xfdd   : > { %v1607_v20 = vadd.f32 %v1712_v11, %v1598_v19 }
 0xfde   : > { %v1606_v22 = vadd.f32 %v1712_v11, %v1597_v2 }
 0xfdf   : > { %1610 = vst.msk [vmem:[%s386_s22 + $0x10] sm:$0xff] %vm409_vm0, %v1607_v20 }
 0xfe0   : > { %1609 = vst.msk [vmem:[%s386_s22 + $0x8] sm:$0xff] %vm409_vm0, %v1606_v22 }
 0xfe1 PF: > { %s21_s17 = sadd.s32 1, %s1983_s17  }
 0xfe2   : > { %p18_p4 = scmp.ge.s32.totalorder %s21_s17, 4  }
 0xfe4   :  { %20 = sbr.rel (!%p18_p4) target bundleno = 1 (0x1), region = 94 }

// kernel: vit_forward.3
= control target key start
LH: loop header
LB: loop body
LE: loop exit
PB: predicated region body
PF: predicated region fallthrough
CT: control target
= control target key end

     0   :  { %s580_s15 = smov 0   ;;  %s582_s16 = smov 0   ;;  %s634_s0 = inlined_call_operand.vmem [shape: bf16[2,16,64], index: 0, kind: input, shape index: {}]   ;;  %s635_s1 = inlined_call_operand.vmem [shape: bf16[64,32], index: 1, kind: input, shape index: {}]   ;;  %s636_s2 = inlined_call_operand.vmem [shape: f32[1,32], index: 2, kind: input, shape index: {}]   ;;  %s637_s3 = inlined_call_operand.vmem [shape: f32[16,32], index: 3, kind: input, shape index: {}]   ;;  %s638_s4 = inlined_call_operand.vmem [shape: f32[2,16,32], index: 4, kind: output, shape index: {}]  }
   0x1   :  { %s584_s17 = smov 0  }
   0x2 LB: > { %s26_s18 = sadd.s32 1, %s547_s16  ;;  %p465_p0 = scmp.ge.s32.totalorder %s551_s17, 1  ;;  %s551_s17 = sphi %s584_s17, %s14_s17   ;;  %s547_s16 = sphi %s582_s16, %s640_s16   ;;  %s543_s15 = sphi %s580_s15, %s639_s15  }
   0x3   : > { %p28_p1 = scmp.ge.s32.totalorder %s26_s18, 2  ;;  %p194_p2 = scmp.lt.s32.totalorder %s551_s17, 3 }
   0x5   : > { %s642_s18 = smov (%p28_p1, %s26_s18), 0  ;;  %p195_p3 = pnand %p465_p0, %p194_p2 }
   0x6   : > { %p234_p4 = scmp.lt.s32.totalorder (!%p195_p3), %s543_s15, 1 }
   0x7   : > { %198 = sbr.rel (%p195_p3) target bundleno = 231 (0xe7), region = 36 }
   0xc   : > { %v524_v0 = vld [vmem:[%s635_s1 + $0x18] sm:$0xff]   ;;  %v553_v1 = vmov 0.0   ;;  %v525_v2 = vld [vmem:[%s635_s1 + $0x10] sm:$0xff]   ;;  %vm554_vm0 = vmmov 0   ;;  %s644_s15 = smov (!%p234_p4, %s543_s15), 1  ;;  %v526_v3 = vld [vmem:[%s635_s1 + $0x8] sm:$0xff]  }
   0xd   : > { %486 = vmatprep.subr.bf16.mxu0 %v553_v1  ;;  %494 = vmatprep.mubr.msk.bf16.mxu0 %vm554_vm0, %v553_v1  ;;  %s479_s25 = sshll.u32 %s644_s15, 3  ;;  %v527_v4 = vld [vmem:[%s635_s1] sm:$0xff]   ;;  %vm306_vm1 = vcmask 523264   ;;  %s480_s7 = sshll.u32 %s644_s15, 4  ;;  %vm355_vm2 = vcmask 261120   ;;  %v352_v13 = vld [vmem:[%s637_s3 + $0x8] sm:$0xff] }
   0xe   : > { %487 = vmatpush3.bf16.msra.mxu0 %v524_v0  ;;  %s241_s28 = scalar_lea.vmem %s634_s0, %s479_s25  ;;  %v470_v6 = vld [vmem:[%s636_s2] ss:$0 sm:$0xff]  ;;  %s257_s12 = scalar_lea.vmem %s638_s4, %s480_s7 }
   0xf   : > { %488 = vmatprep.subr.bf16.mxu0 %v553_v1  ;;  %v528_v5 = vld [vmem:[%s241_s28] sm:$0xff]  }
  0x10   : > { %v351_v8 = vld [vmem:[%s637_s3] sm:$0xff] }
  0x12   : > { %489 = vmatpush3.bf16.msra.mxu0 %v525_v2 }
  0x13   : > { %490 = vmatprep.subr.bf16.mxu0 %v553_v1 }
  0x16   : > { %491 = vmatpush3.bf16.msra.mxu0 %v526_v3 }
  0x17   : > { %492 = vmatprep.subr.bf16.mxu0 %v553_v1 }
  0x1a   : > { %493 = vmatpush3.bf16.msra.mxu0 %v527_v4 }
  0x1d   : > { %495 = vmatmul.mubr.msk.bf16.vlgmr.msra.gmra.mxu0 %vm306_vm1, %v528_v5 }
  0xdd   : > { %v344_v7 = vpop.f32.mrf.mxu0 }
  0xde   : > { %v345_v9 = vadd.f32 %v470_v6, %v344_v7 }
  0xdf   : > { %v496_v10 = vpop.f32.mrf.mxu0 }
  0xe0   : > { %v353_v11 = vadd.f32 %v351_v8, %v345_v9 }
  0xe1   : > { %v347_v12 = vpop.f32.mrf.mxu0 }
  0xe2   : > { %356 = vst.msk [vmem:[%s257_s12] sm:$0xff] %vm355_vm2, %v353_v11  ;;  %v348_v14 = vadd.f32 %v470_v6, %v347_v12 }
  0xe3   : > { %v497_v15 = vpop.f32.mrf.mxu0 }
  0xe4   : > { %v354_v16 = vadd.f32 %v352_v13, %v348_v14 }
  0xe6   : > { %357 = vst.msk [vmem:[%s257_s12 + $0x8] sm:$0xff] %vm355_vm2, %v354_v16 }
  0xe7 PF: > { %s14_s17 = sadd.s32 1, %s551_s17   ;;  %s639_s15 = smov %s547_s16 }
  0xe8   : > { %p11_p5 = scmp.ge.s32.totalorder %s14_s17, 4   ;;  %s640_s16 = smov %s642_s18 }
  0xea   :  { %13 = sbr.rel (!%p11_p5) target bundleno = 2 (0x2), region = 69 }

// kernel: vit_forward.4
= control target key start
LH: loop header
LB: loop body
LE: loop exit
PB: predicated region body
PF: predicated region fallthrough
CT: control target
= control target key end

     0   :  { %s2060_s17 = smov 0   ;;  %s2303_s0 = inlined_call_operand.vmem [shape: f32[2,24,32], index: 0, kind: input, shape index: {}]   ;;  %s2304_s1 = inlined_call_operand.vmem [shape: bf16[32,96], index: 1, kind: input, shape index: {}]   ;;  %s2305_s2 = inlined_call_operand.vmem [shape: bf16[32,32], index: 2, kind: input, shape index: {}]   ;;  %s2306_s3 = inlined_call_operand.vmem [shape: f32[1,32], index: 3, kind: input, shape index: {}]   ;;  %s2307_s4 = inlined_call_operand.vmem [shape: f32[1,32], index: 4, kind: input, shape index: {}]   ;;  %s2308_s5 = inlined_call_operand.vmem [shape: bf16[32,64], index: 5, kind: input, shape index: {}]   ;;  %s2309_s6 = inlined_call_operand.vmem [shape: f32[1,64], index: 6, kind: input, shape index: {}]   ;;  %s2310_s7 = inlined_call_operand.vmem [shape: bf16[64,32], index: 7, kind: input, shape index: {}]   ;;  %s2311_s8 = inlined_call_operand.vmem [shape: f32[1,32], index: 8, kind: input, shape index: {}]   ;;  %s2312_s9 = inlined_call_operand.vmem [shape: f32[1,32], index: 9, kind: input, shape index: {}]   ;;  %s2313_s10 = inlined_call_operand.vmem [shape: f32[1,32], index: 10, kind: input, shape index: {}]   ;;  %s2314_s11 = inlined_call_operand.vmem [shape: f32[2,24,32], index: 11, kind: output, shape index: {}]  }
   0x1 LB: > { %s1666_s18 = sadd.s32 4294967295, %s1983_s17   ;;  %p1670_p0 = scmp.ge.s32.totalorder %s1983_s17, 1  ;;  %s1983_s17 = sphi %s2060_s17, %s21_s17  }
   0x2   : > { %p337_p1 = scmp.lt.s32.totalorder %s1983_s17, 3 }
   0x4   : > { %p338_p2 = pnand %p1670_p0, %p337_p1 }
   0x5   : > { %p377_p3 = scmp.lt.s32.totalorder (!%p338_p2), %s1666_s18, 1  ;;  %s1985_s27 = smov (!%p338_p2), 96  }
   0x6   : > { %341 = sbr.rel (%p338_p2) target bundleno = 4065 (0xfe1), region = 64  ;;  %s1987_s28 = smov (!%p338_p2), 88  }
   0x7   : > { %s1988_s29 = smov (!%p338_p2), 64   ;;  %s1989_s30 = smov (!%p338_p2), 120  }
   0x8   : > { %s1990_s12 = smov (!%p338_p2), 56   ;;  %s1991_s13 = smov (!%p338_p2), 80  }
   0x9   : > { %s1992_s14 = smov (!%p338_p2), 112   ;;  %s1993_s15 = smov (!%p338_p2), 48  }
   0xa   : > { %s1994_s16 = smov (!%p338_p2), 72   ;;  %s1995_s19 = smov (!%p338_p2), 104  }
   0xb   : > { %v1901_v0 = vld [vmem:[%s2304_s1 + $0x8] sm:$0xff]   ;;  %v1902_v1 = vld [vmem:[%s2304_s1] sm:$0xff]   ;;  %s2316_s18 = smov (!%p377_p3, %s1666_s18), 1  ;;  %vm409_vm0 = vcmask 261120   ;;  %vm476_vm1 = vcmask 64512   ;;  %v464_v17 = vlaneseq  ;;  %v1986_v20 = vmov 0.0  }
   0xc   : > { %1765 = vmatprep.subr.bf16.mxu0 %v1901_v0  ;;  %s1877_s23 = smul.u32 24, %s2316_s18  ;;  %vm543_vm3 = vcmask 195584   ;;  %vm590_vm4 = vcmask 1043456   ;;  %s1996_s20 = smov 40   ;;  %vm828_vm5 = vcmask 130112   ;;  %vm1015_vm6 = vcmask 195712  }
   0xd   : > { %1766 = vmatpush3.bf16.msra.mxu0 %v1901_v0  ;;  %v465_v18 = vand.u32 127, %v464_v17  ;;  %s1997_s21 = smov 8   ;;  %s1998_s22 = smov 16   ;;  %vm1202_vm7 = vcmask 261312   ;;  %vm1491_vm8 = vcmask 523264  }
   0xe   : > { %1767 = vmatprep.subr.bf16.mxu0 %v1902_v1  ;;  %s381_s26 = scalar_lea.vmem %s2303_s0, %s1877_s23 }
   0xf   : > { %v2082_v2 = vld [vmem:[%s381_s26] sm:$0xff]  ;;  %v2084_v3 = vld [vmem:[%s381_s26 + $0x8] sm:$0xff]  ;;  %v2086_v4 = vld [vmem:[%s381_s26 + $0x10] sm:$0xff]  ;;  %vm466_vm2 = vcmp.ge.s32.totalorder %v465_v18, 17 }
  0x10   : > { %v391_v5 = vpack.c.bf16 %v2084_v3, %v2082_v2  ;;  %v392_v6 = vpack.c.bf16 %v2086_v4, %v2086_v4  ;;  %v2108_v21 = vsel %vm466_vm2, -1e+30, %v1986_v20 }
  0x11   : > { %1768 = vmatpush3.bf16.msra.mxu0 %v1902_v1 }
  0x12   : > { %1769 = vmatprep.mubr.msk.bf16.mxu0 %vm409_vm0, %v391_v5 }
  0x14   : > { %1770 = vmatmul.mubr.msk.bf16.vlgmr.msra.gmra.mxu0 %vm409_vm0, %v392_v6 }
  0xd4   : > { %v1771_v7 = vpop.f32.mrf.mxu0 }
  0xd5   : > { %v2094_v8 = vpack.c.bf16 %v1771_v7, %v1771_v7 }
  0xd6   : > { %v450_v9 = vpop.f32.mrf.mxu0 }
  0xd7   : > { %474 = vrot.lane.b32.xlu0 %v2094_v8, %s1985_s27 }
  0xd8   : > { %v1772_v10 = vpop.f32.mrf.mxu0 }
  0xda   : > { %v453_v11 = vpop.f32.mrf.mxu0 }
  0xdb   : > { %v2097_v12 = vpack.c.bf16 %v453_v11, %v450_v9 }
  0xdd   : > { %472 = vrot.lane.b32.xlu0 %v2097_v12, %s1985_s27  ;;  %1777 = vmatprep.mubr.msk.bf16.mxu1 %vm476_vm1, %v2097_v12 }
 0x149   : > { %v475_v13 = vpop.permute.xlu0 %474 }
 0x14a   : > { %1865 = vmatprep.subr.msk.bf16.mxu1 %vm476_vm1, %v475_v13  ;;  %v487_v14 = vsel %vm476_vm1, %v475_v13, 0 }
 0x14b   : > { %1774 = vmatpush3.bf16.xpose.msra.mxu1 %v487_v14 }
 0x14f   : > { %v473_v15 = vpop.permute.xlu0 %472 }
 0x150   : > { %1866 = vmatprep.subr.msk.bf16.mxu1 %vm476_vm1, %v473_v15  ;;  %v484_v16 = vsel %vm476_vm1, %v473_v15, 0 }
 0x153   : > { %1776 = vmatpush3.bf16.xpose.msra.mxu1 %v484_v16 }
 0x15a   : > { %1778 = vmatmul.mubr.msk.bf16.vlgmr.msra.gmra.mxu1 %vm476_vm1, %v2094_v8 }
 0x21a   : > { %v1779_v19 = vpop.f32.mrf.mxu1 }
 0x21b   : > { %v539_v22 = vmul.f32 0.35355338, %v1779_v19 }
 0x21c   : > { %v523_v23 = vpop.f32.mrf.mxu1 }
 0x21d   : > { %v537_v24 = vmul.f32 0.35355338, %v523_v23  ;;  %v542_v25 = vadd.f32 %v539_v22, %v2108_v21 }
 0x21e   : > { %v1780_v26 = vpop.f32.mrf.mxu1 }
 0x21f   : > { %v550_v27 = vsel %vm543_vm3, %v542_v25, -inf  ;;  %v540_v28 = vadd.f32 %v537_v24, %v2108_v21 }
 0x220   : > { %551 = vmax.xlane.f32.xlu0 %v550_v27  ;;  %v526_v29 = vpop.f32.mrf.mxu1 }
 0x221   : > { %v538_v30 = vmul.f32 0.35355338, %v526_v29  ;;  %v544_v31 = vsel %vm543_vm3, %v540_v28, -inf }
 0x222   : > { %545 = vmax.xlane.f32.xlu1 %v544_v31 }
 0x223   : > { %v541_v32 = vadd.f32 %v538_v30, %v2108_v21 }
 0x225   : > { %v547_v33 = vsel %vm543_vm3, %v541_v32, -inf }
 0x226   : > { %548 = vmax.xlane.f32.xlu1 %v547_v33 }
 0x236   : > { %651 = vrot.lane.b32.xlu0 %v2094_v8, %s1987_s28 }
 0x237   : > { %581 = vrot.lane.b32.xlu1 %v2094_v8, %s1988_s29 }
 0x2a9   : > { %v552_v34 = vpop.xlane.xlu0 %551 }
 0x2aa   : > { %v555_v35 = vsub.f32 %v542_v25, %v552_v34 }
 0x2ab   : > { %v546_v36 = vpop.xlane.xlu1 %545 }
 0x2ac   : > { %v560_v37 = vmul.f32 1.442695, %v555_v35  ;;  %v553_v38 = vsub.f32 %v540_v28, %v546_v36 }
 0x2ad   : > { %v652_v55 = vpop.permute.xlu0 %651 }
 0x2ae   : > { %1911 = vpow2.f32 %v560_v37  ;;  %v556_v39 = vmul.f32 1.442695, %v553_v38  ;;  %v663_v1 = vsel %vm476_vm1, %v652_v55, 0 }
 0x2af   : > { %v549_v40 = vpop.xlane.xlu1 %548 }
 0x2b0   : > { %1913 = vpow2.f32 %v556_v39  ;;  %v554_v41 = vsub.f32 %v541_v32, %v549_v40 }
 0x2b2   : > { %v558_v42 = vmul.f32 1.442695, %v554_v41 }
 0x2b3   : > { %v582_v43 = vpop.permute.xlu1 %581 }
 0x2b4   : > { %1915 = vpow2.f32 %v558_v42  ;;  %v592_v44 = vsel %vm590_vm4, %v582_v43, 0  ;;  %1867 = vmatprep.subr.msk.bf16.mxu0 %vm590_vm4, %v582_v43 }
 0x2b5   : > { %1782 = vmatpush3.bf16.msra.mxu0 %v592_v44 }
 0x2bb   : > { %v1912_v45 = vpop.eup %1911 }
 0x2bc   : > { %v568_v46 = vsel %vm543_vm3, %v1912_v45, 0.0 }
 0x2bd   : > { %v1914_v47 = vpop.eup %1913  ;;  %569 = vadd.xlane.f32.xlu1 %v568_v46 }
 0x2be   : > { %v562_v48 = vsel %vm543_vm3, %v1914_v47, 0.0 }
 0x2c1   : > { %v1916_v49 = vpop.eup %1915  ;;  %563 = vadd.xlane.f32.xlu1 %v562_v48 }
 0x2c2   : > { %v565_v50 = vsel %vm543_vm3, %v1916_v49, 0.0 }
 0x2c5   : > { %566 = vadd.xlane.f32.xlu1 %v565_v50 }
 0x2d6   : > { %579 = vrot.lane.b32.xlu1 %v2097_v12, %s1988_s29 }
 0x2da   : > { %649 = vrot.lane.b32.xlu1 %v2097_v12, %s1987_s28  ;;  %s1999_s28 = smov 24  }
 0x2de   : > { %645 = vrot.lane.b32.xlu1 %v2097_v12, %s1989_s30 }
 0x2e2   : > { %647 = vrot.lane.b32.xlu1 %v2094_v8, %s1989_s30 }
 0x346   : > { %v570_v51 = vpop.xlane.xlu1 %569 }
 0x347   : > { %1917 = vrcp.f32 %v570_v51 }
 0x34a   : > { %v564_v52 = vpop.xlane.xlu1 %563 }
 0x34b   : > { %1919 = vrcp.f32 %v564_v52 }
 0x34e   : > { %v567_v53 = vpop.xlane.xlu1 %566 }
 0x34f   : > { %1921 = vrcp.f32 %v567_v53 }
 0x352   : > { %v580_v54 = vpop.permute.xlu1 %579 }
 0x353   : > { %1783 = vmatprep.subr.bf16.mxu0 %v580_v54 }
 0x354   : > { %1784 = vmatpush3.bf16.msra.mxu0 %v580_v54  ;;  %v1918_v56 = vpop.eup %1917 }
 0x355   : > { %1868 = vmatprep.subr.msk.bf16.mxu0 %vm476_vm1, %v652_v55  ;;  %v576_v60 = vmul.f32 %v1918_v56, %v1912_v45 }
 0x356   : > { %v650_v59 = vpop.permute.xlu1 %649 }
 0x357   : > { %v578_v0 = vpack.c.bf16 %v576_v60, %v576_v60  ;;  %v660_v6 = vsel %vm476_vm1, %v650_v59, 0 }
 0x358   : > { %v1920_v57 = vpop.eup %1919 }
 0x359   : > { %v574_v61 = vmul.f32 %v1920_v57, %v1914_v47 }
 0x35a   : > { %v646_v5 = vpop.permute.xlu1 %645 }
 0x35c   : > { %v1922_v58 = vpop.eup %1921 }
 0x35d   : > { %v575_v62 = vmul.f32 %v1922_v58, %v1916_v49 }
 0x35e   : > { %v648_v7 = vpop.permute.xlu1 %647 }
 0x35f   : > { %v577_v63 = vpack.c.bf16 %v575_v62, %v574_v61 }
 0x361   : > { %1785 = vmatprep.mubr.msk.bf16.mxu0 %vm543_vm3, %v577_v63 }
 0x362   : > { %1786 = vmatmul.mubr.msk.bf16.vlgmr.msra.gmra.mxu0 %vm543_vm3, %v578_v0 }
 0x363   : > { %1790 = vmatpush3.bf16.xpose.msra.mxu0 %v663_v1  ;;  %1793 = vmatprep.mubr.msk.bf16.mxu0 %vm476_vm1, %v646_v5 }
 0x364   : > { %1869 = vmatprep.subr.msk.bf16.mxu0 %vm476_vm1, %v650_v59 }
 0x36b   : > { %1792 = vmatpush3.bf16.xpose.msra.mxu0 %v660_v6 }
 0x372   : > { %1794 = vmatmul.mubr.msk.bf16.vlgmr.msra.gmra.mxu0 %vm476_vm1, %v648_v7 }
 0x422   : > { %v1787_v9 = vpop.f32.mrf.mxu0 }
 0x423   : > { %644 = vst.msk [vmem:[#allocation2 + $0x10] sm:$0xff] %vm476_vm1, %v1787_v9 }
 0x424   : > { %v628_v10 = vpop.f32.mrf.mxu0 }
 0x425   : > { %642 = vst.msk [vmem:[#allocation2] sm:$0xff] %vm476_vm1, %v628_v10 }
 0x426   : > { %v1788_v11 = vpop.f32.mrf.mxu0 }
 0x428   : > { %v631_v13 = vpop.f32.mrf.mxu0 }
 0x429   : > { %643 = vst.msk [vmem:[#allocation2 + $0x8] sm:$0xff] %vm476_vm1, %v631_v13 }
 0x432   : > { %v1795_v14 = vpop.f32.mrf.mxu0 }
 0x433   : > { %v715_v16 = vmul.f32 0.35355338, %v1795_v14 }
 0x434   : > { %v699_v15 = vpop.f32.mrf.mxu0 }
 0x435   : > { %v713_v17 = vmul.f32 0.35355338, %v699_v15  ;;  %v718_v24 = vadd.f32 %v715_v16, %v2108_v21 }
 0x436   : > { %v1796_v18 = vpop.f32.mrf.mxu0 }
 0x437   : > { %v716_v19 = vadd.f32 %v713_v17, %v2108_v21  ;;  %v725_v26 = vsel %vm543_vm3, %v718_v24, -inf }
 0x438   : > { %v702_v20 = vpop.f32.mrf.mxu0 }
 0x439   : > { %v714_v22 = vmul.f32 0.35355338, %v702_v20  ;;  %v719_v23 = vsel %vm543_vm3, %v716_v19, -inf }
 0x43a   : > { %720 = vmax.xlane.f32.xlu1 %v719_v23 }
 0x43b   : > { %v717_v25 = vadd.f32 %v714_v22, %v2108_v21 }
 0x43d   : > { %v722_v27 = vsel %vm543_vm3, %v717_v25, -inf }
 0x43e   : > { %726 = vmax.xlane.f32.xlu1 %v725_v26  ;;  %723 = vmax.xlane.f32.xlu0 %v722_v27 }
 0x44f   : > { %756 = vrot.lane.b32.xlu1 %v2094_v8, %s1990_s12 }
 0x4c3   : > { %v721_v28 = vpop.xlane.xlu1 %720 }
 0x4c4   : > { %v728_v29 = vsub.f32 %v716_v19, %v721_v28 }
 0x4c6   : > { %v731_v34 = vmul.f32 1.442695, %v728_v29 }
 0x4c7   : > { %v727_v30 = vpop.xlane.xlu1 %726  ;;  %v724_v31 = vpop.xlane.xlu0 %723 }
 0x4c8   : > { %v730_v32 = vsub.f32 %v718_v24, %v727_v30  ;;  %v729_v33 = vsub.f32 %v717_v25, %v724_v31 }
 0x4ca   : > { %v735_v35 = vmul.f32 1.442695, %v730_v32  ;;  %v733_v36 = vmul.f32 1.442695, %v729_v33 }
 0x4cb   : > { %v757_v37 = vpop.permute.xlu1 %756 }
 0x4cc   : > { %1923 = vpow2.f32 %v735_v35  ;;  %v766_v38 = vsel %vm590_vm4, %v757_v37, 0  ;;  %1870 = vmatprep.subr.msk.bf16.mxu1 %vm590_vm4, %v757_v37 }
 0x4cd   : > { %1925 = vpow2.f32 %v733_v36  ;;  %1798 = vmatpush3.bf16.msra.mxu1 %v766_v38 }
 0x4ce   : > { %1927 = vpow2.f32 %v731_v34 }
 0x4d9   : > { %v1924_v39 = vpop.eup %1923 }
 0x4da   : > { %v1926_v40 = vpop.eup %1925  ;;  %v743_v41 = vsel %vm543_vm3, %v1924_v39, 0.0 }
 0x4db   : > { %v1928_v42 = vpop.eup %1927  ;;  %744 = vadd.xlane.f32.xlu0 %v743_v41  ;;  %v740_v43 = vsel %vm543_vm3, %v1926_v40, 0.0 }
 0x4dc   : > { %741 = vadd.xlane.f32.xlu1 %v740_v43  ;;  %v737_v44 = vsel %vm543_vm3, %v1928_v42, 0.0 }
 0x4df   : > { %738 = vadd.xlane.f32.xlu0 %v737_v44 }
 0x4ed   : > { %838 = vrot.lane.b32.xlu1 %v2094_v8, %s1991_s13 }
 0x4f1   : > { %836 = vrot.lane.b32.xlu1 %v2097_v12, %s1991_s13 }
 0x4f5   : > { %834 = vrot.lane.b32.xlu1 %v2094_v8, %s1992_s14  ;;  %754 = vrot.lane.b32.xlu0 %v2097_v12, %s1990_s12 }
 0x4f9   : > { %832 = vrot.lane.b32.xlu0 %v2097_v12, %s1992_s14 }
 0x564   : > { %v745_v45 = vpop.xlane.xlu0 %744 }
 0x565   : > { %v742_v46 = vpop.xlane.xlu1 %741  ;;  %1929 = vrcp.f32 %v745_v45 }
 0x566   : > { %1931 = vrcp.f32 %v742_v46 }
 0x568   : > { %v739_v47 = vpop.xlane.xlu0 %738 }
 0x569   : > { %1933 = vrcp.f32 %v739_v47  ;;  %v839_v49 = vpop.permute.xlu1 %838 }
 0x56a   : > { %v850_v58 = vsel %vm476_vm1, %v839_v49, 0 }
 0x56c   : > { %v755_v48 = vpop.permute.xlu0 %754 }
 0x56d   : > { %1799 = vmatprep.subr.bf16.mxu1 %v755_v48  ;;  %v837_v60 = vpop.permute.xlu1 %836 }
 0x56e   : > { %1800 = vmatpush3.bf16.msra.mxu1 %v755_v48  ;;  %v847_v61 = vsel %vm476_vm1, %v837_v60, 0 }
 0x56f   : > { %1871 = vmatprep.subr.msk.bf16.mxu1 %vm476_vm1, %v839_v49 }
 0x570   : > { %v833_v59 = vpop.permute.xlu0 %832 }
 0x571   : > { %v835_v62 = vpop.permute.xlu1 %834 }
 0x572   : > { %v1930_v50 = vpop.eup %1929 }
 0x573   : > { %v1932_v51 = vpop.eup %1931  ;;  %v751_v53 = vmul.f32 %v1930_v50, %v1924_v39 }
 0x574   : > { %v750_v55 = vmul.f32 %v1932_v51, %v1926_v40 }
 0x575   : > { %v753_v57 = vpack.c.bf16 %v751_v53, %v751_v53 }
 0x576   : > { %v1934_v52 = vpop.eup %1933 }
 0x577   : > { %v749_v54 = vmul.f32 %v1934_v52, %v1928_v42 }
 0x579   : > { %v752_v56 = vpack.c.bf16 %v750_v55, %v749_v54 }
 0x57b   : > { %1801 = vmatprep.mubr.msk.bf16.mxu1 %vm543_vm3, %v752_v56 }
 0x57c   : > { %1802 = vmatmul.mubr.msk.bf16.vlgmr.msra.gmra.mxu1 %vm543_vm3, %v753_v57 }
 0x57d   : > { %1806 = vmatpush3.bf16.xpose.msra.mxu1 %v850_v58  ;;  %1809 = vmatprep.mubr.msk.bf16.mxu1 %vm476_vm1, %v833_v59 }
 0x57e   : > { %1872 = vmatprep.subr.msk.bf16.mxu1 %vm476_vm1, %v837_v60 }
 0x585   : > { %1808 = vmatpush3.bf16.xpose.msra.mxu1 %v847_v61 }
 0x58c   : > { %1810 = vmatmul.mubr.msk.bf16.vlgmr.msra.gmra.mxu1 %vm476_vm1, %v835_v62 }
 0x63c   : > { %v2167_v63 = vpop.f32.mrf.mxu1 }
 0x63e   : > { %v2169_v0 = vpop.f32.mrf.mxu1 }
 0x640   : > { %v1804_v1 = vpop.f32.mrf.mxu1 }
 0x642   : > { %v2171_v5 = vpop.f32.mrf.mxu1 }
 0x64c   : > { %v1811_v6 = vpop.f32.mrf.mxu1 }
 0x64d   : > { %v902_v9 = vmul.f32 0.35355338, %v1811_v6 }
 0x64e   : > { %v886_v7 = vpop.f32.mrf.mxu1 }
 0x64f   : > { %v900_v10 = vmul.f32 0.35355338, %v886_v7  ;;  %v905_v17 = vadd.f32 %v902_v9, %v2108_v21 }
 0x650   : > { %v1812_v11 = vpop.f32.mrf.mxu1 }
 0x651   : > { %v903_v13 = vadd.f32 %v900_v10, %v2108_v21  ;;  %v912_v19 = vsel %vm543_vm3, %v905_v17, -inf }
 0x652   : > { %v889_v14 = vpop.f32.mrf.mxu1 }
 0x653   : > { %v901_v15 = vmul.f32 0.35355338, %v889_v14  ;;  %v906_v16 = vsel %vm543_vm3, %v903_v13, -inf }
 0x654   : > { %907 = vmax.xlane.f32.xlu0 %v906_v16 }
 0x655   : > { %v904_v18 = vadd.f32 %v901_v15, %v2108_v21 }
 0x657   : > { %v909_v20 = vsel %vm543_vm3, %v904_v18, -inf }
 0x658   : > { %913 = vmax.xlane.f32.xlu0 %v912_v19  ;;  %910 = vmax.xlane.f32.xlu1 %v909_v20 }
 0x669   : > { %943 = vrot.lane.b32.xlu1 %v2094_v8, %s1993_s15 }
 0x6dd   : > { %v908_v22 = vpop.xlane.xlu0 %907 }
 0x6de   : > { %v915_v23 = vsub.f32 %v903_v13, %v908_v22 }
 0x6e0   : > { %v918_v28 = vmul.f32 1.442695, %v915_v23 }
 0x6e1   : > { %v914_v24 = vpop.xlane.xlu0 %913  ;;  %v911_v25 = vpop.xlane.xlu1 %910 }
 0x6e2   : > { %v917_v26 = vsub.f32 %v905_v17, %v914_v24  ;;  %v916_v27 = vsub.f32 %v904_v18, %v911_v25 }
 0x6e4   : > { %v922_v29 = vmul.f32 1.442695, %v917_v26  ;;  %v920_v30 = vmul.f32 1.442695, %v916_v27 }
 0x6e5   : > { %v944_v31 = vpop.permute.xlu1 %943 }
 0x6e6   : > { %1935 = vpow2.f32 %v922_v29  ;;  %v953_v32 = vsel %vm590_vm4, %v944_v31, 0  ;;  %1873 = vmatprep.subr.msk.bf16.mxu0 %vm590_vm4, %v944_v31 }
 0x6e7   : > { %1937 = vpow2.f32 %v920_v30  ;;  %1814 = vmatpush3.bf16.msra.mxu0 %v953_v32 }
 0x6e8   : > { %1939 = vpow2.f32 %v918_v28 }
 0x6f3   : > { %v1936_v33 = vpop.eup %1935 }
 0x6f4   : > { %v1938_v34 = vpop.eup %1937  ;;  %v930_v35 = vsel %vm543_vm3, %v1936_v33, 0.0 }
 0x6f5   : > { %v1940_v36 = vpop.eup %1939  ;;  %931 = vadd.xlane.f32.xlu0 %v930_v35  ;;  %v927_v37 = vsel %vm543_vm3, %v1938_v34, 0.0 }
 0x6f6   : > { %928 = vadd.xlane.f32.xlu1 %v927_v37  ;;  %v924_v38 = vsel %vm543_vm3, %v1940_v36, 0.0 }
 0x6f9   : > { %925 = vadd.xlane.f32.xlu0 %v924_v38 }
 0x707   : > { %1025 = vrot.lane.b32.xlu1 %v2094_v8, %s1994_s16 }
 0x70b   : > { %1023 = vrot.lane.b32.xlu1 %v2097_v12, %s1994_s16 }
 0x70f   : > { %1021 = vrot.lane.b32.xlu1 %v2094_v8, %s1995_s19  ;;  %941 = vrot.lane.b32.xlu0 %v2097_v12, %s1993_s15 }
 0x713   : > { %1019 = vrot.lane.b32.xlu0 %v2097_v12, %s1995_s19 }
 0x77e   : > { %v932_v39 = vpop.xlane.xlu0 %931 }
 0x77f   : > { %v929_v40 = vpop.xlane.xlu1 %928  ;;  %1941 = vrcp.f32 %v932_v39 }
 0x780   : > { %1943 = vrcp.f32 %v929_v40 }
 0x782   : > { %v926_v41 = vpop.xlane.xlu0 %925 }
 0x783   : > { %1945 = vrcp.f32 %v926_v41  ;;  %v1026_v43 = vpop.permute.xlu1 %1025 }
 0x784   : > { %v1037_v52 = vsel %vm476_vm1, %v1026_v43, 0 }
 0x786   : > { %v942_v42 = vpop.permute.xlu0 %941 }
 0x787   : > { %1815 = vmatprep.subr.bf16.mxu0 %v942_v42  ;;  %v1024_v54 = vpop.permute.xlu1 %1023 }
 0x788   : > { %1816 = vmatpush3.bf16.msra.mxu0 %v942_v42  ;;  %v1034_v55 = vsel %vm476_vm1, %v1024_v54, 0 }
 0x789   : > { %1874 = vmatprep.subr.msk.bf16.mxu0 %vm476_vm1, %v1026_v43 }
 0x78a   : > { %v1020_v53 = vpop.permute.xlu0 %1019 }
 0x78b   : > { %v1022_v56 = vpop.permute.xlu1 %1021 }
 0x78c   : > { %v1942_v44 = vpop.eup %1941 }
 0x78d   : > { %v1944_v45 = vpop.eup %1943  ;;  %v938_v47 = vmul.f32 %v1942_v44, %v1936_v33 }
 0x78e   : > { %v937_v49 = vmul.f32 %v1944_v45, %v1938_v34 }
 0x78f   : > { %v940_v51 = vpack.c.bf16 %v938_v47, %v938_v47 }
 0x790   : > { %v1946_v46 = vpop.eup %1945 }
 0x791   : > { %v936_v48 = vmul.f32 %v1946_v46, %v1940_v36 }
 0x793   : > { %v939_v50 = vpack.c.bf16 %v937_v49, %v936_v48  ;;  %v1903_v48 = vld [vmem:[%s2305_s2 + $0x8] sm:$0xff]   ;;  %v1904_v49 = vld [vmem:[%s2305_s2] sm:$0xff]  }
 0x795   : > { %1817 = vmatprep.mubr.msk.bf16.mxu0 %vm543_vm3, %v939_v50 }
 0x796   : > { %1818 = vmatmul.mubr.msk.bf16.vlgmr.msra.gmra.mxu0 %vm543_vm3, %v940_v51 }
 0x797   : > { %1822 = vmatpush3.bf16.xpose.msra.mxu0 %v1037_v52  ;;  %1825 = vmatprep.mubr.msk.bf16.mxu0 %vm476_vm1, %v1020_v53 }
 0x798   : > { %1875 = vmatprep.subr.msk.bf16.mxu0 %vm476_vm1, %v1024_v54 }
 0x79f   : > { %1824 = vmatpush3.bf16.xpose.msra.mxu0 %v1034_v55 }
 0x7a6   : > { %1826 = vmatmul.mubr.msk.bf16.vlgmr.msra.gmra.mxu0 %vm476_vm1, %v1022_v56 }
 0x856   : > { %v1819_v57 = vpop.f32.mrf.mxu0 }
 0x858   : > { %v989_v58 = vpop.f32.mrf.mxu0 }
 0x85a   : > { %v1820_v59 = vpop.f32.mrf.mxu0 }
 0x85c   : > { %v992_v60 = vpop.f32.mrf.mxu0 }
 0x866   : > { %v1827_v61 = vpop.f32.mrf.mxu0 }
 0x867   : > { %v1089_v1 = vmul.f32 0.35355338, %v1827_v61 }
 0x868   : > { %v1073_v62 = vpop.f32.mrf.mxu0 }
 0x869   : > { %v1087_v6 = vmul.f32 0.35355338, %v1073_v62  ;;  %v1092_v14 = vadd.f32 %v1089_v1, %v2108_v21 }
 0x86a   : > { %v1828_v7 = vpop.f32.mrf.mxu0 }
 0x86b   : > { %v1090_v9 = vadd.f32 %v1087_v6, %v2108_v21  ;;  %v1099_v16 = vsel %vm543_vm3, %v1092_v14, -inf }
 0x86c   : > { %v1076_v10 = vpop.f32.mrf.mxu0 }
 0x86d   : > { %v1088_v11 = vmul.f32 0.35355338, %v1076_v10  ;;  %v1093_v13 = vsel %vm543_vm3, %v1090_v9, -inf }
 0x86e   : > { %1094 = vmax.xlane.f32.xlu0 %v1093_v13 }
 0x86f   : > { %v1091_v15 = vadd.f32 %v1088_v11, %v2108_v21 }
 0x871   : > { %v1096_v17 = vsel %vm543_vm3, %v1091_v15, -inf }
 0x872   : > { %1100 = vmax.xlane.f32.xlu0 %v1099_v16  ;;  %1097 = vmax.xlane.f32.xlu1 %v1096_v17 }
 0x8f7   : > { %v1095_v18 = vpop.xlane.xlu0 %1094 }
 0x8f8   : > { %v1102_v19 = vsub.f32 %v1090_v9, %v1095_v18 }
 0x8fa   : > { %v1105_v25 = vmul.f32 1.442695, %v1102_v19 }
 0x8fb   : > { %v1101_v20 = vpop.xlane.xlu0 %1100  ;;  %v1098_v22 = vpop.xlane.xlu1 %1097 }
 0x8fc   : > { %v1104_v23 = vsub.f32 %v1092_v14, %v1101_v20  ;;  %v1103_v24 = vsub.f32 %v1091_v15, %v1098_v22 }
 0x8fe   : > { %v1109_v26 = vmul.f32 1.442695, %v1104_v23  ;;  %v1107_v27 = vmul.f32 1.442695, %v1103_v24 }
 0x900   : > { %1947 = vpow2.f32 %v1109_v26 }
 0x901   : > { %1949 = vpow2.f32 %v1107_v27 }
 0x902   : > { %1951 = vpow2.f32 %v1105_v25 }
 0x90d   : > { %v1948_v28 = vpop.eup %1947 }
 0x90e   : > { %v1950_v21 = vpop.eup %1949  ;;  %v1117_v29 = vsel %vm543_vm3, %v1948_v28, 0.0 }
 0x90f   : > { %v1952_v30 = vpop.eup %1951  ;;  %1118 = vadd.xlane.f32.xlu0 %v1117_v29  ;;  %v1114_v31 = vsel %vm543_vm3, %v1950_v21, 0.0  ;;  %v1906_v29 = vld [vmem:[%s2308_s5] sm:$0xff]  }
 0x910   : > { %1115 = vadd.xlane.f32.xlu1 %v1114_v31  ;;  %v1111_v32 = vsel %vm543_vm3, %v1952_v30, 0.0 }
 0x913   : > { %1112 = vadd.xlane.f32.xlu0 %v1111_v32 }
 0x921   : > { %1130 = vrot.lane.b32.xlu1 %v2094_v8, %s1996_s20 }
 0x925   : > { %819 = vrot.lane.b32.xlu1 %v2169_v0, %s1997_s21 }
 0x929   : > { %821 = vrot.lane.b32.xlu1 %v2171_v5, %s1997_s21  ;;  %1128 = vrot.lane.b32.xlu0 %v2097_v12, %s1996_s20 }
 0x92d   : > { %1006 = vrot.lane.b32.xlu1 %v989_v58, %s1998_s22  ;;  %823 = vrot.lane.b32.xlu0 %v2167_v63, %s1997_s21 }
 0x931   : > { %1010 = vrot.lane.b32.xlu1 %v1819_v57, %s1998_s22  ;;  %1008 = vrot.lane.b32.xlu0 %v992_v60, %s1998_s22  ;;  %s386_s22 = scalar_lea.vmem %s2314_s11, %s1877_s23 }
 0x998   : > { %v1119_v33 = vpop.xlane.xlu0 %1118 }
 0x999   : > { %v1116_v34 = vpop.xlane.xlu1 %1115  ;;  %1953 = vrcp.f32 %v1119_v33 }
 0x99a   : > { %1955 = vrcp.f32 %v1116_v34 }
 0x99c   : > { %v1113_v35 = vpop.xlane.xlu0 %1112 }
 0x99d   : > { %1957 = vrcp.f32 %v1113_v35  ;;  %v1131_v8 = vpop.permute.xlu1 %1130 }
 0x99e   : > { %v1140_v36 = vsel %vm590_vm4, %v1131_v8, 0  ;;  %1876 = vmatprep.subr.msk.bf16.mxu1 %vm590_vm4, %v1131_v8 }
 0x99f   : > { %1830 = vmatpush3.bf16.msra.mxu1 %v1140_v36 }
 0x9a0   : > { %v1129_v12 = vpop.permute.xlu0 %1128 }
 0x9a1   : > { %v820_v0 = vpop.permute.xlu1 %819  ;;  %1831 = vmatprep.subr.bf16.mxu1 %v1129_v12 }
 0x9a2   : > { %829 = vst.msk [vmem:[#allocation2] sm:$0xff] %vm828_vm5, %v820_v0 }
 0x9a3   : > { %1832 = vmatpush3.bf16.msra.mxu1 %v1129_v12 }
 0x9a4   : > { %v824_v63 = vpop.permute.xlu0 %823  ;;  %1837 = vmatprep.subr.bf16.mxu1 %v1903_v48 }
 0x9a5   : > { %831 = vst.msk [vmem:[#allocation2 + $0x10] sm:$0xff] %vm828_vm5, %v824_v63  ;;  %v822_v5 = vpop.permute.xlu1 %821 }
 0x9a6   : > { %830 = vst.msk [vmem:[#allocation2 + $0x8] sm:$0xff] %vm828_vm5, %v822_v5  ;;  %v1954_v37 = vpop.eup %1953  ;;  %v1697_v5 = vld [vmem:[%s2306_s3] ss:$0 sm:$0xff] }
 0x9a7   : > { %v1956_v38 = vpop.eup %1955  ;;  %v1125_v42 = vmul.f32 %v1954_v37, %v1948_v28 }
 0x9a8   : > { %v1009_v39 = vpop.permute.xlu0 %1008  ;;  %v1124_v44 = vmul.f32 %v1956_v38, %v1950_v21  ;;  %v1905_v21 = vld [vmem:[%s2308_s5 + $0x8] sm:$0xff]  }
 0x9a9   : > { %1017 = vst.msk [vmem:[#allocation2 + $0x8] sm:$0xff] %vm1015_vm6, %v1009_v39  ;;  %v1007_v40 = vpop.permute.xlu1 %1006  ;;  %v1127_v47 = vpack.c.bf16 %v1125_v42, %v1125_v42  ;;  %1845 = vmatprep.subr.bf16.mxu0 %v1905_v21 }
 0x9aa   : > { %v1958_v41 = vpop.eup %1957  ;;  %1016 = vst.msk [vmem:[#allocation2] sm:$0xff] %vm1015_vm6, %v1007_v40  ;;  %1846 = vmatpush3.bf16.msra.mxu0 %v1905_v21  ;;  %v1698_v40 = vld [vmem:[%s2307_s4] ss:$0 sm:$0xff] }
 0x9ab   : > { %v1123_v43 = vmul.f32 %v1958_v41, %v1952_v30  ;;  %1847 = vmatprep.subr.bf16.mxu0 %v1906_v29 }
 0x9ad   : > { %v1011_v45 = vpop.permute.xlu1 %1010  ;;  %v1126_v46 = vpack.c.bf16 %v1124_v44, %v1123_v43 }
 0x9ae   : > { %1018 = vst.msk [vmem:[#allocation2 + $0x10] sm:$0xff] %vm1015_vm6, %v1011_v45  ;;  %1848 = vmatpush3.bf16.msra.mxu0 %v1906_v29 }
 0x9af   : > { %1833 = vmatprep.mubr.msk.bf16.mxu1 %vm543_vm3, %v1126_v46 }
 0x9b0   : > { %1834 = vmatmul.mubr.msk.bf16.vlgmr.msra.gmra.mxu1 %vm543_vm3, %v1127_v47 }
 0x9b1   : > { %1838 = vmatpush3.bf16.msra.mxu1 %v1903_v48 }
 0x9b2   : > { %1839 = vmatprep.subr.bf16.mxu1 %v1904_v49 }
 0x9b5   : > { %1840 = vmatpush3.bf16.msra.mxu1 %v1904_v49 }
 0xa70   : > { %v1835_v50 = vpop.f32.mrf.mxu1 }
 0xa72   : > { %v1176_v51 = vpop.f32.mrf.mxu1 }
 0xa73   : > { %1193 = vrot.lane.b32.xlu0 %v1176_v51, %s1999_s28  ;;  %v1908_v51 = vld [vmem:[%s2310_s7 + $0x10] sm:$0xff]  }
 0xa74   : > { %v1836_v52 = vpop.f32.mrf.mxu1 }
 0xa75   : > { %v1909_v52 = vld [vmem:[%s2310_s7 + $0x8] sm:$0xff]  }
 0xa76   : > { %v1179_v53 = vpop.f32.mrf.mxu1 }
 0xa77   : > { %1197 = vrot.lane.b32.xlu0 %v1835_v50, %s1999_s28  ;;  %1195 = vrot.lane.b32.xlu1 %v1179_v53, %s1999_s28  ;;  %v1907_v50 = vld [vmem:[%s2310_s7 + $0x18] sm:$0xff]   ;;  %v1910_v53 = vld [vmem:[%s2310_s7] sm:$0xff]  }
 0xa78   : > { %1853 = vmatprep.subr.bf16.mxu1 %v1907_v50 }
 0xae5   : > { %v1194_v54 = vpop.permute.xlu0 %1193 }
 0xae6   : > { %1203 = vst.msk [vmem:[#allocation2] sm:$0xff] %vm1202_vm7, %v1194_v54  ;;  %v1699_v54 = vld [vmem:[%s2309_s6] ss:$0 sm:$0xff] }
 0xae9   : > { %v1198_v55 = vpop.permute.xlu0 %1197  ;;  %v1196_v56 = vpop.permute.xlu1 %1195 }
 0xaea   : > { %1205 = vst.msk [vmem:[#allocation2 + $0x10] sm:$0xff] %vm1202_vm7, %v1198_v55  ;;  %1204 = vst.msk [vmem:[#allocation2 + $0x8] sm:$0xff] %vm1202_vm7, %v1196_v56 }
 0xaed   : > { %v1206_v57 = vld [vmem:[#allocation2] sm:$0xff] }
 0xaf1   : > { %v1207_v58 = vld [vmem:[#allocation2 + $0x8] sm:$0xff]  ;;  %v1208_v59 = vld [vmem:[#allocation2 + $0x10] sm:$0xff] }
 0xaf2   : > { %v1209_v60 = vpack.c.bf16 %v1207_v58, %v1206_v57  ;;  %v1210_v61 = vpack.c.bf16 %v1208_v59, %v1208_v59 }
 0xaf4   : > { %1841 = vmatprep.mubr.msk.bf16.mxu1 %vm409_vm0, %v1209_v60 }
 0xaf5   : > { %1842 = vmatmul.mubr.msk.bf16.vlgmr.msra.gmra.mxu1 %vm409_vm0, %v1210_v61 }
 0xaf6   : > { %1854 = vmatpush3.bf16.msra.mxu1 %v1907_v50 }
 0xaf7   : > { %1855 = vmatprep.subr.bf16.mxu1 %v1908_v51 }
 0xafa   : > { %1856 = vmatpush3.bf16.msra.mxu1 %v1908_v51 }
 0xafb   : > { %1857 = vmatprep.subr.bf16.mxu1 %v1909_v52 }
 0xafe   : > { %1858 = vmatpush3.bf16.msra.mxu1 %v1909_v52 }
 0xaff   : > { %1859 = vmatprep.subr.bf16.mxu1 %v1910_v53 }
 0xb02   : > { %1860 = vmatpush3.bf16.msra.mxu1 %v1910_v53 }
 0xbb5   : > { %v1843_v62 = vpop.f32.mrf.mxu1 }
 0xbb6   : > { %v1283_v13 = vadd.f32 %v1843_v62, %v2086_v4 }
 0xbb7   : > { %v1267_v1 = vpop.f32.mrf.mxu1 }
 0xbb8   : > { %v1281_v6 = vadd.f32 %v1267_v1, %v2082_v2  ;;  %v1292_v15 = vsel %vm409_vm0, %v1283_v13, 0.0 }
 0xbb9   : > { %v1844_v7 = vpop.f32.mrf.mxu1 }
 0xbba   : > { %v1286_v9 = vsel %vm409_vm0, %v1281_v6, 0.0 }
 0xbbb   : > { %1287 = vadd.xlane.f32.xlu1 %v1286_v9  ;;  %v1270_v10 = vpop.f32.mrf.mxu1 }
 0xbbc   : > { %v1282_v11 = vadd.f32 %v1270_v10, %v2084_v3 }
 0xbbe   : > { %v1289_v14 = vsel %vm409_vm0, %v1282_v11, 0.0 }
 0xbbf   : > { %1290 = vadd.xlane.f32.xlu0 %v1289_v14 }
 0xbc3   : > { %1293 = vadd.xlane.f32.xlu0 %v1292_v15 }
 0xc44   : > { %v1288_v16 = vpop.xlane.xlu1 %1287 }
 0xc45   : > { %v1296_v17 = vmul.f32 0.03125, %v1288_v16 }
 0xc47   : > { %v1299_v18 = vsub.f32 %v1281_v6, %v1296_v17 }
 0xc48   : > { %v1291_v19 = vpop.xlane.xlu0 %1290 }
 0xc49   : > { %v1297_v2 = vmul.f32 0.03125, %v1291_v19  ;;  %v1302_v20 = vmul.f32 %v1299_v18, %v1299_v18 }
 0xc4b   : > { %v1300_v22 = vsub.f32 %v1282_v11, %v1297_v2  ;;  %v1305_v23 = vsel %vm409_vm0, %v1302_v20, 0.0 }
 0xc4c   : > { %1306 = vadd.xlane.f32.xlu1 %v1305_v23  ;;  %v1294_v24 = vpop.xlane.xlu0 %1293 }
 0xc4d   : > { %v1298_v3 = vmul.f32 0.03125, %v1294_v24  ;;  %v1303_v25 = vmul.f32 %v1300_v22, %v1300_v22 }
 0xc4f   : > { %v1301_v4 = vsub.f32 %v1283_v13, %v1298_v3  ;;  %v1308_v26 = vsel %vm409_vm0, %v1303_v25, 0.0 }
 0xc50   : > { %1309 = vadd.xlane.f32.xlu0 %v1308_v26 }
 0xc51   : > { %v1304_v27 = vmul.f32 %v1301_v4, %v1301_v4 }
 0xc53   : > { %v1311_v28 = vsel %vm409_vm0, %v1304_v27, 0.0 }
 0xc54   : > { %1312 = vadd.xlane.f32.xlu1 %v1311_v28 }
 0xcd5   : > { %v1307_v30 = vpop.xlane.xlu1 %1306 }
 0xcd6   : > { %v1314_v31 = vmul.f32 0.03125, %v1307_v30 }
 0xcd8   : > { %v1317_v32 = vadd.f32 1e-05, %v1314_v31 }
 0xcd9   : > { %v1310_v33 = vpop.xlane.xlu0 %1309 }
 0xcda   : > { %1959 = vrsqrt.f32 %v1317_v32  ;;  %v1315_v34 = vmul.f32 0.03125, %v1310_v33  ;;  %v1704_v33 = vld [vmem:[%s2311_s8] ss:$0 sm:$0xff] }
 0xcdc   : > { %v1318_v35 = vadd.f32 1e-05, %v1315_v34 }
 0xcdd   : > { %v1313_v8 = vpop.xlane.xlu1 %1312 }
 0xcde   : > { %1961 = vrsqrt.f32 %v1318_v35  ;;  %v1316_v36 = vmul.f32 0.03125, %v1313_v8 }
 0xce0   : > { %v1319_v12 = vadd.f32 1e-05, %v1316_v36 }
 0xce2   : > { %1963 = vrsqrt.f32 %v1319_v12 }
 0xce7   : > { %v1960_v0 = vpop.eup %1959 }
 0xce8   : > { %v1323_v63 = vmul.f32 %v1960_v0, %v1299_v18 }
 0xcea   : > { %v1332_v39 = vmul.f32 %v1697_v5, %v1323_v63 }
 0xceb   : > { %v1962_v37 = vpop.eup %1961 }
 0xcec   : > { %v1324_v38 = vmul.f32 %v1962_v37, %v1300_v22  ;;  %v2247_v44 = vadd.f32 %v1698_v40, %v1332_v39 }
 0xcee   : > { %v1333_v41 = vmul.f32 %v1697_v5, %v1324_v38 }
 0xcef   : > { %v1964_v42 = vpop.eup %1963 }
 0xcf0   : > { %v1325_v43 = vmul.f32 %v1964_v42, %v1301_v4  ;;  %v2249_v45 = vadd.f32 %v1698_v40, %v1333_v41 }
 0xcf2   : > { %v1344_v46 = vpack.c.bf16 %v2249_v45, %v2247_v44  ;;  %v1334_v47 = vmul.f32 %v1697_v5, %v1325_v43 }
 0xcf4   : > { %1849 = vmatprep.mubr.msk.bf16.mxu0 %vm409_vm0, %v1344_v46  ;;  %v2254_v48 = vadd.f32 %v1698_v40, %v1334_v47 }
 0xcf6   : > { %v1345_v49 = vpack.c.bf16 %v2254_v48, %v2254_v48 }
 0xcf8   : > { %1850 = vmatmul.mubr.msk.bf16.vlgmr.msra.gmra.mxu0 %vm409_vm0, %v1345_v49 }
 0xdb8   : > { %v1851_v55 = vpop.f32.mrf.mxu0 }
 0xdb9   : > { %v1418_v56 = vadd.f32 %v1851_v55, %v1699_v54 }
 0xdba   : > { %v1409_v57 = vpop.f32.mrf.mxu0 }
 0xdbb   : > { %v1428_v58 = vmul.f32 0.044715, %v1418_v56  ;;  %v1410_v59 = vadd.f32 %v1699_v54, %v1409_v57  ;;  %v1425_v25 = vmul.f32 0.5, %v1418_v56 }
 0xdbc   : > { %v1852_v60 = vpop.f32.mrf.mxu0 }
 0xdbd   : > { %v1431_v61 = vmul.f32 %v1428_v58, %v1418_v56  ;;  %v1426_v62 = vmul.f32 0.044715, %v1410_v59  ;;  %v1423_v4 = vmul.f32 0.5, %v1410_v59 }
 0xdbe   : > { %v1412_v1 = vpop.f32.mrf.mxu0 }
 0xdbf   : > { %v1434_v6 = vmul.f32 %v1431_v61, %v1418_v56  ;;  %v1429_v7 = vmul.f32 %v1426_v62, %v1410_v59  ;;  %v1413_v9 = vadd.f32 %v1699_v54, %v1412_v1 }
 0xdc1   : > { %v1437_v10 = vadd.f32 %v1434_v6, %v1418_v56  ;;  %v1432_v11 = vmul.f32 %v1429_v7, %v1410_v59  ;;  %v1427_v13 = vmul.f32 0.044715, %v1413_v9  ;;  %v1424_v26 = vmul.f32 0.5, %v1413_v9 }
 0xdc3   : > { %v1440_v14 = vmul.f32 0.7978846, %v1437_v10  ;;  %v1435_v15 = vadd.f32 %v1432_v11, %v1410_v59  ;;  %v1430_v16 = vmul.f32 %v1427_v13, %v1413_v9  ;;  %v1712_v11 = vld [vmem:[%s2313_s10] ss:$0 sm:$0xff] }
 0xdc5   : > { %v1438_v17 = vmul.f32 0.7978846, %v1435_v15  ;;  %v1433_v18 = vmul.f32 %v1430_v16, %v1413_v9  ;;  %1965 = vtanh.f32 %v1440_v14 }
 0xdc7   : > { %1967 = vtanh.f32 %v1438_v17  ;;  %v1436_v19 = vadd.f32 %v1433_v18, %v1413_v9  ;;  %v1711_v9 = vld [vmem:[%s2312_s9] ss:$0 sm:$0xff] }
 0xdc9   : > { %v1439_v2 = vmul.f32 0.7978846, %v1436_v19 }
 0xdcb   : > { %1969 = vtanh.f32 %v1439_v2 }
 0xdd2   : > { %v1966_v20 = vpop.eup %1965 }
 0xdd3   : > { %v1446_v23 = vadd.f32 1.0, %v1966_v20 }
 0xdd4   : > { %v1968_v22 = vpop.eup %1967 }
 0xdd5   : > { %v1444_v24 = vadd.f32 1.0, %v1968_v22  ;;  %v1449_v28 = vmul.f32 %v1446_v23, %v1425_v25 }
 0xdd7   : > { %v1447_v21 = vmul.f32 %v1444_v24, %v1423_v4  ;;  %v1451_v31 = vpack.c.bf16 %v1449_v28, %v1449_v28 }
 0xdd8   : > { %v1970_v3 = vpop.eup %1969 }
 0xdd9   : > { %v1445_v27 = vadd.f32 1.0, %v1970_v3 }
 0xddb   : > { %v1448_v29 = vmul.f32 %v1445_v27, %v1424_v26 }
 0xddd   : > { %v1450_v30 = vpack.c.bf16 %v1448_v29, %v1447_v21 }
 0xddf   : > { %1861 = vmatprep.mubr.msk.bf16.mxu1 %vm1491_vm8, %v1450_v30 }
 0xde0   : > { %1862 = vmatmul.mubr.msk.bf16.vlgmr.msra.gmra.mxu1 %vm1491_vm8, %v1451_v31 }
 0xea0   : > { %v1863_v32 = vpop.f32.mrf.mxu1 }
 0xea1   : > { %v1541_v35 = vadd.f32 %v1863_v32, %v1704_v33 }
 0xea2   : > { %v1532_v34 = vpop.f32.mrf.mxu1 }
 0xea3   : > { %v1533_v8 = vadd.f32 %v1704_v33, %v1532_v34  ;;  %v1548_v37 = vadd.f32 %v1541_v35, %v2254_v48 }
 0xea4   : > { %v1864_v36 = vpop.f32.mrf.mxu1 }
 0xea5   : > { %v1546_v12 = vadd.f32 %v1533_v8, %v2247_v44  ;;  %v1557_v40 = vsel %vm409_vm0, %v1548_v37, 0.0 }
 0xea6   : > { %v1535_v0 = vpop.f32.mrf.mxu1 }
 0xea7   : > { %v1536_v63 = vadd.f32 %v1704_v33, %v1535_v0  ;;  %v1551_v5 = vsel %vm409_vm0, %v1546_v12, 0.0 }
 0xea8   : > { %1552 = vadd.xlane.f32.xlu0 %v1551_v5 }
 0xea9   : > { %v1547_v38 = vadd.f32 %v1536_v63, %v2249_v45 }
 0xeab   : > { %v1554_v39 = vsel %vm409_vm0, %v1547_v38, 0.0 }
 0xeac   : > { %1555 = vadd.xlane.f32.xlu1 %v1554_v39  ;;  %1558 = vadd.xlane.f32.xlu0 %v1557_v40 }
 0xf31   : > { %v1553_v41 = vpop.xlane.xlu0 %1552 }
 0xf32   : > { %v1560_v42 = vmul.f32 0.03125, %v1553_v41 }
 0xf34   : > { %v1563_v43 = vsub.f32 %v1546_v12, %v1560_v42 }
 0xf35   : > { %v1556_v46 = vpop.xlane.xlu1 %1555  ;;  %v1559_v44 = vpop.xlane.xlu0 %1558 }
 0xf36   : > { %v1561_v47 = vmul.f32 0.03125, %v1556_v46  ;;  %v1562_v49 = vmul.f32 0.03125, %v1559_v44  ;;  %v1566_v50 = vmul.f32 %v1563_v43, %v1563_v43 }
 0xf38   : > { %v1564_v51 = vsub.f32 %v1547_v38, %v1561_v47  ;;  %v1565_v52 = vsub.f32 %v1548_v37, %v1562_v49  ;;  %v1569_v48 = vsel %vm409_vm0, %v1566_v50, 0.0 }
 0xf39   : > { %1570 = vadd.xlane.f32.xlu1 %v1569_v48 }
 0xf3a   : > { %v1567_v45 = vmul.f32 %v1564_v51, %v1564_v51  ;;  %v1568_v53 = vmul.f32 %v1565_v52, %v1565_v52 }
 0xf3c   : > { %v1572_v54 = vsel %vm409_vm0, %v1567_v45, 0.0  ;;  %v1575_v55 = vsel %vm409_vm0, %v1568_v53, 0.0 }
 0xf3d   : > { %1573 = vadd.xlane.f32.xlu0 %v1572_v54  ;;  %1576 = vadd.xlane.f32.xlu1 %v1575_v55 }
 0xfc2   : > { %v1571_v56 = vpop.xlane.xlu1 %1570 }
 0xfc3   : > { %v1578_v57 = vmul.f32 0.03125, %v1571_v56 }
 0xfc5   : > { %v1581_v58 = vadd.f32 1e-05, %v1578_v57 }
 0xfc6   : > { %v1577_v59 = vpop.xlane.xlu1 %1576  ;;  %v1574_v60 = vpop.xlane.xlu0 %1573 }
 0xfc7   : > { %1971 = vrsqrt.f32 %v1581_v58  ;;  %v1580_v61 = vmul.f32 0.03125, %v1577_v59  ;;  %v1579_v62 = vmul.f32 0.03125, %v1574_v60 }
 0xfc9   : > { %v1583_v1 = vadd.f32 1e-05, %v1580_v61  ;;  %v1582_v6 = vadd.f32 1e-05, %v1579_v62 }
 0xfcb   : > { %1973 = vrsqrt.f32 %v1583_v1 }
 0xfcc   : > { %1975 = vrsqrt.f32 %v1582_v6 }
 0xfd4   : > { %v1972_v7 = vpop.eup %1971 }
 0xfd5   : > { %v1587_v10 = vmul.f32 %v1972_v7, %v1563_v43 }
 0xfd7   : > { %v1596_v13 = vmul.f32 %v1711_v9, %v1587_v10 }
 0xfd8   : > { %v1974_v14 = vpop.eup %1973 }
 0xfd9   : > { %v1976_v15 = vpop.eup %1975  ;;  %v1605_v16 = vadd.f32 %v1712_v11, %v1596_v13  ;;  %v1589_v17 = vmul.f32 %v1974_v14, %v1565_v52 }
 0xfda   : > { %v1588_v18 = vmul.f32 %v1976_v15, %v1564_v51 }
 0xfdb   : > { %1608 = vst.msk [vmem:[%s386_s22] sm:$0xff] %vm409_vm0, %v1605_v16  ;;  %v1598_v19 = vmul.f32 %v1711_v9, %v1589_v17 }
 0xfdc   : > { %v1597_v2 = vmul.f32 %v1711_v9, %v1588_v18 }
 0xfdd   : > { %v1607_v20 = vadd.f32 %v1712_v11, %v1598_v19 }
 0xfde   : > { %v1606_v22 = vadd.f32 %v1712_v11, %v1597_v2 }
 0xfdf   : > { %1610 = vst.msk [vmem:[%s386_s22 + $0x10] sm:$0xff] %vm409_vm0, %v1607_v20 }
 0xfe0   : > { %1609 = vst.msk [vmem:[%s386_s22 + $0x8] sm:$0xff] %vm409_vm0, %v1606_v22 }
 0xfe1 PF: > { %s21_s17 = sadd.s32 1, %s1983_s17  }
 0xfe2   : > { %p18_p4 = scmp.ge.s32.totalorder %s21_s17, 4  }
 0xfe4   :  { %20 = sbr.rel (!%p18_p4) target bundleno = 1 (0x1), region = 94 }

</bundles_post_ra>
